<compile_context>
chip_gen: v5e
topology: v5e:2x2
jax: 0.10.0
libtpu: 0.0.40
codegen_flags: <defaults>
</compile_context>

<pallas_src>
import functools

import jax
import jax.numpy as jnp
import numpy as np
from jax.experimental import pallas as pl
from jax.experimental.pallas import tpu as pltpu

K = 8          # kernel size
STRIDE = 2
PAD = 3
KK = K // STRIDE   # 4: folded kernel extent per spatial dim after 2x space-to-depth


def _conv3d_s2d_kernel(x_ref, w_ref, b_ref, o_ref, acc_ref, *, s2):
    """One (image, output-depth-tile) step of the stride-2 Conv3d.

    x_ref  : (1, Dp*S2, KC2) bf16 -- per-image space-to-depth slab with the
             (kh', kw') taps folded into channels; rows = flattened (dp, oh, ow).
    w_ref  : (KK, KC2, C_out)  bf16 -- one kd' tap per matmul.
    b_ref  : (1, C_out)        f32
    o_ref  : (1, C_out, M)     f32  -- M = TD*S2 output positions, lane-dense.
    acc_ref: (M, C_out)        f32 VMEM scratch accumulator.
    """
    t = pl.program_id(1)
    c_out = o_ref.shape[1]
    m = o_ref.shape[2]

    # Bias folded into the accumulator init (single hoisted broadcast).
    acc_ref[...] = jnp.broadcast_to(b_ref[...], (m, c_out)).astype(jnp.float32)

    # 4 kd' taps, fully unrolled: each is a contiguous (M, KC2) x (KC2, C_out)
    # MXU matmul with contraction depth KC2 = 16*8*C_in (512 here).
    for kd in range(KK):
        start = pl.multiple_of(t * m + kd * s2, s2)
        blk = x_ref[0, pl.ds(start, m), :]                     # (M, KC2) bf16
        acc_ref[...] += jnp.dot(blk, w_ref[kd],
                                preferred_element_type=jnp.float32)

    # (M, C_out) -> (C_out, M): one small f32 XLU transpose so the HBM store is
    # lane-dense along the flattened spatial axis (M >= 256) instead of C_out.
    o_ref[...] = acc_ref[...].T.reshape(1, c_out, m).astype(o_ref.dtype)


def _pick_depth_tile(d_out, s2):
    """Pick the output-depth tile TD: lane width TD*S2 >= 256 (unmasked stores)
    while keeping >= 2 od-tiles per image for DMA/compute overlap, if possible."""
    td = d_out
    for cand in range(1, d_out + 1):
        if d_out % cand == 0 and cand * s2 >= 256 and d_out // cand >= 2:
            td = cand
            break
    return td


def conv_823_forward(x, weight, bias):
    """Forward of nn.Conv3d(C_in, C_out, kernel_size=8, stride=2, padding=3, bias=True).

    x      : (N, C_in, D, H, W)       float32 (PyTorch NCDHW)
    weight : (C_out, C_in, 8, 8, 8)   PyTorch Conv3d weight layout
    bias   : (C_out,)
    returns: (N, C_out, D_out, H_out, W_out) float32
    """
    N, C_in, D, H, W = x.shape
    C_out = weight.shape[0]
    D_out = (D + 2 * PAD - K) // STRIDE + 1
    H_out = (H + 2 * PAD - K) // STRIDE + 1
    W_out = (W + 2 * PAD - K) // STRIDE + 1
    S2 = H_out * W_out

    # ---- glue: NCDHW -> zero-padded NDHWC, extents rounded up to even --------
    Dq = -(-(D + 2 * PAD) // 2) * 2
    Hq = -(-(H + 2 * PAD) // 2) * 2
    Wq = -(-(W + 2 * PAD) // 2) * 2
    x_ndhwc = jnp.transpose(x, (0, 2, 3, 4, 1))
    xp = jnp.zeros((N, Dq, Hq, Wq, C_in), jnp.float32)
    xp = xp.at[:, PAD:PAD + D, PAD:PAD + H, PAD:PAD + W, :].set(x_ndhwc)

    # ---- glue: 2x space-to-depth on (D, H, W): stride-2 / k=8 conv becomes a
    # stride-1 / k=4 conv over 8*C_in channels (channel order = (pd, ph, pw, ci)).
    Dp, Hp, Wp = Dq // 2, Hq // 2, Wq // 2
    xs = xp.reshape(N, Dp, 2, Hp, 2, Wp, 2, C_in)
    xs = jnp.transpose(xs, (0, 1, 3, 5, 2, 4, 6, 7)).reshape(N, Dp, Hp, Wp, 8 * C_in)

    # ---- glue: fold kw' then kh' taps into the channel axis (im2col along W, H)
    # Channel order becomes (kh', kw', pd, ph, pw, ci); rows flattened (dp, oh, ow).
    xw = jnp.concatenate([xs[:, :, :, j:j + W_out, :] for j in range(KK)], axis=-1)
    xh = jnp.concatenate([xw[:, :, j:j + H_out, :, :] for j in range(KK)], axis=-1)
    KC2 = KK * KK * 8 * C_in
    xf = xh.reshape(N, Dp * S2, KC2).astype(jnp.bfloat16)

    # ---- glue: weight -> (kd', [kh', kw', pd, ph, pw, ci], co), bf16 ----------
    w_r = weight.reshape(C_out, C_in, KK, 2, KK, 2, KK, 2)    # co ci kd' pd kh' ph kw' pw
    w_t = jnp.transpose(w_r, (2, 4, 6, 3, 5, 7, 1, 0))         # kd' kh' kw' pd ph pw ci co
    w_fold = w_t.reshape(KK, KC2, C_out).astype(jnp.bfloat16)
    b2d = bias.reshape(1, C_out).astype(jnp.float32)

    TD = _pick_depth_tile(D_out, S2)
    nT = D_out // TD
    M = TD * S2

    out = pl.pallas_call(
        functools.partial(_conv3d_s2d_kernel, s2=S2),
        out_shape=jax.ShapeDtypeStruct((N, C_out, D_out * S2), jnp.float32),
        grid_spec=pltpu.PrefetchScalarGridSpec(
            num_scalar_prefetch=0,
            grid=(N, nT),
            in_specs=[
                # Full per-image folded slab; block index ignores the od-tile,
                # so the input DMA happens once per image and is reused.
                pl.BlockSpec((1, Dp * S2, KC2), lambda n, t: (n, 0, 0)),
                pl.BlockSpec((KK, KC2, C_out), lambda n, t: (0, 0, 0)),
                pl.BlockSpec((1, C_out), lambda n, t: (0, 0)),
            ],
            out_specs=pl.BlockSpec((1, C_out, M), lambda n, t: (n, 0, t)),
            scratch_shapes=[pltpu.VMEM((M, C_out), jnp.float32)],
        ),
        compiler_params=pltpu.CompilerParams(
            dimension_semantics=("parallel", "arbitrary"),
            vmem_limit_bytes=32 * 1024 * 1024),
    )(xf, w_fold, b2d)

    # (N, C_out, D_out*H_out*W_out) -> NCDHW: a free reshape, no transpose.
    return out.reshape(N, C_out, D_out, H_out, W_out)


def _reference_conv3d(x, w, b):
    """Independent numpy reference of PyTorch Conv3d(k=8, s=2, p=3, bias=True)."""
    x = np.asarray(x, np.float32)
    w = np.asarray(w, np.float32)
    b = np.asarray(b, np.float32)
    N, C_in, D, H, W = x.shape
    C_out = w.shape[0]
    D_out = (D + 2 * PAD - K) // STRIDE + 1
    H_out = (H + 2 * PAD - K) // STRIDE + 1
    W_out = (W + 2 * PAD - K) // STRIDE + 1
    xp = np.zeros((N, C_in, D + 2 * PAD, H + 2 * PAD, W + 2 * PAD), np.float32)
    xp[:, :, PAD:PAD + D, PAD:PAD + H, PAD:PAD + W] = x
    y = np.zeros((N, C_out, D_out, H_out, W_out), np.float32)
    for kd in range(K):
        for kh in range(K):
            for kw in range(K):
                patch = xp[:, :, kd:kd + STRIDE * D_out:STRIDE,
                              kh:kh + STRIDE * H_out:STRIDE,
                              kw:kw + STRIDE * W_out:STRIDE]
                y += np.einsum("ncdhw,oc->nodhw", patch, w[:, :, kd, kh, kw],
                               optimize=True)
    return y + b[None, :, None, None, None]


if __name__ == "__main__":
    # Small shapes consistent with the module's forward (Conv3d, k=8, s=2, p=3).
    N, C_in, C_out = 2, 4, 8
    D = H = W = 16

    key = jax.random.PRNGKey(0)
    kx, kwt, kb = jax.random.split(key, 3)
    x = jax.random.normal(kx, (N, C_in, D, H, W), dtype=jnp.float32)
    weight = jax.random.normal(kwt, (C_out, C_in, K, K, K), dtype=jnp.float32) * 0.05
    bias = jax.random.normal(kb, (C_out,), dtype=jnp.float32) * 0.1

    y = conv_823_forward(x, weight, bias)
    y = jax.block_until_ready(y)

    # Reference uses the same bf16-rounded operands the kernel feeds the MXU
    # (accumulation stays f32), so only summation-order error remains.
    x_r = np.asarray(x.astype(jnp.bfloat16).astype(jnp.float32))
    w_r = np.asarray(weight.astype(jnp.bfloat16).astype(jnp.float32))
    y_ref = _reference_conv3d(x_r, w_r, np.asarray(bias))

    D_out = (D + 2 * PAD - K) // STRIDE + 1
    assert y.shape == (N, C_out, D_out, D_out, D_out)
    np.testing.assert_allclose(np.asarray(y), y_ref, rtol=2e-3, atol=2e-3)

    print("KERNEL_OK")
</pallas_src>

<mosaic_0001>
module attributes {stable_mosaic.version = 11 : i64} {
  func.func @_conv3d_s2d_kernel(%arg0: i32, %arg1: i32, %arg2: memref<1x704x512xbf16, #tpu.memory_space<vmem>>, %arg3: memref<4x512x8xbf16, #tpu.memory_space<vmem>>, %arg4: memref<1x8xf32, #tpu.memory_space<vmem>>, %arg5: memref<1x8x256xf32, #tpu.memory_space<vmem>>, %arg6: memref<256x8xf32, #tpu.memory_space<vmem>>) attributes {dimension_semantics = [#tpu.dimension_semantics<parallel>, #tpu.dimension_semantics<arbitrary>], iteration_bounds = array<i64: 2, 2>, scalar_prefetch = 0 : i64, scratch_operands = 1 : i64, tpu.core_type = #tpu.core_type<tc>, window_params = [{transform_indices = @transform_0, window_bounds = array<i64: 1, 704, 512>}, {pipeline_mode = #tpu.pipeline_mode<synchronous>, transform_indices = @transform_1, window_bounds = array<i64: 4, 512, 8>}, {pipeline_mode = #tpu.pipeline_mode<synchronous>, transform_indices = @transform_2, window_bounds = array<i64: 1, 8>}, {transform_indices = @transform_3, window_bounds = array<i64: 1, 8, 256>}]} {
    %c0 = arith.constant 0 : index
    %c0_0 = arith.constant 0 : index
    %0 = vector.load %arg4[%c0, %c0_0] : memref<1x8xf32, #tpu.memory_space<vmem>>, vector<1x8xf32>
    %1 = vector.shape_cast %0 : vector<1x8xf32> to vector<1x8xf32>
    %2 = vector.broadcast %1 : vector<1x8xf32> to vector<256x8xf32>
    %c0_1 = arith.constant 0 : index
    %c0_2 = arith.constant 0 : index
    %3 = vector.load %arg6[%c0_1, %c0_2] : memref<256x8xf32, #tpu.memory_space<vmem>>, vector<256x8xf32>
    tpu.vector_store %arg6[%c0_1, %c0_2], %2 {strides = array<i32>} : memref<256x8xf32, #tpu.memory_space<vmem>>, vector<256x8xf32>,
    %c256_i32 = arith.constant 256 : i32
    %4 = arith.muli %arg1, %c256_i32 : i32
    %c0_i32 = arith.constant 0 : i32
    %5 = arith.addi %4, %c0_i32 : i32
    %6 = tpu.assume_multiple %5, 64 : i32
    %c0_3 = arith.constant 0 : index
    %7 = arith.index_cast %6 : i32 to index
    %c0_4 = arith.constant 0 : index
    %8 = vector.load %arg2[%c0_3, %7, %c0_4] : memref<1x704x512xbf16, #tpu.memory_space<vmem>>, vector<1x256x512xbf16>
    %9 = vector.shape_cast %8 : vector<1x256x512xbf16> to vector<256x512xbf16>
    %c0_5 = arith.constant 0 : index
    %c0_6 = arith.constant 0 : index
    %10 = vector.load %arg6[%c0_5, %c0_6] : memref<256x8xf32, #tpu.memory_space<vmem>>, vector<256x8xf32>
    %c0_7 = arith.constant 0 : index
    %c0_8 = arith.constant 0 : index
    %c0_9 = arith.constant 0 : index
    %11 = vector.load %arg3[%c0_7, %c0_8, %c0_9] : memref<4x512x8xbf16, #tpu.memory_space<vmem>>, vector<1x512x8xbf16>
    %12 = vector.shape_cast %11 : vector<1x512x8xbf16> to vector<512x8xbf16>
    %cst = arith.constant dense<0.000000e+00> : vector<256x8xf32>
    %13 = tpu.matmul %9, %12, %cst {dimension_numbers = #tpu.dot_dimension_numbers<[1], [0], [0], [1], [0, 0, 1, 1], [], []>} : vector<256x512xbf16>, vector<512x8xbf16>, vector<256x8xf32> -> vector<256x8xf32>
    %14 = arith.addf %10, %13 : vector<256x8xf32>
    %c0_10 = arith.constant 0 : index
    %c0_11 = arith.constant 0 : index
    %15 = vector.load %arg6[%c0_10, %c0_11] : memref<256x8xf32, #tpu.memory_space<vmem>>, vector<256x8xf32>
    tpu.vector_store %arg6[%c0_10, %c0_11], %14 {strides = array<i32>} : memref<256x8xf32, #tpu.memory_space<vmem>>, vector<256x8xf32>,
    %c256_i32_12 = arith.constant 256 : i32
    %16 = arith.muli %arg1, %c256_i32_12 : i32
    %c64_i32 = arith.constant 64 : i32
    %17 = arith.addi %16, %c64_i32 : i32
    %18 = tpu.assume_multiple %17, 64 : i32
    %c0_13 = arith.constant 0 : index
    %19 = arith.index_cast %18 : i32 to index
    %c0_14 = arith.constant 0 : index
    %20 = vector.load %arg2[%c0_13, %19, %c0_14] : memref<1x704x512xbf16, #tpu.memory_space<vmem>>, vector<1x256x512xbf16>
    %21 = vector.shape_cast %20 : vector<1x256x512xbf16> to vector<256x512xbf16>
    %c0_15 = arith.constant 0 : index
    %c0_16 = arith.constant 0 : index
    %22 = vector.load %arg6[%c0_15, %c0_16] : memref<256x8xf32, #tpu.memory_space<vmem>>, vector<256x8xf32>
    %c1 = arith.constant 1 : index
    %c0_17 = arith.constant 0 : index
    %c0_18 = arith.constant 0 : index
    %23 = vector.load %arg3[%c1, %c0_17, %c0_18] : memref<4x512x8xbf16, #tpu.memory_space<vmem>>, vector<1x512x8xbf16>
    %24 = vector.shape_cast %23 : vector<1x512x8xbf16> to vector<512x8xbf16>
    %cst_19 = arith.constant dense<0.000000e+00> : vector<256x8xf32>
    %25 = tpu.matmul %21, %24, %cst_19 {dimension_numbers = #tpu.dot_dimension_numbers<[1], [0], [0], [1], [0, 0, 1, 1], [], []>} : vector<256x512xbf16>, vector<512x8xbf16>, vector<256x8xf32> -> vector<256x8xf32>
    %26 = arith.addf %22, %25 : vector<256x8xf32>
    %c0_20 = arith.constant 0 : index
    %c0_21 = arith.constant 0 : index
    %27 = vector.load %arg6[%c0_20, %c0_21] : memref<256x8xf32, #tpu.memory_space<vmem>>, vector<256x8xf32>
    tpu.vector_store %arg6[%c0_20, %c0_21], %26 {strides = array<i32>} : memref<256x8xf32, #tpu.memory_space<vmem>>, vector<256x8xf32>,
    %c256_i32_22 = arith.constant 256 : i32
    %28 = arith.muli %arg1, %c256_i32_22 : i32
    %c128_i32 = arith.constant 128 : i32
    %29 = arith.addi %28, %c128_i32 : i32
    %30 = tpu.assume_multiple %29, 64 : i32
    %c0_23 = arith.constant 0 : index
    %31 = arith.index_cast %30 : i32 to index
    %c0_24 = arith.constant 0 : index
    %32 = vector.load %arg2[%c0_23, %31, %c0_24] : memref<1x704x512xbf16, #tpu.memory_space<vmem>>, vector<1x256x512xbf16>
    %33 = vector.shape_cast %32 : vector<1x256x512xbf16> to vector<256x512xbf16>
    %c0_25 = arith.constant 0 : index
    %c0_26 = arith.constant 0 : index
    %34 = vector.load %arg6[%c0_25, %c0_26] : memref<256x8xf32, #tpu.memory_space<vmem>>, vector<256x8xf32>
    %c2 = arith.constant 2 : index
    %c0_27 = arith.constant 0 : index
    %c0_28 = arith.constant 0 : index
    %35 = vector.load %arg3[%c2, %c0_27, %c0_28] : memref<4x512x8xbf16, #tpu.memory_space<vmem>>, vector<1x512x8xbf16>
    %36 = vector.shape_cast %35 : vector<1x512x8xbf16> to vector<512x8xbf16>
    %cst_29 = arith.constant dense<0.000000e+00> : vector<256x8xf32>
    %37 = tpu.matmul %33, %36, %cst_29 {dimension_numbers = #tpu.dot_dimension_numbers<[1], [0], [0], [1], [0, 0, 1, 1], [], []>} : vector<256x512xbf16>, vector<512x8xbf16>, vector<256x8xf32> -> vector<256x8xf32>
    %38 = arith.addf %34, %37 : vector<256x8xf32>
    %c0_30 = arith.constant 0 : index
    %c0_31 = arith.constant 0 : index
    %39 = vector.load %arg6[%c0_30, %c0_31] : memref<256x8xf32, #tpu.memory_space<vmem>>, vector<256x8xf32>
    tpu.vector_store %arg6[%c0_30, %c0_31], %38 {strides = array<i32>} : memref<256x8xf32, #tpu.memory_space<vmem>>, vector<256x8xf32>,
    %c256_i32_32 = arith.constant 256 : i32
    %40 = arith.muli %arg1, %c256_i32_32 : i32
    %c192_i32 = arith.constant 192 : i32
    %41 = arith.addi %40, %c192_i32 : i32
    %42 = tpu.assume_multiple %41, 64 : i32
    %c0_33 = arith.constant 0 : index
    %43 = arith.index_cast %42 : i32 to index
    %c0_34 = arith.constant 0 : index
    %44 = vector.load %arg2[%c0_33, %43, %c0_34] : memref<1x704x512xbf16, #tpu.memory_space<vmem>>, vector<1x256x512xbf16>
    %45 = vector.shape_cast %44 : vector<1x256x512xbf16> to vector<256x512xbf16>
    %c0_35 = arith.constant 0 : index
    %c0_36 = arith.constant 0 : index
    %46 = vector.load %arg6[%c0_35, %c0_36] : memref<256x8xf32, #tpu.memory_space<vmem>>, vector<256x8xf32>
    %c3 = arith.constant 3 : index
    %c0_37 = arith.constant 0 : index
    %c0_38 = arith.constant 0 : index
    %47 = vector.load %arg3[%c3, %c0_37, %c0_38] : memref<4x512x8xbf16, #tpu.memory_space<vmem>>, vector<1x512x8xbf16>
    %48 = vector.shape_cast %47 : vector<1x512x8xbf16> to vector<512x8xbf16>
    %cst_39 = arith.constant dense<0.000000e+00> : vector<256x8xf32>
    %49 = tpu.matmul %45, %48, %cst_39 {dimension_numbers = #tpu.dot_dimension_numbers<[1], [0], [0], [1], [0, 0, 1, 1], [], []>} : vector<256x512xbf16>, vector<512x8xbf16>, vector<256x8xf32> -> vector<256x8xf32>
    %50 = arith.addf %46, %49 : vector<256x8xf32>
    %c0_40 = arith.constant 0 : index
    %c0_41 = arith.constant 0 : index
    %51 = vector.load %arg6[%c0_40, %c0_41] : memref<256x8xf32, #tpu.memory_space<vmem>>, vector<256x8xf32>
    tpu.vector_store %arg6[%c0_40, %c0_41], %50 {strides = array<i32>} : memref<256x8xf32, #tpu.memory_space<vmem>>, vector<256x8xf32>,
    %c0_42 = arith.constant 0 : index
    %c0_43 = arith.constant 0 : index
    %52 = vector.load %arg6[%c0_42, %c0_43] : memref<256x8xf32, #tpu.memory_space<vmem>>, vector<256x8xf32>
    %53 = tpu.transpose %52, [1, 0] : vector<256x8xf32> -> vector<8x256xf32>
    %54 = vector.shape_cast %53 : vector<8x256xf32> to vector<1x8x256xf32>
    %c0_44 = arith.constant 0 : index
    %c0_45 = arith.constant 0 : index
    %c0_46 = arith.constant 0 : index
    %55 = vector.load %arg5[%c0_44, %c0_45, %c0_46] : memref<1x8x256xf32, #tpu.memory_space<vmem>>, vector<1x8x256xf32>
    tpu.vector_store %arg5[%c0_44, %c0_45, %c0_46], %54 {strides = array<i32>} : memref<1x8x256xf32, #tpu.memory_space<vmem>>, vector<1x8x256xf32>,
    return
  }
  func.func @transform_0(%arg0: i32, %arg1: i32) -> (i32, i32, i32) {
    %c0_i32 = arith.constant 0 : i32
    %c0_i32_0 = arith.constant 0 : i32
    %c0_i32_1 = arith.constant 0 : i32
    return %arg0, %c0_i32, %c0_i32_0 : i32, i32, i32
  }
  func.func @transform_1(%arg0: i32, %arg1: i32) -> (i32, i32, i32) {
    %c0_i32 = arith.constant 0 : i32
    %c0_i32_0 = arith.constant 0 : i32
    %c0_i32_1 = arith.constant 0 : i32
    %c0_i32_2 = arith.constant 0 : i32
    return %c0_i32, %c0_i32_0, %c0_i32_1 : i32, i32, i32
  }
  func.func @transform_2(%arg0: i32, %arg1: i32) -> (i32, i32) {
    %c0_i32 = arith.constant 0 : i32
    %c0_i32_0 = arith.constant 0 : i32
    %c0_i32_1 = arith.constant 0 : i32
    return %c0_i32, %c0_i32_0 : i32, i32
  }
  func.func @transform_3(%arg0: i32, %arg1: i32) -> (i32, i32, i32) {
    %c0_i32 = arith.constant 0 : i32
    %c0_i32_0 = arith.constant 0 : i32
    return %arg0, %c0_i32, %arg1 : i32, i32, i32
  }
}

</mosaic_0001>

<bundles_post_ra>
// kernel: tpu_custom_call.1
= control target key start
LH: loop header
LB: loop body
LE: loop exit
PB: predicated region body
PF: predicated region fallthrough
CT: control target
= control target key end

     0   :  { %s8652_s0 = inlined_call_operand.hbm [shape: bf16[2,704,512], index: 0, kind: input, shape index: {}]   ;;  %s8653_s1 = inlined_call_operand.vmem [shape: bf16[4,512,8], index: 1, kind: input, shape index: {}]   ;;  %s8654_s2 = inlined_call_operand.hbm [shape: f32[1,8], index: 2, kind: input, shape index: {}]   ;;  %s8655_s3 = inlined_call_operand.hbm [shape: f32[2,8,512], index: 3, kind: output, shape index: {}]  }
   0x1   :  { %8665 = sst [smem:[#allocation18_spill]] %s8654_s2 }
   0x2   :  { %8666 = sst [smem:[#allocation19_spill]] %s8655_s3 }
   0x3   :  { %8 = vsyncpa [#allocation4], 0 }
   0x4   :  { %10 = vsyncpa [#allocation4 + $0x1], 0 }
   0x5   :  { %11 = vsyncpa [#allocation7], 0 }
   0x6   :  { %12 = vsyncpa [#allocation5], 0 }
   0x7   :  { %14 = vsyncpa [#allocation5 + $0x1], 0  ;;  %s7342_s12 = smov 0   ;;  %s7344_s13 = smov 0  }
   0x8   :  { %s7346_s14 = smov 0   ;;  %s7348_s15 = smov 0  }
   0x9   :  { %s7350_s16 = smov 0   ;;  %s7352_s17 = smov 0  }
   0xa   :  { %s7354_s18 = smov 0   ;;  %s7356_s19 = smov 0  }
   0xb   :  { %s7358_s20 = smov 0   ;;  %s7360_s21 = smov 0  }
   0xc   :  { %s7362_s22 = smov 0  }
   0xd LB: > { %8667 = sst [smem:[#allocation12_spill]] %s7277_s12  ;;  %s4872_s23 = sadd.s32 4294967295, %s7317_s22   ;;  %s7317_s22 = sphi %s7362_s22, %s8700_s22   ;;  %s7313_s21 = sphi %s7360_s21, %s8699_s21   ;;  %s7309_s20 = sphi %s7358_s20, %s8698_s20   ;;  %s7305_s19 = sphi %s7356_s19, %s8697_s19   ;;  %s7301_s18 = sphi %s7354_s18, %s8689_s18   ;;  %s7297_s17 = sphi %s7352_s17, %s8696_s17   ;;  %s7293_s16 = sphi %s7350_s16, %s8695_s16   ;;  %s7289_s15 = sphi %s7348_s15, %s8694_s15   ;;  %s7285_s14 = sphi %s7346_s14, %s8693_s14   ;;  %s7281_s13 = sphi %s7344_s13, %s8692_s13   ;;  %s7277_s12 = sphi %s7342_s12, %s8691_s12  }
   0xe   : > { %8668 = sst [smem:[#allocation13_spill]] %s7309_s20  ;;  %s4873_s24 = sadd.s32 4294967294, %s7317_s22  }
   0xf   : > { %8669 = sst [smem:[#allocation14_spill]] %s7317_s22  ;;  %p46_p0 = scmp.ne.s32.totalorder %s7297_s17, %s7293_s16 }
  0x10   : > { %p47_p1 = scmp.eq.s32.totalorder %s7317_s22, 0  ;;  %p52_p2 = scmp.ne.s32.totalorder %s7293_s16, %s7289_s15 }
  0x11   : > { %p7402_p3 = scmp.eq.s32.totalorder %s4872_s23, 0  ;;  %p119_p5 = scmp.ne.s32.totalorder %s7285_s14, %s7281_s13 }
  0x12   : > { %p7407_p4 = por %p47_p1, %p46_p0  ;;  %p120_p7 = scmp.eq.s32.totalorder %s4872_s23, 3 }
  0x13   : > { %p7415_p6 = por %p7402_p3, %p52_p2  ;;  %p125_p8 = scmp.ne.s32.totalorder %s7281_s13, %s7277_s12 }
  0x14   : > { %p126_p9 = scmp.eq.s32.totalorder %s4873_s24, 3  ;;  %p7421_p10 = por %p120_p7, %p119_p5 }
  0x15   : > { %p4874_p11 = scmp.ge.s32.totalorder %s7317_s22, 1  ;;  %p133_p13 = scmp.lt.s32.totalorder %s7317_s22, 5 }
  0x16   : > { %s8673_s30 = scalar_select %p7421_p10, 1, 0 }
  0x17   : > { %p7426_p12 = por %p126_p9, %p125_p8  ;;  %s8677_s2 = sld [smem:[#allocation18_spill]] }
  0x18   : > { %8674 = sst [smem:[#allocation15_spill]] %s8673_s30  ;;  %p7434_p0 = pnand %p4874_p11, %p133_p13 }
  0x19   : > { %s8675_s4 = scalar_select %p7426_p12, 1, 0 }
  0x1a   : > { %p7023_p1 = pneg %p7434_p0  ;;  %s7319_s9 = smov [#allocation6]  }
  0x1b   : > { %8676 = sst [smem:[#allocation16_spill]] %s8675_s4  ;;  %s150_s10 = sshll.u32 %s7319_s9, 4  ;;  %s151_s10 = int_to_ptr.vmem [resolvable:$true] %s150_s10 }
  0x1c   : > { %p7036_p2 = scmp.lt.s32.totalorder %s7317_s22, 4  ;;  %p7024_p5 = pnand %p7023_p1, %p7402_p3 }
  0x1d   : > { %s148_s7 = sshll.u32 %s8677_s2, 4  ;;  %s29_s15 = sadd.s32 1, %s7309_s20  ;;  %s149_s7 = int_to_ptr.hbm [resolvable:$true] %s148_s7 }
  0x1e   : > { %p7445_p7 = pnand %p7036_p2, %p7407_p4  ;;  %s32_s23 = sadd.s32 1, %s7313_s21 }
  0x1f   : > { %7026 = dma.hbm_to_vmem [thread:$0]  (!%p7024_p5), %s149_s7, 16, %s151_s10, [#allocation7]  }
  0x20   : > { %p30_p8 = scmp.ge.s32.totalorder %s29_s15, 2  ;;  %s161_s24 = sand.u32 1, %s7297_s17  }
  0x21   : > { %s7012_s5 = smul.u32 1408, %s161_s24  ;;  %s7320_s3 = smov 256  }
  0x22   : > { %s8702_s15 = smov (%p30_p8, %s29_s15), 0  ;;  %s8704_s23 = smov (!%p30_p8, %s32_s23), %s7313_s21 }
  0x23   : > { %8680 = sst [smem:[#allocation17_spill]] %s8702_s15  ;;  %s105_s28 = ssub.s32 %s7309_s20, %s8702_s15 }
  0x24   : > { %p34_p4 = scmp.ge.s32.totalorder %s8704_s23, 2  ;;  %s7013_s6 = smul.u32 1408, %s7313_s21 }
  0x25   : > { %s165_s9 = scalar_lea.vmem [#allocation3], %s7012_s5  ;;  %s8681_s15 = sadd.s32 1, %s7297_s17 }
  0x26   : > { %s173_s7 = sshll.u32 %s165_s9, 4  ;;  %s8706_s23 = smov (%p34_p4, %s8704_s23), 0  ;;  %s174_s7 = int_to_ptr.vmem [resolvable:$true] %s173_s7 }
  0x27   : > { %s170_s25 = scalar_lea.hbm %s8652_s0, %s7013_s6  ;;  %s36_s2 = ssub.s32 %s7313_s21, %s8706_s23 }
  0x28   : > { %s171_s4 = sshll.u32 %s170_s25, 4  ;;  %p37_p9 = scmp.eq.s32.totalorder %s36_s2, 0  ;;  %s172_s4 = int_to_ptr.hbm [resolvable:$true] %s171_s4 }
  0x29   : > { %s106_s12 = sor.u32 %s105_s28, %s36_s2  ;;  %s8682_s5 = sadd.s32 1, %s7285_s14 }
  0x2a   : > { %p107_p11 = scmp.eq.s32.totalorder %s106_s12, 0  ;;  %s162_s9 = scalar_lea.sflag [#allocation4], %s161_s24 }
  0x2b   : > { %s7468_s20 = scalar_select %p37_p9, %s7297_s17, %s8681_s15  }
  0x2c   : > { %s7473_s22 = scalar_select %p107_p11, %s7285_s14, %s8682_s5  }
  0x2d   : > { %s7321_s30 = smov 16   ;;  %185 = sbr.rel (%p7434_p0) target bundleno = 1298 (0x512), region = 32 }
  0x2e   : > { %7030 = dma.hbm_to_vmem [thread:$0]  (!%p7445_p7), %s172_s4, 22528, %s174_s7, %s162_s9, %s7320_s3, %s7320_s3, %s7321_s30  }
  0x2f   : > { %s187_s25 = sand.u32 (!%p7434_p0), 1, %s7293_s16  }
  0x30   : > { %s7014_s2 = smul.u32 (!%p7434_p0), 1408, %s187_s25  ;;  %s188_s12 = scalar_lea.sflag (!%p7434_p0), [#allocation4], %s187_s25 }
  0x32   : > { %s7480_s27 = scalar_lea.vmem [#allocation3], %s7014_s2 }
  0x33   : > { %7264 = dma.done.wait (%p7415_p6), %s188_s12, 22528  }
  0x34   : > { %7266 = vsyncadd (%p7415_p6), %s188_s12, 4294944768 }
  0x35   : > { %7268 = dma.done.wait (%p7402_p3), [#allocation7], 16  }
  0x36   : > { %7270 = vsyncadd (%p7402_p3), [#allocation7], 4294967280  ;;  %v6696_v0 = vld [vmem:[%s8653_s1 + $0x38] sm:$0xff]  ;;  %v6695_v4 = vld [vmem:[%s8653_s1 + $0x30] sm:$0xff]  ;;  %s7539_s9 = sshll.u32 %s7301_s18, 8  ;;  %vm225_vm0 = vcmask 64512  }
  0x37   : > { %v6704_v1 = vld [vmem:[%s8653_s1 + $0x78] sm:$0xff]  ;;  %936 = vmatpush.bf16.msra.mxu0 %v6696_v0  ;;  %v6703_v5 = vld [vmem:[%s8653_s1 + $0x70] sm:$0xff]  ;;  %v6694_v8 = vld [vmem:[%s8653_s1 + $0x28] sm:$0xff]  ;;  %s259_s15 = sshra.s32 %s7539_s9, 3  ;;  %s1356_s24 = sadd.s32 64, %s7539_s9 }
  0x38   : > { %v6712_v2 = vld [vmem:[%s8653_s1 + $0xb8] sm:$0xff]  ;;  %1025 = vmatpush.bf16.msra.mxu1 %v6704_v1  ;;  %v6711_v6 = vld [vmem:[%s8653_s1 + $0xb0] sm:$0xff]  ;;  %v6702_v9 = vld [vmem:[%s8653_s1 + $0x68] sm:$0xff]  ;;  %s6624_s25 = sshll.u32 %s259_s15, 4  ;;  %s2455_s6 = sadd.s32 128, %s7539_s9 }
  0x39   : > { %v6720_v3 = vld [vmem:[%s8653_s1 + $0xf8] sm:$0xff]  ;;  %1114 = vmatpush.bf16.msra.mxu2 %v6712_v2  ;;  %v6719_v7 = vld [vmem:[%s8653_s1 + $0xf0] sm:$0xff]  ;;  %v6710_v10 = vld [vmem:[%s8653_s1 + $0xa8] sm:$0xff]  ;;  %s7573_s4 = scalar_lea.vmem %s7480_s27, %s6624_s25 [#allocation3]  ;;  %s3554_s15 = sadd.s32 192, %s7539_s9 }
  0x3a   : > { %1203 = vmatpush.bf16.msra.mxu3 %v6720_v3  ;;  %v6718_v11 = vld [vmem:[%s8653_s1 + $0xe8] sm:$0xff]  ;;  %v6693_v12 = vld [vmem:[%s8653_s1 + $0x20] sm:$0xff]  ;;  %v6692_v16 = vld [vmem:[%s8653_s1 + $0x18] sm:$0xff]  ;;  %s3555_s29 = sshra.s32 %s3554_s15, 3  ;;  %s8684_s12 = sld [smem:[#allocation19_spill]] }
  0x3b   : > { %937 = vmatpush.bf16.msra.mxu0 %v6695_v4  ;;  %v6701_v13 = vld [vmem:[%s8653_s1 + $0x60] sm:$0xff]  ;;  %v6700_v17 = vld [vmem:[%s8653_s1 + $0x58] sm:$0xff]  ;;  %v6691_v20 = vld [vmem:[%s8653_s1 + $0x10] sm:$0xff]  ;;  %s6915_s9 = sshll.u32 %s3555_s29, 4 }
  0x3c   : > { %1026 = vmatpush.bf16.msra.mxu1 %v6703_v5  ;;  %v6709_v14 = vld [vmem:[%s8653_s1 + $0xa0] sm:$0xff]  ;;  %v6708_v18 = vld [vmem:[%s8653_s1 + $0x98] sm:$0xff]  ;;  %v6699_v21 = vld [vmem:[%s8653_s1 + $0x50] sm:$0xff] }
  0x3d   : > { %1115 = vmatpush.bf16.msra.mxu2 %v6711_v6  ;;  %v6717_v15 = vld [vmem:[%s8653_s1 + $0xe0] sm:$0xff]  ;;  %v6716_v19 = vld [vmem:[%s8653_s1 + $0xd8] sm:$0xff]  ;;  %v6707_v22 = vld [vmem:[%s8653_s1 + $0x90] sm:$0xff] }
  0x3e   : > { %1204 = vmatpush.bf16.msra.mxu3 %v6719_v7  ;;  %v6715_v23 = vld [vmem:[%s8653_s1 + $0xd0] sm:$0xff]  ;;  %v6690_v24 = vld [vmem:[%s8653_s1 + $0x8] sm:$0xff]  ;;  %v6689_v28 = vld [vmem:[%s8653_s1] sm:$0xff] }
  0x3f   : > { %938 = vmatpush.bf16.msra.mxu0 %v6694_v8  ;;  %v6698_v25 = vld [vmem:[%s8653_s1 + $0x48] sm:$0xff]  ;;  %v6697_v29 = vld [vmem:[%s8653_s1 + $0x40] sm:$0xff]  ;;  %v6627_v33 = vld [vmem:[%s7573_s4 + $0xc] sm:$0xf0] }
  0x40   : > { %1027 = vmatpush.bf16.msra.mxu1 %v6702_v9  ;;  %v6706_v26 = vld [vmem:[%s8653_s1 + $0x88] sm:$0xff]  ;;  %v6705_v30 = vld [vmem:[%s8653_s1 + $0x80] sm:$0xff]  ;;  %v4888_v35 = vld [vmem:[%s7573_s4 + $0x10] sm:$0xf0]  ;;  %s8685_s3 = smov %s8684_s12 }
  0x41   : > { %1116 = vmatpush.bf16.msra.mxu2 %v6710_v10  ;;  %v6714_v27 = vld [vmem:[%s8653_s1 + $0xc8] sm:$0xff]  ;;  %v6713_v31 = vld [vmem:[%s8653_s1 + $0xc0] sm:$0xff]  ;;  %v6628_v37 = vld [vmem:[%s7573_s4 + $0x14] sm:$0xf0] }
  0x42   : > { %1205 = vmatpush.bf16.msra.mxu3 %v6718_v11  ;;  %v4886_v32 = vld [vmem:[%s7573_s4] sm:$0xf]  ;;  %v6625_v34 = vld [vmem:[%s7573_s4 + $0x4] sm:$0xf]  ;;  %v4894_v36 = vld [vmem:[%s7573_s4 + $0x8] sm:$0xf] }
  0x43   : > { %939 = vmatpush.bf16.msra.mxu0 %v6693_v12  ;;  %v6626_v38 = vld [vmem:[%s7573_s4 + $0xc] sm:$0xf]  ;;  %v4896_v39 = vld [vmem:[%s7573_s4 + $0x18] sm:$0xf0]  ;;  %v4887_v42 = vor.u32 %v6627_v33, %v4886_v32  ;;  %v4891_v43 = vor.u32 %v6625_v34, %v4888_v35  ;;  %v4895_v44 = vor.u32 %v6628_v37, %v4894_v36  ;;  %v6808_v48 = vld [vmem:[%s8653_s1 + $0x1b0] sm:$0xff] }
  0x44   : > { %1028 = vmatpush.bf16.msra.mxu1 %v6701_v13  ;;  %v6809_v40 = vld [vmem:[%s8653_s1 + $0x1b8] sm:$0xff]  ;;  %v4899_v45 = vor.u32 %v6626_v38, %v4896_v39  ;;  %v6816_v49 = vld [vmem:[%s8653_s1 + $0x1f0] sm:$0xff]  ;;  %v4902_v52 = vld [vmem:[%s7573_s4 + $0x20] sm:$0xf] }
  0x45   : > { %1117 = vmatpush.bf16.msra.mxu2 %v6709_v14  ;;  %v6817_v41 = vld [vmem:[%s8653_s1 + $0x1f8] sm:$0xff]  ;;  %v6792_v50 = vld [vmem:[%s8653_s1 + $0x130] sm:$0xff]  ;;  %v6629_v54 = vld [vmem:[%s7573_s4 + $0x24] sm:$0xf] }
  0x46   : > { %1206 = vmatpush.bf16.msra.mxu3 %v6717_v15  ;;  %v6793_v46 = vld [vmem:[%s8653_s1 + $0x138] sm:$0xff]  ;;  %v6800_v51 = vld [vmem:[%s8653_s1 + $0x170] sm:$0xff]  ;;  %v4910_v56 = vld [vmem:[%s7573_s4 + $0x28] sm:$0xf] }
  0x47   : > { %940 = vmatpush.bf16.msra.mxu0 %v6692_v16  ;;  %v6801_v47 = vld [vmem:[%s8653_s1 + $0x178] sm:$0xff]  ;;  %v6631_v53 = vld [vmem:[%s7573_s4 + $0x2c] sm:$0xf0]  ;;  %v4904_v55 = vld [vmem:[%s7573_s4 + $0x30] sm:$0xf0] }
  0x48   : > { %1029 = vmatpush.bf16.msra.mxu1 %v6700_v17  ;;  %v6632_v57 = vld [vmem:[%s7573_s4 + $0x34] sm:$0xf0]  ;;  %v6630_v58 = vld [vmem:[%s7573_s4 + $0x2c] sm:$0xf]  ;;  %v4912_v59 = vld [vmem:[%s7573_s4 + $0x38] sm:$0xf0]  ;;  %v4903_v60 = vor.u32 %v6631_v53, %v4902_v52  ;;  %v4907_v61 = vor.u32 %v6629_v54, %v4904_v55 }
  0x49   : > { %1118 = vmatpush.bf16.msra.mxu2 %v6708_v18  ;;  %v4911_v62 = vor.u32 %v6632_v57, %v4910_v56  ;;  %v4915_v63 = vor.u32 %v6630_v58, %v4912_v59  ;;  %v4918_v0 = vld [vmem:[%s7573_s4 + $0x40] sm:$0xf]  ;;  %v6635_v1 = vld [vmem:[%s7573_s4 + $0x4c] sm:$0xf0]  ;;  %v6633_v2 = vld [vmem:[%s7573_s4 + $0x44] sm:$0xf] }
  0x4a   : > { %1207 = vmatpush.bf16.msra.mxu3 %v6716_v19  ;;  %v4920_v3 = vld [vmem:[%s7573_s4 + $0x50] sm:$0xf0]  ;;  %v4926_v4 = vld [vmem:[%s7573_s4 + $0x48] sm:$0xf]  ;;  %v6636_v5 = vld [vmem:[%s7573_s4 + $0x54] sm:$0xf0]  ;;  %v4919_v8 = vor.u32 %v6635_v1, %v4918_v0 }
  0x4b   : > { %941 = vmatpush.bf16.msra.mxu0 %v6691_v20  ;;  %v6634_v6 = vld [vmem:[%s7573_s4 + $0x4c] sm:$0xf]  ;;  %v4928_v7 = vld [vmem:[%s7573_s4 + $0x58] sm:$0xf0]  ;;  %v4923_v9 = vor.u32 %v6633_v2, %v4920_v3  ;;  %v4927_v10 = vor.u32 %v6636_v5, %v4926_v4  ;;  %v4934_v16 = vld [vmem:[%s7573_s4 + $0x60] sm:$0xf] }
  0x4c   : > { %1030 = vmatpush.bf16.msra.mxu1 %v6699_v21  ;;  %v4931_v11 = vor.u32 %v6634_v6, %v4928_v7  ;;  %v6807_v12 = vld [vmem:[%s8653_s1 + $0x1a8] sm:$0xff]  ;;  %v6639_v17 = vld [vmem:[%s7573_s4 + $0x6c] sm:$0xf0]  ;;  %v6637_v18 = vld [vmem:[%s7573_s4 + $0x64] sm:$0xf] }
  0x4d   : > { %1119 = vmatpush.bf16.msra.mxu2 %v6707_v22  ;;  %v6815_v13 = vld [vmem:[%s8653_s1 + $0x1e8] sm:$0xff]  ;;  %v4936_v19 = vld [vmem:[%s7573_s4 + $0x70] sm:$0xf0]  ;;  %v6640_v21 = vld [vmem:[%s7573_s4 + $0x74] sm:$0xf0] }
  0x4e   : > { %1208 = vmatpush.bf16.msra.mxu3 %v6715_v23  ;;  %v6791_v14 = vld [vmem:[%s8653_s1 + $0x128] sm:$0xff]  ;;  %v4944_v23 = vld [vmem:[%s7573_s4 + $0x78] sm:$0xf0]  ;;  %v6644_v33 = vld [vmem:[%s7573_s4 + $0x94] sm:$0xf0] }
  0x4f   : > { %942 = vmatpush.bf16.msra.mxu0 %v6690_v24  ;;  %v6799_v15 = vld [vmem:[%s8653_s1 + $0x168] sm:$0xff]  ;;  %v4935_v24 = vor.u32 %v6639_v17, %v4934_v16  ;;  %v4960_v35 = vld [vmem:[%s7573_s4 + $0x98] sm:$0xf0]  ;;  %v4982_v56 = vld [vmem:[%s7573_s4 + $0xc0] sm:$0xf] }
  0x50   : > { %1031 = vmatpush.bf16.msra.mxu1 %v6698_v25  ;;  %v4942_v20 = vld [vmem:[%s7573_s4 + $0x68] sm:$0xf]  ;;  %v6638_v22 = vld [vmem:[%s7573_s4 + $0x6c] sm:$0xf]  ;;  %v4939_v25 = vor.u32 %v6637_v18, %v4936_v19  ;;  %v6651_v57 = vld [vmem:[%s7573_s4 + $0xcc] sm:$0xf0] }
  0x51   : > { %1120 = vmatpush.bf16.msra.mxu2 %v6706_v26  ;;  %v4943_v26 = vor.u32 %v6640_v21, %v4942_v20  ;;  %v4958_v32 = vld [vmem:[%s7573_s4 + $0x88] sm:$0xf]  ;;  %v6642_v34 = vld [vmem:[%s7573_s4 + $0x8c] sm:$0xf]  ;;  %v6649_v58 = vld [vmem:[%s7573_s4 + $0xc4] sm:$0xf]  ;;  %v4983_v0 = vor.u32 %v6651_v57, %v4982_v56 }
  0x52   : > { %1209 = vmatpush.bf16.msra.mxu3 %v6714_v27  ;;  %v4947_v27 = vor.u32 %v6638_v22, %v4944_v23  ;;  %v4959_v38 = vor.u32 %v6644_v33, %v4958_v32  ;;  %v4963_v39 = vor.u32 %v6642_v34, %v4960_v35  ;;  %v4984_v59 = vld [vmem:[%s7573_s4 + $0xd0] sm:$0xf0]  ;;  %v7697_v4 = vld [vmem:[#allocation6] ss:$0 sm:$0xff]  ;;  %v6805_v5 = vld [vmem:[%s8653_s1 + $0x198] sm:$0xff] }
  0x53   : > { %943 = vmatpush.bf16.msra.mxu0 %v6689_v28  ;;  %v4950_v28 = vld [vmem:[%s7573_s4 + $0x80] sm:$0xf]  ;;  %v4987_v1 = vor.u32 %v6649_v58, %v4984_v59  ;;  %v6813_v6 = vld [vmem:[%s8653_s1 + $0x1d8] sm:$0xff]  ;;  %226 = vst.msk [vmem:[#allocation2] sm:$0xff] %vm225_vm0, %v7697_v4  ;;  %v6659_v22 = vld [vmem:[%s7573_s4 + $0x10c] sm:$0xf0] }
  0x54   : > { %1032 = vmatpush.bf16.msra.mxu1 %v6697_v29  ;;  %v6643_v29 = vld [vmem:[%s7573_s4 + $0x8c] sm:$0xf0]  ;;  %227 = vst.msk [vmem:[#allocation2 + $0x8] sm:$0xff] %vm225_vm0, %v7697_v4  ;;  %v4998_v7 = vld [vmem:[%s7573_s4 + $0xe0] sm:$0xf]  ;;  %v6797_v16 = vld [vmem:[%s8653_s1 + $0x158] sm:$0xff] }
  0x55   : > { %1121 = vmatpush.bf16.msra.mxu2 %v6705_v30  ;;  %v6641_v30 = vld [vmem:[%s7573_s4 + $0x84] sm:$0xf]  ;;  %v4951_v36 = vor.u32 %v6643_v29, %v4950_v28  ;;  %228 = vst.msk [vmem:[#allocation2 + $0x10] sm:$0xff] %vm225_vm0, %v7697_v4  ;;  %v5014_v21 = vld [vmem:[%s7573_s4 + $0x100] sm:$0xf]  ;;  %v6796_v56 = vld [vmem:[%s8653_s1 + $0x150] sm:$0xff] }
  0x56   : > { %1210 = vmatpush.bf16.msra.mxu3 %v6713_v31  ;;  %944 = vmatmul.bf16.vlgmr.msra.gmra.mxu0 %v4887_v42  ;;  %v4952_v31 = vld [vmem:[%s7573_s4 + $0x90] sm:$0xf0]  ;;  %v6790_v42 = vld [vmem:[%s8653_s1 + $0x120] sm:$0xff]  ;;  %229 = vst.msk [vmem:[#allocation2 + $0x18] sm:$0xff] %vm225_vm0, %v7697_v4  ;;  %v5024_v28 = vld [vmem:[%s7573_s4 + $0x118] sm:$0xf0]  ;;  %v5015_v29 = vor.u32 %v6659_v22, %v5014_v21 }
  0x57   : > { %1033 = vmatmul.bf16.vlgmr.msra.gmra.mxu1 %v4891_v43  ;;  %2035 = vmatpush.bf16.msrb.mxu0 %v6793_v46  ;;  %v4955_v37 = vor.u32 %v6641_v30, %v4952_v31  ;;  %v6798_v43 = vld [vmem:[%s8653_s1 + $0x160] sm:$0xff]  ;;  %230 = vst.msk [vmem:[#allocation2 + $0x20] sm:$0xff] %vm225_vm0, %v7697_v4  ;;  %v5056_v21 = vld [vmem:[%s7573_s4 + $0x158] sm:$0xf0] }
  0x58   : > { %1122 = vmatmul.bf16.vlgmr.msra.gmra.mxu2 %v4895_v44  ;;  %2124 = vmatpush.bf16.msrb.mxu1 %v6801_v47  ;;  %v4966_v44 = vld [vmem:[%s7573_s4 + $0xa0] sm:$0xf]  ;;  %v6645_v46 = vld [vmem:[%s7573_s4 + $0xa4] sm:$0xf]  ;;  %v4968_v47 = vld [vmem:[%s7573_s4 + $0xb0] sm:$0xf0] }
  0x59   : > { %2213 = vmatpush.bf16.msrb.mxu2 %v6809_v40  ;;  %1211 = vmatmul.bf16.vlgmr.msra.gmra.mxu3 %v4899_v45  ;;  %v6806_v40 = vld [vmem:[%s8653_s1 + $0x1a0] sm:$0xff]  ;;  %v6647_v45 = vld [vmem:[%s7573_s4 + $0xac] sm:$0xf0]  ;;  %v4971_v53 = vor.u32 %v6645_v46, %v4968_v47  ;;  %231 = vst.msk [vmem:[#allocation2 + $0x28] sm:$0xff] %vm225_vm0, %v7697_v4 }
  0x5a   : > { %2302 = vmatpush.bf16.msrb.mxu3 %v6817_v41  ;;  %v6814_v41 = vld [vmem:[%s8653_s1 + $0x1e0] sm:$0xff]  ;;  %v4967_v52 = vor.u32 %v6647_v45, %v4966_v44  ;;  %232 = vst.msk [vmem:[#allocation2 + $0x30] sm:$0xff] %vm225_vm0, %v7697_v4  ;;  %v6663_v46 = vld [vmem:[%s7573_s4 + $0x12c] sm:$0xf0] }
  0x5b   : > { %2036 = vmatpush.bf16.msrb.mxu0 %v6792_v50  ;;  %v6646_v50 = vld [vmem:[%s7573_s4 + $0xac] sm:$0xf]  ;;  %233 = vst.msk [vmem:[#allocation2 + $0x38] sm:$0xff] %vm225_vm0, %v7697_v4  ;;  %v6657_v23 = vld [vmem:[%s7573_s4 + $0x104] sm:$0xf] }
  0x5c   : > { %2125 = vmatpush.bf16.msrb.mxu1 %v6800_v51  ;;  %v4976_v51 = vld [vmem:[%s7573_s4 + $0xb8] sm:$0xf0]  ;;  %234 = vst.msk [vmem:[#allocation2 + $0x40] sm:$0xff] %vm225_vm0, %v7697_v4  ;;  %v5030_v45 = vld [vmem:[%s7573_s4 + $0x120] sm:$0xf] }
  0x5d   : > { %2214 = vmatpush.bf16.msrb.mxu2 %v6808_v48  ;;  %v4974_v48 = vld [vmem:[%s7573_s4 + $0xa8] sm:$0xf]  ;;  %v4979_v55 = vor.u32 %v6646_v50, %v4976_v51  ;;  %235 = vst.msk [vmem:[#allocation2 + $0x48] sm:$0xff] %vm225_vm0, %v7697_v4  ;;  %v6664_v51 = vld [vmem:[%s7573_s4 + $0x134] sm:$0xf0]  ;;  %v5031_v59 = vor.u32 %v6663_v46, %v5030_v45 }
  0x5e   : > { %2303 = vmatpush.bf16.msrb.mxu3 %v6816_v49  ;;  %v6648_v49 = vld [vmem:[%s7573_s4 + $0xb4] sm:$0xf0]  ;;  %236 = vst.msk [vmem:[#allocation2 + $0x50] sm:$0xff] %vm225_vm0, %v7697_v4  ;;  %v5038_v50 = vld [vmem:[%s7573_s4 + $0x128] sm:$0xf] }
  0x5f   : > { %2037 = vmatpush.bf16.msrb.mxu0 %v6791_v14  ;;  %v4975_v54 = vor.u32 %v6648_v49, %v4974_v48  ;;  %v5008_v14 = vld [vmem:[%s7573_s4 + $0xf8] sm:$0xf0]  ;;  %237 = vst.msk [vmem:[#allocation2 + $0x58] sm:$0xff] %vm225_vm0, %v7697_v4  ;;  %v6661_v48 = vld [vmem:[%s7573_s4 + $0x124] sm:$0xf] }
  0x60   : > { %2126 = vmatpush.bf16.msrb.mxu1 %v6799_v15  ;;  %v6789_v15 = vld [vmem:[%s8653_s1 + $0x118] sm:$0xff]  ;;  %238 = vst.msk [vmem:[#allocation2 + $0x60] sm:$0xff] %vm225_vm0, %v7697_v4  ;;  %v5032_v49 = vld [vmem:[%s7573_s4 + $0x130] sm:$0xf0]  ;;  %v5062_v45 = vld [vmem:[%s7573_s4 + $0x160] sm:$0xf] }
  0x61   : > { %2215 = vmatpush.bf16.msrb.mxu2 %v6807_v12  ;;  %v6656_v12 = vld [vmem:[%s7573_s4 + $0xf4] sm:$0xf0]  ;;  %239 = vst.msk [vmem:[#allocation2 + $0x68] sm:$0xff] %vm225_vm0, %v7697_v4  ;;  %v6671_v46 = vld [vmem:[%s7573_s4 + $0x16c] sm:$0xf0] }
  0x62   : > { %2304 = vmatpush.bf16.msrb.mxu3 %v6815_v13  ;;  %v6654_v13 = vld [vmem:[%s7573_s4 + $0xec] sm:$0xf]  ;;  %240 = vst.msk [vmem:[#allocation2 + $0x70] sm:$0xff] %vm225_vm0, %v7697_v4 }
  0x63   : > { %2038 = vmatpush.bf16.msrb.mxu0 %v6790_v42  ;;  %v5011_v20 = vor.u32 %v6654_v13, %v5008_v14  ;;  %241 = vst.msk [vmem:[#allocation2 + $0x78] sm:$0xff] %vm225_vm0, %v7697_v4  ;;  %v5046_v13 = vld [vmem:[%s7573_s4 + $0x140] sm:$0xf]  ;;  %v6667_v14 = vld [vmem:[%s7573_s4 + $0x14c] sm:$0xf0] }
  0x64   : > { %2127 = vmatpush.bf16.msrb.mxu1 %v6798_v43  ;;  %242 = vst.msk [vmem:[#allocation2 + $0x80] sm:$0xff] %vm225_vm0, %v7697_v4  ;;  %v328_v43 = vld [vmem:[#allocation2] sm:$0xff] }
  0x65   : > { %2216 = vmatpush.bf16.msrb.mxu2 %v6806_v40  ;;  %243 = vst.msk [vmem:[#allocation2 + $0x88] sm:$0xff] %vm225_vm0, %v7697_v4 }
  0x66   : > { %949 = vmatmul.bf16.gmra.mxu0 %v4903_v60  ;;  %2305 = vmatpush.bf16.msrb.mxu3 %v6814_v41  ;;  %v4990_v60 = vld [vmem:[%s7573_s4 + $0xc8] sm:$0xf]  ;;  %244 = vst.msk [vmem:[#allocation2 + $0x90] sm:$0xff] %vm225_vm0, %v7697_v4 }
  0x67   : > { %1038 = vmatmul.bf16.gmra.mxu1 %v4907_v61  ;;  %v6652_v61 = vld [vmem:[%s7573_s4 + $0xd4] sm:$0xf0]  ;;  %2039 = vmatpush.bf16.msrb.mxu0 %v6789_v15  ;;  %245 = vst.msk [vmem:[#allocation2 + $0x98] sm:$0xff] %vm225_vm0, %v7697_v4 }
  0x68   : > { %1127 = vmatmul.bf16.gmra.mxu2 %v4911_v62  ;;  %v6650_v62 = vld [vmem:[%s7573_s4 + $0xcc] sm:$0xf]  ;;  %v4991_v2 = vor.u32 %v6652_v61, %v4990_v60  ;;  %2128 = vmatpush.bf16.msrb.mxu1 %v6797_v16  ;;  %246 = vst.msk [vmem:[#allocation2 + $0xa0] sm:$0xff] %vm225_vm0, %v7697_v4  ;;  %v5035_v60 = vor.u32 %v6661_v48, %v5032_v49  ;;  %v6665_v16 = vld [vmem:[%s7573_s4 + $0x144] sm:$0xf] }
  0x69   : > { %1216 = vmatmul.bf16.gmra.mxu3 %v4915_v63  ;;  %v4992_v63 = vld [vmem:[%s7573_s4 + $0xd8] sm:$0xf0]  ;;  %2217 = vmatpush.bf16.msrb.mxu2 %v6805_v5  ;;  %247 = vst.msk [vmem:[#allocation2 + $0xa8] sm:$0xff] %vm225_vm0, %v7697_v4  ;;  %v6669_v48 = vld [vmem:[%s7573_s4 + $0x164] sm:$0xf] }
  0x6a   : > { %v4995_v3 = vor.u32 %v6650_v62, %v4992_v63  ;;  %2306 = vmatpush.bf16.msrb.mxu3 %v6813_v6  ;;  %248 = vst.msk [vmem:[#allocation2 + $0xb0] sm:$0xff] %vm225_vm0, %v7697_v4  ;;  %v5064_v49 = vld [vmem:[%s7573_s4 + $0x170] sm:$0xf0] }
  0x6b   : > { %249 = vst.msk [vmem:[#allocation2 + $0xb8] sm:$0xff] %vm225_vm0, %v7697_v4 }
  0x6c   : > { %250 = vst.msk [vmem:[#allocation2 + $0xc0] sm:$0xff] %vm225_vm0, %v7697_v4  ;;  %2129 = vmatpush.bf16.msrb.mxu1 %v6796_v56  ;;  %v6795_v56 = vld [vmem:[%s8653_s1 + $0x148] sm:$0xff] }
  0x6d   : > { %251 = vst.msk [vmem:[#allocation2 + $0xc8] sm:$0xff] %vm225_vm0, %v7697_v4 }
  0x6e   : > { %252 = vst.msk [vmem:[#allocation2 + $0xd0] sm:$0xff] %vm225_vm0, %v7697_v4 }
  0x6f   : > { %253 = vst.msk [vmem:[#allocation2 + $0xd8] sm:$0xff] %vm225_vm0, %v7697_v4 }
  0x70   : > { %254 = vst.msk [vmem:[#allocation2 + $0xe0] sm:$0xff] %vm225_vm0, %v7697_v4  ;;  %2130 = vmatpush.bf16.msrb.mxu1 %v6795_v56  ;;  %v6794_v56 = vld [vmem:[%s8653_s1 + $0x140] sm:$0xff] }
  0x71   : > { %255 = vst.msk [vmem:[#allocation2 + $0xe8] sm:$0xff] %vm225_vm0, %v7697_v4 }
  0x72   : > { %256 = vst.msk [vmem:[#allocation2 + $0xf0] sm:$0xff] %vm225_vm0, %v7697_v4 }
  0x73   : > { %257 = vst.msk [vmem:[#allocation2 + $0xf8] sm:$0xff] %vm225_vm0, %v7697_v4 }
  0x74   : > { %2131 = vmatpush.bf16.msrb.mxu1 %v6794_v56  ;;  %v6898_v56 = vld [vmem:[%s8653_s1 + $0x278] sm:$0xff] }
  0x76   : > { %954 = vmatmul.bf16.gmra.mxu0 %v4919_v8  ;;  %v6655_v8 = vld [vmem:[%s7573_s4 + $0xec] sm:$0xf0] }
  0x77   : > { %1043 = vmatmul.bf16.gmra.mxu1 %v4923_v9  ;;  %v6653_v9 = vld [vmem:[%s7573_s4 + $0xe4] sm:$0xf]  ;;  %v4999_v17 = vor.u32 %v6655_v8, %v4998_v7 }
  0x78   : > { %1132 = vmatmul.bf16.gmra.mxu2 %v4927_v10  ;;  %v5000_v10 = vld [vmem:[%s7573_s4 + $0xf0] sm:$0xf0]  ;;  %3223 = vmatpush.bf16.msra.mxu1 %v6898_v56 }
  0x79   : > { %1221 = vmatmul.bf16.gmra.mxu3 %v4931_v11  ;;  %v5006_v11 = vld [vmem:[%s7573_s4 + $0xe8] sm:$0xf]  ;;  %v5003_v18 = vor.u32 %v6653_v9, %v5000_v10  ;;  %v6897_v56 = vld [vmem:[%s8653_s1 + $0x270] sm:$0xff] }
  0x7a   : > { %v5007_v19 = vor.u32 %v6656_v12, %v5006_v11  ;;  %v330_v11 = vld [vmem:[#allocation2 + $0x10] sm:$0xff] }
  0x7c   : > { %3224 = vmatpush.bf16.msra.mxu1 %v6897_v56  ;;  %v6896_v56 = vld [vmem:[%s8653_s1 + $0x268] sm:$0xff] }
  0x80   : > { %3225 = vmatpush.bf16.msra.mxu1 %v6896_v56  ;;  %v6895_v56 = vld [vmem:[%s8653_s1 + $0x260] sm:$0xff] }
  0x84   : > { %3226 = vmatpush.bf16.msra.mxu1 %v6895_v56  ;;  %v6894_v56 = vld [vmem:[%s8653_s1 + $0x258] sm:$0xff] }
  0x86   : > { %959 = vmatmul.bf16.gmra.mxu0 %v4935_v24  ;;  %v5016_v24 = vld [vmem:[%s7573_s4 + $0x110] sm:$0xf0] }
  0x87   : > { %1048 = vmatmul.bf16.gmra.mxu1 %v4939_v25  ;;  %v5022_v25 = vld [vmem:[%s7573_s4 + $0x108] sm:$0xf]  ;;  %v5019_v30 = vor.u32 %v6657_v23, %v5016_v24 }
  0x88   : > { %1137 = vmatmul.bf16.gmra.mxu2 %v4943_v26  ;;  %v6660_v26 = vld [vmem:[%s7573_s4 + $0x114] sm:$0xf0]  ;;  %3227 = vmatpush.bf16.msra.mxu1 %v6894_v56  ;;  %v6893_v56 = vld [vmem:[%s8653_s1 + $0x250] sm:$0xff] }
  0x89   : > { %1226 = vmatmul.bf16.gmra.mxu3 %v4947_v27  ;;  %v6658_v27 = vld [vmem:[%s7573_s4 + $0x10c] sm:$0xf]  ;;  %v5023_v33 = vor.u32 %v6660_v26, %v5022_v25  ;;  %v5047_v25 = vor.u32 %v6667_v14, %v5046_v13  ;;  %v5078_v13 = vld [vmem:[%s7573_s4 + $0x180] sm:$0xf]  ;;  %v6675_v14 = vld [vmem:[%s7573_s4 + $0x18c] sm:$0xf0] }
  0x8a   : > { %v5027_v34 = vor.u32 %v6658_v27, %v5024_v28 }
  0x8c   : > { %3228 = vmatpush.bf16.msra.mxu1 %v6893_v56  ;;  %v6892_v56 = vld [vmem:[%s8653_s1 + $0x248] sm:$0xff] }
  0x90   : > { %3229 = vmatpush.bf16.msra.mxu1 %v6892_v56  ;;  %v6891_v56 = vld [vmem:[%s8653_s1 + $0x240] sm:$0xff] }
  0x94   : > { %3230 = vmatpush.bf16.msra.mxu1 %v6891_v56  ;;  %v6995_v56 = vld [vmem:[%s8653_s1 + $0x378] sm:$0xff] }
  0x96   : > { %964 = vmatmul.bf16.gmra.mxu0 %v4951_v36  ;;  %v6804_v36 = vld [vmem:[%s8653_s1 + $0x190] sm:$0xff] }
  0x97   : > { %1053 = vmatmul.bf16.gmra.mxu1 %v4955_v37  ;;  %v6812_v37 = vld [vmem:[%s8653_s1 + $0x1d0] sm:$0xff]  ;;  %2218 = vmatpush.bf16.msrb.mxu2 %v6804_v36  ;;  %v6803_v36 = vld [vmem:[%s8653_s1 + $0x188] sm:$0xff] }
  0x98   : > { %1142 = vmatmul.bf16.gmra.mxu2 %v4959_v38  ;;  %2307 = vmatpush.bf16.msrb.mxu3 %v6812_v37  ;;  %v6811_v37 = vld [vmem:[%s8653_s1 + $0x1c8] sm:$0xff] }
  0x99   : > { %1231 = vmatmul.bf16.gmra.mxu3 %v4963_v39 }
  0x9b   : > { %2219 = vmatpush.bf16.msrb.mxu2 %v6803_v36  ;;  %v6802_v36 = vld [vmem:[%s8653_s1 + $0x180] sm:$0xff] }
  0x9c   : > { %2308 = vmatpush.bf16.msrb.mxu3 %v6811_v37  ;;  %v6810_v37 = vld [vmem:[%s8653_s1 + $0x1c0] sm:$0xff] }
  0x9f   : > { %2220 = vmatpush.bf16.msrb.mxu2 %v6802_v36  ;;  %v6906_v36 = vld [vmem:[%s8653_s1 + $0x2b8] sm:$0xff] }
  0xa0   : > { %2309 = vmatpush.bf16.msrb.mxu3 %v6810_v37  ;;  %v6914_v37 = vld [vmem:[%s8653_s1 + $0x2f8] sm:$0xff] }
  0xa3   : > { %3312 = vmatpush.bf16.msra.mxu2 %v6906_v36  ;;  %v6905_v36 = vld [vmem:[%s8653_s1 + $0x2b0] sm:$0xff] }
  0xa4   : > { %3401 = vmatpush.bf16.msra.mxu3 %v6914_v37  ;;  %v6913_v37 = vld [vmem:[%s8653_s1 + $0x2f0] sm:$0xff] }
  0xa6   : > { %969 = vmatmul.bf16.gmra.mxu0 %v4967_v52  ;;  %v6662_v52 = vld [vmem:[%s7573_s4 + $0x12c] sm:$0xf] }
  0xa7   : > { %1058 = vmatmul.bf16.gmra.mxu1 %v4971_v53  ;;  %v5040_v53 = vld [vmem:[%s7573_s4 + $0x138] sm:$0xf0]  ;;  %3313 = vmatpush.bf16.msra.mxu2 %v6905_v36  ;;  %v6904_v36 = vld [vmem:[%s8653_s1 + $0x2a8] sm:$0xff] }
  0xa8   : > { %1147 = vmatmul.bf16.gmra.mxu2 %v4975_v54  ;;  %3402 = vmatpush.bf16.msra.mxu3 %v6913_v37  ;;  %v6912_v37 = vld [vmem:[%s8653_s1 + $0x2e8] sm:$0xff] }
  0xa9   : > { %1236 = vmatmul.bf16.gmra.mxu3 %v4979_v55  ;;  %v6788_v55 = vld [vmem:[%s8653_s1 + $0x110] sm:$0xff] }
  0xaa   : > { %2040 = vmatpush.bf16.msrb.mxu0 %v6788_v55  ;;  %v6787_v55 = vld [vmem:[%s8653_s1 + $0x108] sm:$0xff] }
  0xab   : > { %3314 = vmatpush.bf16.msra.mxu2 %v6904_v36  ;;  %v6903_v36 = vld [vmem:[%s8653_s1 + $0x2a0] sm:$0xff] }
  0xac   : > { %3403 = vmatpush.bf16.msra.mxu3 %v6912_v37  ;;  %v6911_v37 = vld [vmem:[%s8653_s1 + $0x2e0] sm:$0xff] }
  0xae   : > { %2041 = vmatpush.bf16.msrb.mxu0 %v6787_v55  ;;  %v6786_v55 = vld [vmem:[%s8653_s1 + $0x100] sm:$0xff] }
  0xaf   : > { %3315 = vmatpush.bf16.msra.mxu2 %v6903_v36  ;;  %v6902_v36 = vld [vmem:[%s8653_s1 + $0x298] sm:$0xff] }
  0xb0   : > { %3404 = vmatpush.bf16.msra.mxu3 %v6911_v37  ;;  %v6910_v37 = vld [vmem:[%s8653_s1 + $0x2d8] sm:$0xff] }
  0xb2   : > { %2042 = vmatpush.bf16.msrb.mxu0 %v6786_v55  ;;  %v6890_v55 = vld [vmem:[%s8653_s1 + $0x238] sm:$0xff] }
  0xb3   : > { %3316 = vmatpush.bf16.msra.mxu2 %v6902_v36  ;;  %v6901_v36 = vld [vmem:[%s8653_s1 + $0x290] sm:$0xff] }
  0xb4   : > { %3405 = vmatpush.bf16.msra.mxu3 %v6910_v37  ;;  %v6909_v37 = vld [vmem:[%s8653_s1 + $0x2d0] sm:$0xff] }
  0xb6   : > { %974 = vmatmul.bf16.gmra.mxu0 %v4983_v0  ;;  %v5039_v0 = vor.u32 %v6664_v51, %v5038_v50  ;;  %v5070_v50 = vld [vmem:[%s7573_s4 + $0x168] sm:$0xf]  ;;  %v6672_v51 = vld [vmem:[%s7573_s4 + $0x174] sm:$0xf0] }
  0xb7   : > { %1063 = vmatmul.bf16.gmra.mxu1 %v4987_v1  ;;  %v5043_v1 = vor.u32 %v6662_v52, %v5040_v53  ;;  %v6670_v52 = vld [vmem:[%s7573_s4 + $0x16c] sm:$0xf]  ;;  %v5072_v53 = vld [vmem:[%s7573_s4 + $0x178] sm:$0xf0]  ;;  %3134 = vmatpush.bf16.msra.mxu0 %v6890_v55  ;;  %v6889_v55 = vld [vmem:[%s8653_s1 + $0x230] sm:$0xff] }
  0xb8   : > { %1152 = vmatmul.bf16.gmra.mxu2 %v4991_v2  ;;  %v329_v2 = vld [vmem:[#allocation2 + $0x8] sm:$0xff]  ;;  %3406 = vmatpush.bf16.msra.mxu3 %v6909_v37 }
  0xb9   : > { %1241 = vmatmul.bf16.gmra.mxu3 %v4995_v3  ;;  %3317 = vmatpush.bf16.msra.mxu2 %v6901_v36  ;;  %v6900_v36 = vld [vmem:[%s8653_s1 + $0x288] sm:$0xff] }
  0xba   : > { %v6908_v37 = vld [vmem:[%s8653_s1 + $0x2c8] sm:$0xff] }
  0xbb   : > { %3135 = vmatpush.bf16.msra.mxu0 %v6889_v55  ;;  %v6888_v55 = vld [vmem:[%s8653_s1 + $0x228] sm:$0xff] }
  0xbc   : > { %3407 = vmatpush.bf16.msra.mxu3 %v6908_v37  ;;  %v6907_v37 = vld [vmem:[%s8653_s1 + $0x2c0] sm:$0xff] }
  0xbd   : > { %3318 = vmatpush.bf16.msra.mxu2 %v6900_v36  ;;  %v6899_v36 = vld [vmem:[%s8653_s1 + $0x280] sm:$0xff] }
  0xbf   : > { %3136 = vmatpush.bf16.msra.mxu0 %v6888_v55  ;;  %v6887_v55 = vld [vmem:[%s8653_s1 + $0x220] sm:$0xff] }
  0xc0   : > { %3408 = vmatpush.bf16.msra.mxu3 %v6907_v37  ;;  %v7011_v37 = vld [vmem:[%s8653_s1 + $0x3f8] sm:$0xff] }
  0xc1   : > { %3319 = vmatpush.bf16.msra.mxu2 %v6899_v36  ;;  %v7003_v36 = vld [vmem:[%s8653_s1 + $0x3b8] sm:$0xff] }
  0xc3   : > { %3137 = vmatpush.bf16.msra.mxu0 %v6887_v55  ;;  %v6886_v55 = vld [vmem:[%s8653_s1 + $0x218] sm:$0xff] }
  0xc6   : > { %979 = vmatmul.bf16.gmra.mxu0 %v4999_v17  ;;  %v5048_v17 = vld [vmem:[%s7573_s4 + $0x150] sm:$0xf0] }
  0xc7   : > { %1068 = vmatmul.bf16.gmra.mxu1 %v5003_v18  ;;  %v5054_v18 = vld [vmem:[%s7573_s4 + $0x148] sm:$0xf]  ;;  %v5051_v26 = vor.u32 %v6665_v16, %v5048_v17  ;;  %v6673_v16 = vld [vmem:[%s7573_s4 + $0x184] sm:$0xf]  ;;  %v5080_v17 = vld [vmem:[%s7573_s4 + $0x190] sm:$0xf0]  ;;  %3138 = vmatpush.bf16.msra.mxu0 %v6886_v55 }
  0xc8   : > { %1157 = vmatmul.bf16.gmra.mxu2 %v5007_v19  ;;  %v6668_v19 = vld [vmem:[%s7573_s4 + $0x154] sm:$0xf0]  ;;  %v6885_v55 = vld [vmem:[%s8653_s1 + $0x210] sm:$0xff] }
  0xc9   : > { %1246 = vmatmul.bf16.gmra.mxu3 %v5011_v20  ;;  %v6666_v20 = vld [vmem:[%s7573_s4 + $0x14c] sm:$0xf] }
  0xcb   : > { %3139 = vmatpush.bf16.msra.mxu0 %v6885_v55  ;;  %v6884_v55 = vld [vmem:[%s8653_s1 + $0x208] sm:$0xff] }
  0xcf   : > { %3140 = vmatpush.bf16.msra.mxu0 %v6884_v55  ;;  %v6883_v55 = vld [vmem:[%s8653_s1 + $0x200] sm:$0xff] }
  0xd3   : > { %v945_v31 = vpop.f32.mrf.mxu0  ;;  %3141 = vmatpush.bf16.msra.mxu0 %v6883_v55  ;;  %v6987_v55 = vld [vmem:[%s8653_s1 + $0x338] sm:$0xff] }
  0xd4   : > { %v1034_v32 = vpop.f32.mrf.mxu1 }
  0xd5   : > { %v1035_v35 = vadd.f32 %v1034_v32, %v945_v31  ;;  %v5059_v31 = vor.u32 %v6666_v20, %v5056_v21  ;;  %v331_v32 = vld [vmem:[#allocation2 + $0x18] sm:$0xff]  ;;  %v6674_v20 = vld [vmem:[%s7573_s4 + $0x18c] sm:$0xf] }
  0xd6   : > { %984 = vmatmul.bf16.gmra.mxu0 %v5015_v29  ;;  %v5088_v21 = vld [vmem:[%s7573_s4 + $0x198] sm:$0xf0] }
  0xd7   : > { %1073 = vmatmul.bf16.gmra.mxu1 %v5019_v30  ;;  %v5055_v30 = vor.u32 %v6668_v19, %v5054_v18  ;;  %v5086_v18 = vld [vmem:[%s7573_s4 + $0x188] sm:$0xf]  ;;  %v6676_v19 = vld [vmem:[%s7573_s4 + $0x194] sm:$0xf0] }
  0xd8   : > { %1162 = vmatmul.bf16.gmra.mxu2 %v5023_v33 }
  0xd9   : > { %1251 = vmatmul.bf16.gmra.mxu3 %v5027_v34 }
  0xdb   : > { %v1123_v38 = vpop.f32.mrf.mxu2  ;;  %v947_v41 = vpop.f32.mrf.mxu0 }
  0xdc   : > { %v1212_v39 = vpop.f32.mrf.mxu3  ;;  %v1124_v40 = vadd.f32 %v1123_v38, %v1035_v35  ;;  %v1036_v42 = vpop.f32.mrf.mxu1 }
  0xdd   : > { %v1037_v54 = vadd.f32 %v1036_v42, %v947_v41 }
  0xde   : > { %v1213_v44 = vadd.f32 %v1212_v39, %v1124_v40 }
  0xe0   : > { %v1292_v47 = vadd.f32 %v1213_v44, %v328_v43  ;;  %v332_v43 = vld [vmem:[#allocation2 + $0x20] sm:$0xff] }
  0xe2   : > { %1324 = vst.msk [vmem:[#allocation2] sm:$0xff] %vm225_vm0, %v1292_v47 }
  0xe3   : > { %v1125_v57 = vpop.f32.mrf.mxu2  ;;  %v950_v62 = vpop.f32.mrf.mxu0 }
  0xe4   : > { %v1214_v58 = vpop.f32.mrf.mxu3  ;;  %v1126_v61 = vadd.f32 %v1125_v57, %v1037_v54  ;;  %v1039_v63 = vpop.f32.mrf.mxu1 }
  0xe5   : > { %v1040_v5 = vadd.f32 %v1039_v63, %v950_v62 }
  0xe6   : > { %v1215_v3 = vadd.f32 %v1214_v58, %v1126_v61  ;;  %989 = vmatmul.bf16.gmra.mxu0 %v5031_v59  ;;  %v5063_v59 = vor.u32 %v6671_v46, %v5062_v45  ;;  %v5094_v45 = vld [vmem:[%s7573_s4 + $0x1a0] sm:$0xf]  ;;  %v6679_v46 = vld [vmem:[%s7573_s4 + $0x1ac] sm:$0xf0] }
  0xe7   : > { %1078 = vmatmul.bf16.gmra.mxu1 %v5035_v60  ;;  %v5067_v60 = vor.u32 %v6669_v48, %v5064_v49  ;;  %v6677_v48 = vld [vmem:[%s7573_s4 + $0x1a4] sm:$0xf]  ;;  %v5096_v49 = vld [vmem:[%s7573_s4 + $0x1b0] sm:$0xf0] }
  0xe8   : > { %v1293_v4 = vadd.f32 %v1215_v3, %v329_v2  ;;  %1167 = vmatmul.bf16.gmra.mxu2 %v5039_v0  ;;  %v5071_v0 = vor.u32 %v6672_v51, %v5070_v50  ;;  %v333_v2 = vld [vmem:[#allocation2 + $0x28] sm:$0xff]  ;;  %v6680_v51 = vld [vmem:[%s7573_s4 + $0x1b4] sm:$0xf0] }
  0xe9   : > { %1256 = vmatmul.bf16.gmra.mxu3 %v5043_v1  ;;  %v5075_v1 = vor.u32 %v6670_v52, %v5072_v53  ;;  %v5102_v50 = vld [vmem:[%s7573_s4 + $0x1a8] sm:$0xf]  ;;  %v6678_v52 = vld [vmem:[%s7573_s4 + $0x1ac] sm:$0xf]  ;;  %v5104_v53 = vld [vmem:[%s7573_s4 + $0x1b8] sm:$0xf0] }
  0xea   : > { %1325 = vst.msk [vmem:[#allocation2 + $0x8] sm:$0xff] %vm225_vm0, %v1293_v4 }
  0xeb   : > { %v1128_v6 = vpop.f32.mrf.mxu2  ;;  %v952_v9 = vpop.f32.mrf.mxu0 }
  0xec   : > { %v1217_v7 = vpop.f32.mrf.mxu3  ;;  %v1129_v8 = vadd.f32 %v1128_v6, %v1040_v5  ;;  %v1041_v10 = vpop.f32.mrf.mxu1 }
  0xed   : > { %v1042_v22 = vadd.f32 %v1041_v10, %v952_v9 }
  0xee   : > { %v1218_v12 = vadd.f32 %v1217_v7, %v1129_v8 }
  0xf0   : > { %v1294_v15 = vadd.f32 %v1218_v12, %v330_v11  ;;  %v334_v11 = vld [vmem:[#allocation2 + $0x30] sm:$0xff] }
  0xf2   : > { %1326 = vst.msk [vmem:[#allocation2 + $0x10] sm:$0xff] %vm225_vm0, %v1294_v15 }
  0xf3   : > { %v1130_v23 = vpop.f32.mrf.mxu2  ;;  %v955_v28 = vpop.f32.mrf.mxu0 }
  0xf4   : > { %v1219_v24 = vpop.f32.mrf.mxu3  ;;  %v1131_v27 = vadd.f32 %v1130_v23, %v1042_v22  ;;  %v1044_v29 = vpop.f32.mrf.mxu1 }
  0xf5   : > { %v1045_v35 = vadd.f32 %v1044_v29, %v955_v28 }
  0xf6   : > { %v1220_v33 = vadd.f32 %v1219_v24, %v1131_v27  ;;  %994 = vmatmul.bf16.gmra.mxu0 %v5047_v25  ;;  %v5079_v25 = vor.u32 %v6675_v14, %v5078_v13  ;;  %v5110_v13 = vld [vmem:[%s7573_s4 + $0x1c0] sm:$0xf]  ;;  %v6683_v14 = vld [vmem:[%s7573_s4 + $0x1cc] sm:$0xf0] }
  0xf7   : > { %1083 = vmatmul.bf16.gmra.mxu1 %v5051_v26  ;;  %v5083_v26 = vor.u32 %v6673_v16, %v5080_v17  ;;  %v6681_v16 = vld [vmem:[%s7573_s4 + $0x1c4] sm:$0xf]  ;;  %v5112_v17 = vld [vmem:[%s7573_s4 + $0x1d0] sm:$0xf0] }
  0xf8   : > { %v1295_v34 = vadd.f32 %v1220_v33, %v331_v32  ;;  %1172 = vmatmul.bf16.gmra.mxu2 %v5055_v30  ;;  %v5087_v30 = vor.u32 %v6676_v19, %v5086_v18  ;;  %v335_v32 = vld [vmem:[#allocation2 + $0x38] sm:$0xff]  ;;  %v5118_v18 = vld [vmem:[%s7573_s4 + $0x1c8] sm:$0xf] }
  0xf9   : > { %1261 = vmatmul.bf16.gmra.mxu3 %v5059_v31  ;;  %v5091_v31 = vor.u32 %v6674_v20, %v5088_v21  ;;  %v6684_v19 = vld [vmem:[%s7573_s4 + $0x1d4] sm:$0xf0]  ;;  %v6682_v20 = vld [vmem:[%s7573_s4 + $0x1cc] sm:$0xf]  ;;  %v5120_v21 = vld [vmem:[%s7573_s4 + $0x1d8] sm:$0xf0] }
  0xfa   : > { %1327 = vst.msk [vmem:[#allocation2 + $0x18] sm:$0xff] %vm225_vm0, %v1295_v34 }
  0xfb   : > { %v1133_v38 = vpop.f32.mrf.mxu2  ;;  %v957_v41 = vpop.f32.mrf.mxu0 }
  0xfc   : > { %v1222_v39 = vpop.f32.mrf.mxu3  ;;  %v1134_v40 = vadd.f32 %v1133_v38, %v1045_v35  ;;  %v1046_v42 = vpop.f32.mrf.mxu1 }
  0xfd   : > { %v1047_v54 = vadd.f32 %v1046_v42, %v957_v41 }
  0xfe   : > { %v1223_v44 = vadd.f32 %v1222_v39, %v1134_v40 }
 0x100   : > { %v1296_v47 = vadd.f32 %v1223_v44, %v332_v43  ;;  %v336_v43 = vld [vmem:[#allocation2 + $0x40] sm:$0xff] }
 0x102   : > { %1328 = vst.msk [vmem:[#allocation2 + $0x20] sm:$0xff] %vm225_vm0, %v1296_v47 }
 0x103   : > { %v1135_v57 = vpop.f32.mrf.mxu2  ;;  %v960_v62 = vpop.f32.mrf.mxu0 }
 0x104   : > { %v1224_v58 = vpop.f32.mrf.mxu3  ;;  %v1136_v61 = vadd.f32 %v1135_v57, %v1047_v54  ;;  %v1049_v63 = vpop.f32.mrf.mxu1 }
 0x105   : > { %v1050_v5 = vadd.f32 %v1049_v63, %v960_v62 }
 0x106   : > { %v1225_v3 = vadd.f32 %v1224_v58, %v1136_v61  ;;  %999 = vmatmul.bf16.gmra.mxu0 %v5063_v59  ;;  %v5095_v59 = vor.u32 %v6679_v46, %v5094_v45  ;;  %v5126_v45 = vld [vmem:[%s7573_s4 + $0x1e0] sm:$0xf]  ;;  %v6687_v46 = vld [vmem:[%s7573_s4 + $0x1ec] sm:$0xf0] }
 0x107   : > { %1088 = vmatmul.bf16.gmra.mxu1 %v5067_v60  ;;  %v5099_v60 = vor.u32 %v6677_v48, %v5096_v49  ;;  %v6685_v48 = vld [vmem:[%s7573_s4 + $0x1e4] sm:$0xf]  ;;  %v5128_v49 = vld [vmem:[%s7573_s4 + $0x1f0] sm:$0xf0] }
 0x108   : > { %v1297_v4 = vadd.f32 %v1225_v3, %v333_v2  ;;  %1177 = vmatmul.bf16.gmra.mxu2 %v5071_v0  ;;  %v5103_v0 = vor.u32 %v6680_v51, %v5102_v50  ;;  %v337_v2 = vld [vmem:[#allocation2 + $0x48] sm:$0xff]  ;;  %v6688_v51 = vld [vmem:[%s7573_s4 + $0x1f4] sm:$0xf0] }
 0x109   : > { %1266 = vmatmul.bf16.gmra.mxu3 %v5075_v1  ;;  %v5107_v1 = vor.u32 %v6678_v52, %v5104_v53  ;;  %v5134_v50 = vld [vmem:[%s7573_s4 + $0x1e8] sm:$0xf]  ;;  %v6686_v52 = vld [vmem:[%s7573_s4 + $0x1ec] sm:$0xf]  ;;  %v5136_v53 = vld [vmem:[%s7573_s4 + $0x1f8] sm:$0xf0] }
 0x10a   : > { %1329 = vst.msk [vmem:[#allocation2 + $0x28] sm:$0xff] %vm225_vm0, %v1297_v4  ;;  %s1357_s4 = sshra.s32 %s1356_s24, 3 }
 0x10b   : > { %v1138_v6 = vpop.f32.mrf.mxu2  ;;  %v962_v9 = vpop.f32.mrf.mxu0  ;;  %s6721_s26 = sshll.u32 %s1357_s4, 4 }
 0x10c   : > { %v1227_v7 = vpop.f32.mrf.mxu3  ;;  %v1139_v8 = vadd.f32 %v1138_v6, %v1050_v5  ;;  %v1051_v10 = vpop.f32.mrf.mxu1  ;;  %s7911_s28 = scalar_lea.vmem %s7480_s27, %s6721_s26 [#allocation3]  ;;  %s6619_s26 = sshll.u32 %s7301_s18, 1 }
 0x10d   : > { %v1052_v22 = vadd.f32 %v1051_v10, %v962_v9 }
 0x10e   : > { %v1228_v12 = vadd.f32 %v1227_v7, %v1139_v8 }
 0x110   : > { %v1298_v15 = vadd.f32 %v1228_v12, %v334_v11  ;;  %v338_v11 = vld [vmem:[#allocation2 + $0x50] sm:$0xff] }
 0x112   : > { %1330 = vst.msk [vmem:[#allocation2 + $0x30] sm:$0xff] %vm225_vm0, %v1298_v15 }
 0x113   : > { %v1140_v23 = vpop.f32.mrf.mxu2  ;;  %v965_v28 = vpop.f32.mrf.mxu0 }
 0x114   : > { %v1229_v24 = vpop.f32.mrf.mxu3  ;;  %v1141_v27 = vadd.f32 %v1140_v23, %v1052_v22  ;;  %v1054_v29 = vpop.f32.mrf.mxu1 }
 0x115   : > { %v1055_v35 = vadd.f32 %v1054_v29, %v965_v28 }
 0x116   : > { %v1230_v33 = vadd.f32 %v1229_v24, %v1141_v27  ;;  %1004 = vmatmul.bf16.gmra.mxu0 %v5079_v25  ;;  %v5111_v25 = vor.u32 %v6683_v14, %v5110_v13  ;;  %v5336_v13 = vld [vmem:[%s7911_s28] sm:$0xf]  ;;  %v6724_v14 = vld [vmem:[%s7911_s28 + $0xc] sm:$0xf0] }
 0x117   : > { %1093 = vmatmul.bf16.gmra.mxu1 %v5083_v26  ;;  %v5115_v26 = vor.u32 %v6681_v16, %v5112_v17  ;;  %v6722_v16 = vld [vmem:[%s7911_s28 + $0x4] sm:$0xf]  ;;  %v5338_v17 = vld [vmem:[%s7911_s28 + $0x10] sm:$0xf0] }
 0x118   : > { %v1299_v34 = vadd.f32 %v1230_v33, %v335_v32  ;;  %1182 = vmatmul.bf16.gmra.mxu2 %v5087_v30  ;;  %v5119_v30 = vor.u32 %v6684_v19, %v5118_v18  ;;  %v339_v32 = vld [vmem:[#allocation2 + $0x58] sm:$0xff]  ;;  %v5344_v18 = vld [vmem:[%s7911_s28 + $0x8] sm:$0xf] }
 0x119   : > { %1271 = vmatmul.bf16.gmra.mxu3 %v5091_v31  ;;  %v5123_v31 = vor.u32 %v6682_v20, %v5120_v21  ;;  %v6725_v19 = vld [vmem:[%s7911_s28 + $0x14] sm:$0xf0]  ;;  %v6723_v20 = vld [vmem:[%s7911_s28 + $0xc] sm:$0xf]  ;;  %v5346_v21 = vld [vmem:[%s7911_s28 + $0x18] sm:$0xf0] }
 0x11a   : > { %1331 = vst.msk [vmem:[#allocation2 + $0x38] sm:$0xff] %vm225_vm0, %v1299_v34 }
 0x11b   : > { %v1143_v38 = vpop.f32.mrf.mxu2  ;;  %v967_v41 = vpop.f32.mrf.mxu0 }
 0x11c   : > { %v1232_v39 = vpop.f32.mrf.mxu3  ;;  %v1144_v40 = vadd.f32 %v1143_v38, %v1055_v35  ;;  %v1056_v42 = vpop.f32.mrf.mxu1 }
 0x11d   : > { %v1057_v54 = vadd.f32 %v1056_v42, %v967_v41 }
 0x11e   : > { %v1233_v44 = vadd.f32 %v1232_v39, %v1144_v40 }
 0x120   : > { %v1300_v47 = vadd.f32 %v1233_v44, %v336_v43  ;;  %v340_v43 = vld [vmem:[#allocation2 + $0x60] sm:$0xff] }
 0x122   : > { %1332 = vst.msk [vmem:[#allocation2 + $0x40] sm:$0xff] %vm225_vm0, %v1300_v47 }
 0x123   : > { %v1145_v57 = vpop.f32.mrf.mxu2  ;;  %v970_v62 = vpop.f32.mrf.mxu0 }
 0x124   : > { %v1234_v58 = vpop.f32.mrf.mxu3  ;;  %v1146_v61 = vadd.f32 %v1145_v57, %v1057_v54  ;;  %v1059_v63 = vpop.f32.mrf.mxu1 }
 0x125   : > { %v1060_v5 = vadd.f32 %v1059_v63, %v970_v62 }
 0x126   : > { %v1235_v3 = vadd.f32 %v1234_v58, %v1146_v61  ;;  %1009 = vmatmul.bf16.gmra.mxu0 %v5095_v59  ;;  %v5127_v59 = vor.u32 %v6687_v46, %v5126_v45  ;;  %v5352_v45 = vld [vmem:[%s7911_s28 + $0x20] sm:$0xf]  ;;  %v6728_v46 = vld [vmem:[%s7911_s28 + $0x2c] sm:$0xf0] }
 0x127   : > { %1098 = vmatmul.bf16.gmra.mxu1 %v5099_v60  ;;  %v5131_v60 = vor.u32 %v6685_v48, %v5128_v49  ;;  %v6726_v48 = vld [vmem:[%s7911_s28 + $0x24] sm:$0xf]  ;;  %v5354_v49 = vld [vmem:[%s7911_s28 + $0x30] sm:$0xf0] }
 0x128   : > { %v1301_v4 = vadd.f32 %v1235_v3, %v337_v2  ;;  %1187 = vmatmul.bf16.gmra.mxu2 %v5103_v0  ;;  %v5135_v0 = vor.u32 %v6688_v51, %v5134_v50  ;;  %v341_v2 = vld [vmem:[#allocation2 + $0x68] sm:$0xff]  ;;  %v6729_v51 = vld [vmem:[%s7911_s28 + $0x34] sm:$0xf0] }
 0x129   : > { %1276 = vmatmul.bf16.gmra.mxu3 %v5107_v1  ;;  %v5139_v1 = vor.u32 %v6686_v52, %v5136_v53  ;;  %v5360_v50 = vld [vmem:[%s7911_s28 + $0x28] sm:$0xf]  ;;  %v6727_v52 = vld [vmem:[%s7911_s28 + $0x2c] sm:$0xf]  ;;  %v5362_v53 = vld [vmem:[%s7911_s28 + $0x38] sm:$0xf0] }
 0x12a   : > { %1333 = vst.msk [vmem:[#allocation2 + $0x48] sm:$0xff] %vm225_vm0, %v1301_v4 }
 0x12b   : > { %v1148_v6 = vpop.f32.mrf.mxu2  ;;  %v972_v9 = vpop.f32.mrf.mxu0 }
 0x12c   : > { %v1237_v7 = vpop.f32.mrf.mxu3  ;;  %v1149_v8 = vadd.f32 %v1148_v6, %v1060_v5  ;;  %v1061_v10 = vpop.f32.mrf.mxu1 }
 0x12d   : > { %v1062_v22 = vadd.f32 %v1061_v10, %v972_v9 }
 0x12e   : > { %v1238_v12 = vadd.f32 %v1237_v7, %v1149_v8 }
 0x130   : > { %v1302_v15 = vadd.f32 %v1238_v12, %v338_v11  ;;  %v342_v11 = vld [vmem:[#allocation2 + $0x70] sm:$0xff] }
 0x132   : > { %1334 = vst.msk [vmem:[#allocation2 + $0x50] sm:$0xff] %vm225_vm0, %v1302_v15 }
 0x133   : > { %v1150_v23 = vpop.f32.mrf.mxu2  ;;  %v975_v28 = vpop.f32.mrf.mxu0 }
 0x134   : > { %v1239_v24 = vpop.f32.mrf.mxu3  ;;  %v1151_v27 = vadd.f32 %v1150_v23, %v1062_v22  ;;  %v1064_v29 = vpop.f32.mrf.mxu1 }
 0x135   : > { %v1065_v35 = vadd.f32 %v1064_v29, %v975_v28 }
 0x136   : > { %v1240_v33 = vadd.f32 %v1239_v24, %v1151_v27  ;;  %1014 = vmatmul.bf16.gmra.mxu0 %v5111_v25  ;;  %v5337_v25 = vor.u32 %v6724_v14, %v5336_v13  ;;  %v5368_v13 = vld [vmem:[%s7911_s28 + $0x40] sm:$0xf]  ;;  %v6732_v14 = vld [vmem:[%s7911_s28 + $0x4c] sm:$0xf0] }
 0x137   : > { %1103 = vmatmul.bf16.gmra.mxu1 %v5115_v26  ;;  %v5341_v26 = vor.u32 %v6722_v16, %v5338_v17  ;;  %v6730_v16 = vld [vmem:[%s7911_s28 + $0x44] sm:$0xf]  ;;  %v5370_v17 = vld [vmem:[%s7911_s28 + $0x50] sm:$0xf0] }
 0x138   : > { %v1303_v34 = vadd.f32 %v1240_v33, %v339_v32  ;;  %1192 = vmatmul.bf16.gmra.mxu2 %v5119_v30  ;;  %v5345_v30 = vor.u32 %v6725_v19, %v5344_v18  ;;  %v343_v32 = vld [vmem:[#allocation2 + $0x78] sm:$0xff]  ;;  %v5376_v18 = vld [vmem:[%s7911_s28 + $0x48] sm:$0xf] }
 0x139   : > { %1281 = vmatmul.bf16.gmra.mxu3 %v5123_v31  ;;  %v5349_v31 = vor.u32 %v6723_v20, %v5346_v21  ;;  %v6733_v19 = vld [vmem:[%s7911_s28 + $0x54] sm:$0xf0]  ;;  %v6731_v20 = vld [vmem:[%s7911_s28 + $0x4c] sm:$0xf]  ;;  %v5378_v21 = vld [vmem:[%s7911_s28 + $0x58] sm:$0xf0] }
 0x13a   : > { %1335 = vst.msk [vmem:[#allocation2 + $0x58] sm:$0xff] %vm225_vm0, %v1303_v34 }
 0x13b   : > { %v1153_v38 = vpop.f32.mrf.mxu2  ;;  %v977_v41 = vpop.f32.mrf.mxu0 }
 0x13c   : > { %v1242_v39 = vpop.f32.mrf.mxu3  ;;  %v1154_v40 = vadd.f32 %v1153_v38, %v1065_v35  ;;  %v1066_v42 = vpop.f32.mrf.mxu1 }
 0x13d   : > { %v1067_v54 = vadd.f32 %v1066_v42, %v977_v41 }
 0x13e   : > { %v1243_v44 = vadd.f32 %v1242_v39, %v1154_v40 }
 0x140   : > { %v1304_v47 = vadd.f32 %v1243_v44, %v340_v43  ;;  %v344_v43 = vld [vmem:[#allocation2 + $0x80] sm:$0xff] }
 0x142   : > { %1336 = vst.msk [vmem:[#allocation2 + $0x60] sm:$0xff] %vm225_vm0, %v1304_v47 }
 0x143   : > { %v1155_v57 = vpop.f32.mrf.mxu2  ;;  %v980_v62 = vpop.f32.mrf.mxu0 }
 0x144   : > { %v1244_v58 = vpop.f32.mrf.mxu3  ;;  %v1156_v61 = vadd.f32 %v1155_v57, %v1067_v54  ;;  %v1069_v63 = vpop.f32.mrf.mxu1 }
 0x145   : > { %v1070_v5 = vadd.f32 %v1069_v63, %v980_v62 }
 0x146   : > { %v1245_v3 = vadd.f32 %v1244_v58, %v1156_v61  ;;  %1019 = vmatmul.bf16.gmra.mxu0 %v5127_v59  ;;  %v5353_v59 = vor.u32 %v6728_v46, %v5352_v45  ;;  %v5384_v45 = vld [vmem:[%s7911_s28 + $0x60] sm:$0xf]  ;;  %v6736_v46 = vld [vmem:[%s7911_s28 + $0x6c] sm:$0xf0] }
 0x147   : > { %1108 = vmatmul.bf16.gmra.mxu1 %v5131_v60  ;;  %v5357_v60 = vor.u32 %v6726_v48, %v5354_v49  ;;  %v6734_v48 = vld [vmem:[%s7911_s28 + $0x64] sm:$0xf]  ;;  %v5386_v49 = vld [vmem:[%s7911_s28 + $0x70] sm:$0xf0] }
 0x148   : > { %v1305_v4 = vadd.f32 %v1245_v3, %v341_v2  ;;  %1197 = vmatmul.bf16.gmra.mxu2 %v5135_v0  ;;  %v5361_v0 = vor.u32 %v6729_v51, %v5360_v50  ;;  %v345_v2 = vld [vmem:[#allocation2 + $0x88] sm:$0xff]  ;;  %v6737_v51 = vld [vmem:[%s7911_s28 + $0x74] sm:$0xf0] }
 0x149   : > { %1286 = vmatmul.bf16.gmra.mxu3 %v5139_v1  ;;  %v5365_v1 = vor.u32 %v6727_v52, %v5362_v53  ;;  %v5392_v50 = vld [vmem:[%s7911_s28 + $0x68] sm:$0xf]  ;;  %v6735_v52 = vld [vmem:[%s7911_s28 + $0x6c] sm:$0xf]  ;;  %v5394_v53 = vld [vmem:[%s7911_s28 + $0x78] sm:$0xf0] }
 0x14a   : > { %1337 = vst.msk [vmem:[#allocation2 + $0x68] sm:$0xff] %vm225_vm0, %v1305_v4 }
 0x14b   : > { %v1158_v6 = vpop.f32.mrf.mxu2  ;;  %v982_v9 = vpop.f32.mrf.mxu0 }
 0x14c   : > { %v1247_v7 = vpop.f32.mrf.mxu3  ;;  %v1159_v8 = vadd.f32 %v1158_v6, %v1070_v5  ;;  %v1071_v10 = vpop.f32.mrf.mxu1 }
 0x14d   : > { %v1072_v22 = vadd.f32 %v1071_v10, %v982_v9 }
 0x14e   : > { %v1248_v12 = vadd.f32 %v1247_v7, %v1159_v8 }
 0x150   : > { %v1306_v15 = vadd.f32 %v1248_v12, %v342_v11  ;;  %v346_v11 = vld [vmem:[#allocation2 + $0x90] sm:$0xff] }
 0x152   : > { %1338 = vst.msk [vmem:[#allocation2 + $0x70] sm:$0xff] %vm225_vm0, %v1306_v15 }
 0x153   : > { %v1160_v23 = vpop.f32.mrf.mxu2  ;;  %v985_v28 = vpop.f32.mrf.mxu0 }
 0x154   : > { %v1249_v24 = vpop.f32.mrf.mxu3  ;;  %v1161_v27 = vadd.f32 %v1160_v23, %v1072_v22  ;;  %v1074_v29 = vpop.f32.mrf.mxu1 }
 0x155   : > { %v1075_v35 = vadd.f32 %v1074_v29, %v985_v28 }
 0x156   : > { %v1250_v33 = vadd.f32 %v1249_v24, %v1161_v27  ;;  %2043 = vmatmul.bf16.vlgmr.msrb.gmra.mxu0 %v5337_v25  ;;  %v5369_v25 = vor.u32 %v6732_v14, %v5368_v13  ;;  %v5400_v13 = vld [vmem:[%s7911_s28 + $0x80] sm:$0xf]  ;;  %v6740_v14 = vld [vmem:[%s7911_s28 + $0x8c] sm:$0xf0] }
 0x157   : > { %2132 = vmatmul.bf16.vlgmr.msrb.gmra.mxu1 %v5341_v26  ;;  %v5373_v26 = vor.u32 %v6730_v16, %v5370_v17  ;;  %v6738_v16 = vld [vmem:[%s7911_s28 + $0x84] sm:$0xf]  ;;  %v5402_v17 = vld [vmem:[%s7911_s28 + $0x90] sm:$0xf0]  ;;  %4233 = vmatpush.bf16.msrb.mxu0 %v6987_v55 }
 0x158   : > { %v1307_v34 = vadd.f32 %v1250_v33, %v343_v32  ;;  %2221 = vmatmul.bf16.vlgmr.msrb.gmra.mxu2 %v5345_v30  ;;  %v5377_v30 = vor.u32 %v6733_v19, %v5376_v18  ;;  %v347_v32 = vld [vmem:[#allocation2 + $0x98] sm:$0xff]  ;;  %v5408_v18 = vld [vmem:[%s7911_s28 + $0x88] sm:$0xf]  ;;  %4322 = vmatpush.bf16.msrb.mxu1 %v6995_v56  ;;  %v6986_v55 = vld [vmem:[%s8653_s1 + $0x330] sm:$0xff] }
 0x159   : > { %2310 = vmatmul.bf16.vlgmr.msrb.gmra.mxu3 %v5349_v31  ;;  %v5381_v31 = vor.u32 %v6731_v20, %v5378_v21  ;;  %v6741_v19 = vld [vmem:[%s7911_s28 + $0x94] sm:$0xf0]  ;;  %v6739_v20 = vld [vmem:[%s7911_s28 + $0x8c] sm:$0xf]  ;;  %v5410_v21 = vld [vmem:[%s7911_s28 + $0x98] sm:$0xf0]  ;;  %4411 = vmatpush.bf16.msrb.mxu2 %v7003_v36 }
 0x15a   : > { %1339 = vst.msk [vmem:[#allocation2 + $0x78] sm:$0xff] %vm225_vm0, %v1307_v34  ;;  %4500 = vmatpush.bf16.msrb.mxu3 %v7011_v37  ;;  %v7002_v36 = vld [vmem:[%s8653_s1 + $0x3b0] sm:$0xff] }
 0x15b   : > { %v1163_v38 = vpop.f32.mrf.mxu2  ;;  %v987_v41 = vpop.f32.mrf.mxu0  ;;  %v7010_v37 = vld [vmem:[%s8653_s1 + $0x3f0] sm:$0xff]  ;;  %4234 = vmatpush.bf16.msrb.mxu0 %v6986_v55  ;;  %v6985_v55 = vld [vmem:[%s8653_s1 + $0x328] sm:$0xff] }
 0x15c   : > { %v1252_v39 = vpop.f32.mrf.mxu3  ;;  %v1164_v40 = vadd.f32 %v1163_v38, %v1075_v35  ;;  %v1076_v42 = vpop.f32.mrf.mxu1  ;;  %v6994_v56 = vld [vmem:[%s8653_s1 + $0x370] sm:$0xff] }
 0x15d   : > { %v1077_v54 = vadd.f32 %v1076_v42, %v987_v41  ;;  %4412 = vmatpush.bf16.msrb.mxu2 %v7002_v36  ;;  %4323 = vmatpush.bf16.msrb.mxu1 %v6994_v56  ;;  %v7001_v36 = vld [vmem:[%s8653_s1 + $0x3a8] sm:$0xff] }
 0x15e   : > { %v1253_v44 = vadd.f32 %v1252_v39, %v1164_v40  ;;  %4501 = vmatpush.bf16.msrb.mxu3 %v7010_v37  ;;  %v7009_v37 = vld [vmem:[%s8653_s1 + $0x3e8] sm:$0xff] }
 0x15f   : > { %v6993_v56 = vld [vmem:[%s8653_s1 + $0x368] sm:$0xff]  ;;  %4235 = vmatpush.bf16.msrb.mxu0 %v6985_v55  ;;  %v6984_v55 = vld [vmem:[%s8653_s1 + $0x320] sm:$0xff] }
 0x160   : > { %v1308_v47 = vadd.f32 %v1253_v44, %v344_v43  ;;  %v348_v43 = vld [vmem:[#allocation2 + $0xa0] sm:$0xff] }
 0x161   : > { %4413 = vmatpush.bf16.msrb.mxu2 %v7001_v36  ;;  %4324 = vmatpush.bf16.msrb.mxu1 %v6993_v56  ;;  %v7000_v36 = vld [vmem:[%s8653_s1 + $0x3a0] sm:$0xff] }
 0x162   : > { %1340 = vst.msk [vmem:[#allocation2 + $0x80] sm:$0xff] %vm225_vm0, %v1308_v47  ;;  %4502 = vmatpush.bf16.msrb.mxu3 %v7009_v37  ;;  %v7008_v37 = vld [vmem:[%s8653_s1 + $0x3e0] sm:$0xff] }
 0x163   : > { %v1165_v57 = vpop.f32.mrf.mxu2  ;;  %v990_v62 = vpop.f32.mrf.mxu0  ;;  %v6992_v56 = vld [vmem:[%s8653_s1 + $0x360] sm:$0xff]  ;;  %4236 = vmatpush.bf16.msrb.mxu0 %v6984_v55  ;;  %v6983_v55 = vld [vmem:[%s8653_s1 + $0x318] sm:$0xff] }
 0x164   : > { %v1254_v58 = vpop.f32.mrf.mxu3  ;;  %v1166_v61 = vadd.f32 %v1165_v57, %v1077_v54  ;;  %v1079_v63 = vpop.f32.mrf.mxu1 }
 0x165   : > { %v1080_v5 = vadd.f32 %v1079_v63, %v990_v62  ;;  %4414 = vmatpush.bf16.msrb.mxu2 %v7000_v36  ;;  %4325 = vmatpush.bf16.msrb.mxu1 %v6992_v56  ;;  %v6999_v36 = vld [vmem:[%s8653_s1 + $0x398] sm:$0xff] }
 0x166   : > { %v1255_v3 = vadd.f32 %v1254_v58, %v1166_v61  ;;  %2048 = vmatmul.bf16.gmra.mxu0 %v5353_v59  ;;  %v5385_v59 = vor.u32 %v6736_v46, %v5384_v45  ;;  %v5416_v45 = vld [vmem:[%s7911_s28 + $0xa0] sm:$0xf]  ;;  %v6744_v46 = vld [vmem:[%s7911_s28 + $0xac] sm:$0xf0]  ;;  %4503 = vmatpush.bf16.msrb.mxu3 %v7008_v37  ;;  %v7007_v37 = vld [vmem:[%s8653_s1 + $0x3d8] sm:$0xff] }
 0x167   : > { %2137 = vmatmul.bf16.gmra.mxu1 %v5357_v60  ;;  %v5389_v60 = vor.u32 %v6734_v48, %v5386_v49  ;;  %v6742_v48 = vld [vmem:[%s7911_s28 + $0xa4] sm:$0xf]  ;;  %v5418_v49 = vld [vmem:[%s7911_s28 + $0xb0] sm:$0xf0]  ;;  %v6991_v56 = vld [vmem:[%s8653_s1 + $0x358] sm:$0xff]  ;;  %4237 = vmatpush.bf16.msrb.mxu0 %v6983_v55 }
 0x168   : > { %v1309_v4 = vadd.f32 %v1255_v3, %v345_v2  ;;  %2226 = vmatmul.bf16.gmra.mxu2 %v5361_v0  ;;  %v5393_v0 = vor.u32 %v6737_v51, %v5392_v50  ;;  %v349_v2 = vld [vmem:[#allocation2 + $0xa8] sm:$0xff]  ;;  %v6745_v51 = vld [vmem:[%s7911_s28 + $0xb4] sm:$0xf0]  ;;  %v6982_v55 = vld [vmem:[%s8653_s1 + $0x310] sm:$0xff] }
 0x169   : > { %2315 = vmatmul.bf16.gmra.mxu3 %v5365_v1  ;;  %v5397_v1 = vor.u32 %v6735_v52, %v5394_v53  ;;  %v5424_v50 = vld [vmem:[%s7911_s28 + $0xa8] sm:$0xf]  ;;  %v6743_v52 = vld [vmem:[%s7911_s28 + $0xac] sm:$0xf]  ;;  %v5426_v53 = vld [vmem:[%s7911_s28 + $0xb8] sm:$0xf0]  ;;  %4415 = vmatpush.bf16.msrb.mxu2 %v6999_v36 }
 0x16a   : > { %1341 = vst.msk [vmem:[#allocation2 + $0x88] sm:$0xff] %vm225_vm0, %v1309_v4  ;;  %4504 = vmatpush.bf16.msrb.mxu3 %v7007_v37  ;;  %4326 = vmatpush.bf16.msrb.mxu1 %v6991_v56  ;;  %v6998_v36 = vld [vmem:[%s8653_s1 + $0x390] sm:$0xff] }
 0x16b   : > { %v1168_v6 = vpop.f32.mrf.mxu2  ;;  %v992_v9 = vpop.f32.mrf.mxu0  ;;  %v7006_v37 = vld [vmem:[%s8653_s1 + $0x3d0] sm:$0xff]  ;;  %4238 = vmatpush.bf16.msrb.mxu0 %v6982_v55  ;;  %v6981_v55 = vld [vmem:[%s8653_s1 + $0x308] sm:$0xff] }
 0x16c   : > { %v1257_v7 = vpop.f32.mrf.mxu3  ;;  %v1169_v8 = vadd.f32 %v1168_v6, %v1080_v5  ;;  %v1081_v10 = vpop.f32.mrf.mxu1  ;;  %v6990_v56 = vld [vmem:[%s8653_s1 + $0x350] sm:$0xff] }
 0x16d   : > { %v1082_v22 = vadd.f32 %v1081_v10, %v992_v9  ;;  %4416 = vmatpush.bf16.msrb.mxu2 %v6998_v36  ;;  %v6997_v36 = vld [vmem:[%s8653_s1 + $0x388] sm:$0xff] }
 0x16e   : > { %v1258_v12 = vadd.f32 %v1257_v7, %v1169_v8  ;;  %4505 = vmatpush.bf16.msrb.mxu3 %v7006_v37  ;;  %4327 = vmatpush.bf16.msrb.mxu1 %v6990_v56  ;;  %v7005_v37 = vld [vmem:[%s8653_s1 + $0x3c8] sm:$0xff] }
 0x16f   : > { %v6989_v56 = vld [vmem:[%s8653_s1 + $0x348] sm:$0xff]  ;;  %4239 = vmatpush.bf16.msrb.mxu0 %v6981_v55  ;;  %v6980_v55 = vld [vmem:[%s8653_s1 + $0x300] sm:$0xff] }
 0x170   : > { %v1310_v15 = vadd.f32 %v1258_v12, %v346_v11  ;;  %v350_v11 = vld [vmem:[#allocation2 + $0xb0] sm:$0xff] }
 0x171   : > { %4417 = vmatpush.bf16.msrb.mxu2 %v6997_v36  ;;  %v6996_v36 = vld [vmem:[%s8653_s1 + $0x380] sm:$0xff] }
 0x172   : > { %1342 = vst.msk [vmem:[#allocation2 + $0x90] sm:$0xff] %vm225_vm0, %v1310_v15  ;;  %4506 = vmatpush.bf16.msrb.mxu3 %v7005_v37  ;;  %4328 = vmatpush.bf16.msrb.mxu1 %v6989_v56  ;;  %v7004_v37 = vld [vmem:[%s8653_s1 + $0x3c0] sm:$0xff] }
 0x173   : > { %v1170_v23 = vpop.f32.mrf.mxu2  ;;  %v995_v28 = vpop.f32.mrf.mxu0  ;;  %v6988_v56 = vld [vmem:[%s8653_s1 + $0x340] sm:$0xff]  ;;  %4240 = vmatpush.bf16.msrb.mxu0 %v6980_v55 }
 0x174   : > { %v1259_v24 = vpop.f32.mrf.mxu3  ;;  %v1171_v27 = vadd.f32 %v1170_v23, %v1082_v22  ;;  %v1084_v29 = vpop.f32.mrf.mxu1 }
 0x175   : > { %v1085_v35 = vadd.f32 %v1084_v29, %v995_v28  ;;  %4418 = vmatpush.bf16.msrb.mxu2 %v6996_v36 }
 0x176   : > { %v1260_v33 = vadd.f32 %v1259_v24, %v1171_v27  ;;  %2053 = vmatmul.bf16.gmra.mxu0 %v5369_v25  ;;  %v5401_v25 = vor.u32 %v6740_v14, %v5400_v13  ;;  %v5432_v13 = vld [vmem:[%s7911_s28 + $0xc0] sm:$0xf]  ;;  %v6748_v14 = vld [vmem:[%s7911_s28 + $0xcc] sm:$0xf0]  ;;  %4507 = vmatpush.bf16.msrb.mxu3 %v7004_v37 }
 0x177   : > { %2142 = vmatmul.bf16.gmra.mxu1 %v5373_v26  ;;  %v5405_v26 = vor.u32 %v6738_v16, %v5402_v17  ;;  %v6746_v16 = vld [vmem:[%s7911_s28 + $0xc4] sm:$0xf]  ;;  %v5434_v17 = vld [vmem:[%s7911_s28 + $0xd0] sm:$0xf0] }
 0x178   : > { %v1311_v34 = vadd.f32 %v1260_v33, %v347_v32  ;;  %2231 = vmatmul.bf16.gmra.mxu2 %v5377_v30  ;;  %v5409_v30 = vor.u32 %v6741_v19, %v5408_v18  ;;  %v351_v32 = vld [vmem:[#allocation2 + $0xb8] sm:$0xff]  ;;  %v5440_v18 = vld [vmem:[%s7911_s28 + $0xc8] sm:$0xf]  ;;  %4329 = vmatpush.bf16.msrb.mxu1 %v6988_v56 }
 0x179   : > { %2320 = vmatmul.bf16.gmra.mxu3 %v5381_v31  ;;  %v5413_v31 = vor.u32 %v6739_v20, %v5410_v21  ;;  %v6749_v19 = vld [vmem:[%s7911_s28 + $0xd4] sm:$0xf0]  ;;  %v6747_v20 = vld [vmem:[%s7911_s28 + $0xcc] sm:$0xf]  ;;  %v5442_v21 = vld [vmem:[%s7911_s28 + $0xd8] sm:$0xf0] }
 0x17a   : > { %1343 = vst.msk [vmem:[#allocation2 + $0x98] sm:$0xff] %vm225_vm0, %v1311_v34 }
 0x17b   : > { %v1173_v38 = vpop.f32.mrf.mxu2  ;;  %v997_v41 = vpop.f32.mrf.mxu0 }
 0x17c   : > { %v1262_v39 = vpop.f32.mrf.mxu3  ;;  %v1174_v40 = vadd.f32 %v1173_v38, %v1085_v35  ;;  %v1086_v42 = vpop.f32.mrf.mxu1 }
 0x17d   : > { %v1087_v54 = vadd.f32 %v1086_v42, %v997_v41 }
 0x17e   : > { %v1263_v44 = vadd.f32 %v1262_v39, %v1174_v40 }
 0x180   : > { %v1312_v47 = vadd.f32 %v1263_v44, %v348_v43  ;;  %v352_v43 = vld [vmem:[#allocation2 + $0xc0] sm:$0xff] }
 0x182   : > { %1344 = vst.msk [vmem:[#allocation2 + $0xa0] sm:$0xff] %vm225_vm0, %v1312_v47 }
 0x183   : > { %v1175_v57 = vpop.f32.mrf.mxu2  ;;  %v1000_v62 = vpop.f32.mrf.mxu0 }
 0x184   : > { %v1264_v58 = vpop.f32.mrf.mxu3  ;;  %v1176_v61 = vadd.f32 %v1175_v57, %v1087_v54  ;;  %v1089_v63 = vpop.f32.mrf.mxu1 }
 0x185   : > { %v1090_v5 = vadd.f32 %v1089_v63, %v1000_v62 }
 0x186   : > { %v1265_v3 = vadd.f32 %v1264_v58, %v1176_v61  ;;  %2058 = vmatmul.bf16.gmra.mxu0 %v5385_v59  ;;  %v5417_v59 = vor.u32 %v6744_v46, %v5416_v45  ;;  %v5448_v45 = vld [vmem:[%s7911_s28 + $0xe0] sm:$0xf]  ;;  %v6752_v46 = vld [vmem:[%s7911_s28 + $0xec] sm:$0xf0] }
 0x187   : > { %2147 = vmatmul.bf16.gmra.mxu1 %v5389_v60  ;;  %v5421_v60 = vor.u32 %v6742_v48, %v5418_v49  ;;  %v6750_v48 = vld [vmem:[%s7911_s28 + $0xe4] sm:$0xf]  ;;  %v5450_v49 = vld [vmem:[%s7911_s28 + $0xf0] sm:$0xf0] }
 0x188   : > { %v1313_v4 = vadd.f32 %v1265_v3, %v349_v2  ;;  %2236 = vmatmul.bf16.gmra.mxu2 %v5393_v0  ;;  %v5425_v0 = vor.u32 %v6745_v51, %v5424_v50  ;;  %v353_v2 = vld [vmem:[#allocation2 + $0xc8] sm:$0xff]  ;;  %v6753_v51 = vld [vmem:[%s7911_s28 + $0xf4] sm:$0xf0] }
 0x189   : > { %2325 = vmatmul.bf16.gmra.mxu3 %v5397_v1  ;;  %v5429_v1 = vor.u32 %v6743_v52, %v5426_v53  ;;  %v5456_v50 = vld [vmem:[%s7911_s28 + $0xe8] sm:$0xf]  ;;  %v6751_v52 = vld [vmem:[%s7911_s28 + $0xec] sm:$0xf]  ;;  %v5458_v53 = vld [vmem:[%s7911_s28 + $0xf8] sm:$0xf0] }
 0x18a   : > { %1345 = vst.msk [vmem:[#allocation2 + $0xa8] sm:$0xff] %vm225_vm0, %v1313_v4 }
 0x18b   : > { %v1178_v6 = vpop.f32.mrf.mxu2  ;;  %v1002_v9 = vpop.f32.mrf.mxu0 }
 0x18c   : > { %v1267_v7 = vpop.f32.mrf.mxu3  ;;  %v1179_v8 = vadd.f32 %v1178_v6, %v1090_v5  ;;  %v1091_v10 = vpop.f32.mrf.mxu1 }
 0x18d   : > { %v1092_v22 = vadd.f32 %v1091_v10, %v1002_v9 }
 0x18e   : > { %v1268_v12 = vadd.f32 %v1267_v7, %v1179_v8 }
 0x190   : > { %v1314_v15 = vadd.f32 %v1268_v12, %v350_v11  ;;  %v354_v11 = vld [vmem:[#allocation2 + $0xd0] sm:$0xff] }
 0x192   : > { %1346 = vst.msk [vmem:[#allocation2 + $0xb0] sm:$0xff] %vm225_vm0, %v1314_v15 }
 0x193   : > { %v1180_v23 = vpop.f32.mrf.mxu2  ;;  %v1005_v28 = vpop.f32.mrf.mxu0 }
 0x194   : > { %v1269_v24 = vpop.f32.mrf.mxu3  ;;  %v1181_v27 = vadd.f32 %v1180_v23, %v1092_v22  ;;  %v1094_v29 = vpop.f32.mrf.mxu1 }
 0x195   : > { %v1095_v35 = vadd.f32 %v1094_v29, %v1005_v28 }
 0x196   : > { %v1270_v33 = vadd.f32 %v1269_v24, %v1181_v27  ;;  %2063 = vmatmul.bf16.gmra.mxu0 %v5401_v25  ;;  %v5433_v25 = vor.u32 %v6748_v14, %v5432_v13  ;;  %v5464_v13 = vld [vmem:[%s7911_s28 + $0x100] sm:$0xf]  ;;  %v6756_v14 = vld [vmem:[%s7911_s28 + $0x10c] sm:$0xf0] }
 0x197   : > { %2152 = vmatmul.bf16.gmra.mxu1 %v5405_v26  ;;  %v5437_v26 = vor.u32 %v6746_v16, %v5434_v17  ;;  %v6754_v16 = vld [vmem:[%s7911_s28 + $0x104] sm:$0xf]  ;;  %v5466_v17 = vld [vmem:[%s7911_s28 + $0x110] sm:$0xf0] }
 0x198   : > { %v1315_v34 = vadd.f32 %v1270_v33, %v351_v32  ;;  %2241 = vmatmul.bf16.gmra.mxu2 %v5409_v30  ;;  %v5441_v30 = vor.u32 %v6749_v19, %v5440_v18  ;;  %v355_v32 = vld [vmem:[#allocation2 + $0xd8] sm:$0xff]  ;;  %v5472_v18 = vld [vmem:[%s7911_s28 + $0x108] sm:$0xf] }
 0x199   : > { %2330 = vmatmul.bf16.gmra.mxu3 %v5413_v31  ;;  %v5445_v31 = vor.u32 %v6747_v20, %v5442_v21  ;;  %v6757_v19 = vld [vmem:[%s7911_s28 + $0x114] sm:$0xf0]  ;;  %v6755_v20 = vld [vmem:[%s7911_s28 + $0x10c] sm:$0xf]  ;;  %v5474_v21 = vld [vmem:[%s7911_s28 + $0x118] sm:$0xf0] }
 0x19a   : > { %1347 = vst.msk [vmem:[#allocation2 + $0xb8] sm:$0xff] %vm225_vm0, %v1315_v34 }
 0x19b   : > { %v1183_v38 = vpop.f32.mrf.mxu2  ;;  %v1007_v41 = vpop.f32.mrf.mxu0 }
 0x19c   : > { %v1272_v39 = vpop.f32.mrf.mxu3  ;;  %v1184_v40 = vadd.f32 %v1183_v38, %v1095_v35  ;;  %v1096_v42 = vpop.f32.mrf.mxu1 }
 0x19d   : > { %v1097_v54 = vadd.f32 %v1096_v42, %v1007_v41 }
 0x19e   : > { %v1273_v44 = vadd.f32 %v1272_v39, %v1184_v40 }
 0x1a0   : > { %v1316_v47 = vadd.f32 %v1273_v44, %v352_v43  ;;  %v356_v43 = vld [vmem:[#allocation2 + $0xe0] sm:$0xff] }
 0x1a2   : > { %1348 = vst.msk [vmem:[#allocation2 + $0xc0] sm:$0xff] %vm225_vm0, %v1316_v47 }
 0x1a3   : > { %v1185_v57 = vpop.f32.mrf.mxu2  ;;  %v1010_v62 = vpop.f32.mrf.mxu0 }
 0x1a4   : > { %v1274_v58 = vpop.f32.mrf.mxu3  ;;  %v1186_v61 = vadd.f32 %v1185_v57, %v1097_v54  ;;  %v1099_v63 = vpop.f32.mrf.mxu1 }
 0x1a5   : > { %v1100_v5 = vadd.f32 %v1099_v63, %v1010_v62 }
 0x1a6   : > { %v1275_v3 = vadd.f32 %v1274_v58, %v1186_v61  ;;  %2068 = vmatmul.bf16.gmra.mxu0 %v5417_v59  ;;  %v5449_v59 = vor.u32 %v6752_v46, %v5448_v45  ;;  %v5480_v45 = vld [vmem:[%s7911_s28 + $0x120] sm:$0xf]  ;;  %v6760_v46 = vld [vmem:[%s7911_s28 + $0x12c] sm:$0xf0] }
 0x1a7   : > { %2157 = vmatmul.bf16.gmra.mxu1 %v5421_v60  ;;  %v5453_v60 = vor.u32 %v6750_v48, %v5450_v49  ;;  %v6758_v48 = vld [vmem:[%s7911_s28 + $0x124] sm:$0xf]  ;;  %v5482_v49 = vld [vmem:[%s7911_s28 + $0x130] sm:$0xf0] }
 0x1a8   : > { %v1317_v4 = vadd.f32 %v1275_v3, %v353_v2  ;;  %2246 = vmatmul.bf16.gmra.mxu2 %v5425_v0  ;;  %v5457_v0 = vor.u32 %v6753_v51, %v5456_v50  ;;  %v357_v2 = vld [vmem:[#allocation2 + $0xe8] sm:$0xff]  ;;  %v6761_v51 = vld [vmem:[%s7911_s28 + $0x134] sm:$0xf0] }
 0x1a9   : > { %2335 = vmatmul.bf16.gmra.mxu3 %v5429_v1  ;;  %v5461_v1 = vor.u32 %v6751_v52, %v5458_v53  ;;  %v5488_v50 = vld [vmem:[%s7911_s28 + $0x128] sm:$0xf]  ;;  %v6759_v52 = vld [vmem:[%s7911_s28 + $0x12c] sm:$0xf]  ;;  %v5490_v53 = vld [vmem:[%s7911_s28 + $0x138] sm:$0xf0] }
 0x1aa   : > { %1349 = vst.msk [vmem:[#allocation2 + $0xc8] sm:$0xff] %vm225_vm0, %v1317_v4 }
 0x1ab   : > { %v1188_v6 = vpop.f32.mrf.mxu2  ;;  %v1012_v9 = vpop.f32.mrf.mxu0 }
 0x1ac   : > { %v1277_v7 = vpop.f32.mrf.mxu3  ;;  %v1189_v8 = vadd.f32 %v1188_v6, %v1100_v5  ;;  %v1101_v10 = vpop.f32.mrf.mxu1 }
 0x1ad   : > { %v1102_v22 = vadd.f32 %v1101_v10, %v1012_v9 }
 0x1ae   : > { %v1278_v12 = vadd.f32 %v1277_v7, %v1189_v8 }
 0x1b0   : > { %v1318_v15 = vadd.f32 %v1278_v12, %v354_v11  ;;  %v358_v11 = vld [vmem:[#allocation2 + $0xf0] sm:$0xff] }
 0x1b2   : > { %1350 = vst.msk [vmem:[#allocation2 + $0xd0] sm:$0xff] %vm225_vm0, %v1318_v15 }
 0x1b3   : > { %v1190_v23 = vpop.f32.mrf.mxu2  ;;  %v1015_v28 = vpop.f32.mrf.mxu0 }
 0x1b4   : > { %v1279_v24 = vpop.f32.mrf.mxu3  ;;  %v1191_v27 = vadd.f32 %v1190_v23, %v1102_v22  ;;  %v1104_v29 = vpop.f32.mrf.mxu1 }
 0x1b5   : > { %v1105_v35 = vadd.f32 %v1104_v29, %v1015_v28 }
 0x1b6   : > { %v1280_v33 = vadd.f32 %v1279_v24, %v1191_v27  ;;  %2073 = vmatmul.bf16.gmra.mxu0 %v5433_v25  ;;  %v5465_v25 = vor.u32 %v6756_v14, %v5464_v13  ;;  %v5496_v13 = vld [vmem:[%s7911_s28 + $0x140] sm:$0xf]  ;;  %v6764_v14 = vld [vmem:[%s7911_s28 + $0x14c] sm:$0xf0] }
 0x1b7   : > { %2162 = vmatmul.bf16.gmra.mxu1 %v5437_v26  ;;  %v5469_v26 = vor.u32 %v6754_v16, %v5466_v17  ;;  %v6762_v16 = vld [vmem:[%s7911_s28 + $0x144] sm:$0xf]  ;;  %v5498_v17 = vld [vmem:[%s7911_s28 + $0x150] sm:$0xf0] }
 0x1b8   : > { %v1319_v34 = vadd.f32 %v1280_v33, %v355_v32  ;;  %2251 = vmatmul.bf16.gmra.mxu2 %v5441_v30  ;;  %v5473_v30 = vor.u32 %v6757_v19, %v5472_v18  ;;  %v359_v32 = vld [vmem:[#allocation2 + $0xf8] sm:$0xff]  ;;  %v5504_v18 = vld [vmem:[%s7911_s28 + $0x148] sm:$0xf] }
 0x1b9   : > { %2340 = vmatmul.bf16.gmra.mxu3 %v5445_v31  ;;  %v5477_v31 = vor.u32 %v6755_v20, %v5474_v21  ;;  %v6765_v19 = vld [vmem:[%s7911_s28 + $0x154] sm:$0xf0]  ;;  %v6763_v20 = vld [vmem:[%s7911_s28 + $0x14c] sm:$0xf]  ;;  %v5506_v21 = vld [vmem:[%s7911_s28 + $0x158] sm:$0xf0] }
 0x1ba   : > { %1351 = vst.msk [vmem:[#allocation2 + $0xd8] sm:$0xff] %vm225_vm0, %v1319_v34 }
 0x1bb   : > { %v1193_v38 = vpop.f32.mrf.mxu2  ;;  %v1017_v41 = vpop.f32.mrf.mxu0 }
 0x1bc   : > { %v1282_v39 = vpop.f32.mrf.mxu3  ;;  %v1194_v40 = vadd.f32 %v1193_v38, %v1105_v35  ;;  %v1106_v42 = vpop.f32.mrf.mxu1 }
 0x1bd   : > { %v1107_v54 = vadd.f32 %v1106_v42, %v1017_v41 }
 0x1be   : > { %v1283_v44 = vadd.f32 %v1282_v39, %v1194_v40 }
 0x1c0   : > { %v1320_v47 = vadd.f32 %v1283_v44, %v356_v43  ;;  %v1426_v44 = vld [vmem:[#allocation2] sm:$0xff] }
 0x1c2   : > { %1352 = vst.msk [vmem:[#allocation2 + $0xe0] sm:$0xff] %vm225_vm0, %v1320_v47 }
 0x1c3   : > { %v1195_v57 = vpop.f32.mrf.mxu2  ;;  %v1020_v62 = vpop.f32.mrf.mxu0 }
 0x1c4   : > { %v1284_v58 = vpop.f32.mrf.mxu3  ;;  %v1196_v61 = vadd.f32 %v1195_v57, %v1107_v54  ;;  %v1109_v63 = vpop.f32.mrf.mxu1 }
 0x1c5   : > { %v1110_v5 = vadd.f32 %v1109_v63, %v1020_v62 }
 0x1c6   : > { %v1285_v3 = vadd.f32 %v1284_v58, %v1196_v61  ;;  %2078 = vmatmul.bf16.gmra.mxu0 %v5449_v59  ;;  %v5481_v59 = vor.u32 %v6760_v46, %v5480_v45  ;;  %v5512_v45 = vld [vmem:[%s7911_s28 + $0x160] sm:$0xf]  ;;  %v6768_v46 = vld [vmem:[%s7911_s28 + $0x16c] sm:$0xf0] }
 0x1c7   : > { %2167 = vmatmul.bf16.gmra.mxu1 %v5453_v60  ;;  %v5485_v60 = vor.u32 %v6758_v48, %v5482_v49  ;;  %v6766_v48 = vld [vmem:[%s7911_s28 + $0x164] sm:$0xf]  ;;  %v5514_v49 = vld [vmem:[%s7911_s28 + $0x170] sm:$0xf0] }
 0x1c8   : > { %v1321_v4 = vadd.f32 %v1285_v3, %v357_v2  ;;  %2256 = vmatmul.bf16.gmra.mxu2 %v5457_v0  ;;  %v5489_v0 = vor.u32 %v6761_v51, %v5488_v50  ;;  %v1427_v3 = vld [vmem:[#allocation2 + $0x8] sm:$0xff]  ;;  %v6769_v51 = vld [vmem:[%s7911_s28 + $0x174] sm:$0xf0] }
 0x1c9   : > { %2345 = vmatmul.bf16.gmra.mxu3 %v5461_v1  ;;  %v5493_v1 = vor.u32 %v6759_v52, %v5490_v53  ;;  %v5520_v50 = vld [vmem:[%s7911_s28 + $0x168] sm:$0xf]  ;;  %v6767_v52 = vld [vmem:[%s7911_s28 + $0x16c] sm:$0xf]  ;;  %v5522_v53 = vld [vmem:[%s7911_s28 + $0x178] sm:$0xf0] }
 0x1ca   : > { %1353 = vst.msk [vmem:[#allocation2 + $0xe8] sm:$0xff] %vm225_vm0, %v1321_v4 }
 0x1cb   : > { %v1198_v6 = vpop.f32.mrf.mxu2  ;;  %v1022_v9 = vpop.f32.mrf.mxu0 }
 0x1cc   : > { %v1287_v7 = vpop.f32.mrf.mxu3  ;;  %v1199_v8 = vadd.f32 %v1198_v6, %v1110_v5  ;;  %v1111_v10 = vpop.f32.mrf.mxu1 }
 0x1cd   : > { %v1112_v22 = vadd.f32 %v1111_v10, %v1022_v9 }
 0x1ce   : > { %v1288_v12 = vadd.f32 %v1287_v7, %v1199_v8 }
 0x1d0   : > { %v1322_v15 = vadd.f32 %v1288_v12, %v358_v11  ;;  %v1428_v12 = vld [vmem:[#allocation2 + $0x10] sm:$0xff] }
 0x1d2   : > { %1354 = vst.msk [vmem:[#allocation2 + $0xf0] sm:$0xff] %vm225_vm0, %v1322_v15 }
 0x1d3   : > { %v1200_v23 = vpop.f32.mrf.mxu2  ;;  %v2044_v28 = vpop.f32.mrf.mxu0 }
 0x1d4   : > { %v1289_v24 = vpop.f32.mrf.mxu3  ;;  %v1201_v27 = vadd.f32 %v1200_v23, %v1112_v22  ;;  %v2133_v29 = vpop.f32.mrf.mxu1 }
 0x1d5   : > { %v2134_v35 = vadd.f32 %v2133_v29, %v2044_v28 }
 0x1d6   : > { %v1290_v33 = vadd.f32 %v1289_v24, %v1201_v27  ;;  %2083 = vmatmul.bf16.gmra.mxu0 %v5465_v25  ;;  %v5497_v25 = vor.u32 %v6764_v14, %v5496_v13  ;;  %v5528_v13 = vld [vmem:[%s7911_s28 + $0x180] sm:$0xf]  ;;  %v6772_v14 = vld [vmem:[%s7911_s28 + $0x18c] sm:$0xf0] }
 0x1d7   : > { %2172 = vmatmul.bf16.gmra.mxu1 %v5469_v26  ;;  %v5501_v26 = vor.u32 %v6762_v16, %v5498_v17  ;;  %v6770_v16 = vld [vmem:[%s7911_s28 + $0x184] sm:$0xf]  ;;  %v5530_v17 = vld [vmem:[%s7911_s28 + $0x190] sm:$0xf0] }
 0x1d8   : > { %v1323_v34 = vadd.f32 %v1290_v33, %v359_v32  ;;  %2261 = vmatmul.bf16.gmra.mxu2 %v5473_v30  ;;  %v5505_v30 = vor.u32 %v6765_v19, %v5504_v18  ;;  %v1429_v33 = vld [vmem:[#allocation2 + $0x18] sm:$0xff]  ;;  %v5536_v18 = vld [vmem:[%s7911_s28 + $0x188] sm:$0xf] }
 0x1d9   : > { %2350 = vmatmul.bf16.gmra.mxu3 %v5477_v31  ;;  %v5509_v31 = vor.u32 %v6763_v20, %v5506_v21  ;;  %v6773_v19 = vld [vmem:[%s7911_s28 + $0x194] sm:$0xf0]  ;;  %v6771_v20 = vld [vmem:[%s7911_s28 + $0x18c] sm:$0xf]  ;;  %v5538_v21 = vld [vmem:[%s7911_s28 + $0x198] sm:$0xf0] }
 0x1da   : > { %1355 = vst.msk [vmem:[#allocation2 + $0xf8] sm:$0xff] %vm225_vm0, %v1323_v34 }
 0x1db   : > { %v2222_v38 = vpop.f32.mrf.mxu2  ;;  %v2046_v41 = vpop.f32.mrf.mxu0 }
 0x1dc   : > { %v2311_v39 = vpop.f32.mrf.mxu3  ;;  %v2223_v40 = vadd.f32 %v2222_v38, %v2134_v35  ;;  %v2135_v42 = vpop.f32.mrf.mxu1 }
 0x1dd   : > { %v2136_v54 = vadd.f32 %v2135_v42, %v2046_v41 }
 0x1de   : > { %v2312_v43 = vadd.f32 %v2311_v39, %v2223_v40 }
 0x1e0   : > { %v2391_v47 = vadd.f32 %v2312_v43, %v1426_v44  ;;  %v1430_v44 = vld [vmem:[#allocation2 + $0x20] sm:$0xff] }
 0x1e2   : > { %2423 = vst.msk [vmem:[#allocation2] sm:$0xff] %vm225_vm0, %v2391_v47 }
 0x1e3   : > { %v2224_v57 = vpop.f32.mrf.mxu2  ;;  %v2049_v62 = vpop.f32.mrf.mxu0 }
 0x1e4   : > { %v2313_v58 = vpop.f32.mrf.mxu3  ;;  %v2225_v61 = vadd.f32 %v2224_v57, %v2136_v54  ;;  %v2138_v63 = vpop.f32.mrf.mxu1 }
 0x1e5   : > { %v2139_v5 = vadd.f32 %v2138_v63, %v2049_v62 }
 0x1e6   : > { %v2314_v2 = vadd.f32 %v2313_v58, %v2225_v61  ;;  %2088 = vmatmul.bf16.gmra.mxu0 %v5481_v59  ;;  %v5513_v59 = vor.u32 %v6768_v46, %v5512_v45  ;;  %v5544_v45 = vld [vmem:[%s7911_s28 + $0x1a0] sm:$0xf]  ;;  %v6776_v46 = vld [vmem:[%s7911_s28 + $0x1ac] sm:$0xf0] }
 0x1e7   : > { %2177 = vmatmul.bf16.gmra.mxu1 %v5485_v60  ;;  %v5517_v60 = vor.u32 %v6766_v48, %v5514_v49  ;;  %v6774_v48 = vld [vmem:[%s7911_s28 + $0x1a4] sm:$0xf]  ;;  %v5546_v49 = vld [vmem:[%s7911_s28 + $0x1b0] sm:$0xf0] }
 0x1e8   : > { %v2392_v4 = vadd.f32 %v2314_v2, %v1427_v3  ;;  %2266 = vmatmul.bf16.gmra.mxu2 %v5489_v0  ;;  %v5521_v0 = vor.u32 %v6769_v51, %v5520_v50  ;;  %v1431_v3 = vld [vmem:[#allocation2 + $0x28] sm:$0xff]  ;;  %v6777_v51 = vld [vmem:[%s7911_s28 + $0x1b4] sm:$0xf0] }
 0x1e9   : > { %2355 = vmatmul.bf16.gmra.mxu3 %v5493_v1  ;;  %v5525_v1 = vor.u32 %v6767_v52, %v5522_v53  ;;  %v5552_v50 = vld [vmem:[%s7911_s28 + $0x1a8] sm:$0xf]  ;;  %v6775_v52 = vld [vmem:[%s7911_s28 + $0x1ac] sm:$0xf]  ;;  %v5554_v53 = vld [vmem:[%s7911_s28 + $0x1b8] sm:$0xf0] }
 0x1ea   : > { %2424 = vst.msk [vmem:[#allocation2 + $0x8] sm:$0xff] %vm225_vm0, %v2392_v4 }
 0x1eb   : > { %v2227_v6 = vpop.f32.mrf.mxu2  ;;  %v2051_v9 = vpop.f32.mrf.mxu0 }
 0x1ec   : > { %v2316_v7 = vpop.f32.mrf.mxu3  ;;  %v2228_v8 = vadd.f32 %v2227_v6, %v2139_v5  ;;  %v2140_v10 = vpop.f32.mrf.mxu1 }
 0x1ed   : > { %v2141_v22 = vadd.f32 %v2140_v10, %v2051_v9 }
 0x1ee   : > { %v2317_v11 = vadd.f32 %v2316_v7, %v2228_v8 }
 0x1f0   : > { %v2393_v15 = vadd.f32 %v2317_v11, %v1428_v12  ;;  %v1432_v12 = vld [vmem:[#allocation2 + $0x30] sm:$0xff] }
 0x1f2   : > { %2425 = vst.msk [vmem:[#allocation2 + $0x10] sm:$0xff] %vm225_vm0, %v2393_v15 }
 0x1f3   : > { %v2229_v23 = vpop.f32.mrf.mxu2  ;;  %v2054_v28 = vpop.f32.mrf.mxu0 }
 0x1f4   : > { %v2318_v24 = vpop.f32.mrf.mxu3  ;;  %v2230_v27 = vadd.f32 %v2229_v23, %v2141_v22  ;;  %v2143_v29 = vpop.f32.mrf.mxu1 }
 0x1f5   : > { %v2144_v35 = vadd.f32 %v2143_v29, %v2054_v28 }
 0x1f6   : > { %v2319_v32 = vadd.f32 %v2318_v24, %v2230_v27  ;;  %2093 = vmatmul.bf16.gmra.mxu0 %v5497_v25  ;;  %v5529_v25 = vor.u32 %v6772_v14, %v5528_v13  ;;  %v5560_v13 = vld [vmem:[%s7911_s28 + $0x1c0] sm:$0xf]  ;;  %v6780_v14 = vld [vmem:[%s7911_s28 + $0x1cc] sm:$0xf0] }
 0x1f7   : > { %2182 = vmatmul.bf16.gmra.mxu1 %v5501_v26  ;;  %v5533_v26 = vor.u32 %v6770_v16, %v5530_v17  ;;  %v6778_v16 = vld [vmem:[%s7911_s28 + $0x1c4] sm:$0xf]  ;;  %v5562_v17 = vld [vmem:[%s7911_s28 + $0x1d0] sm:$0xf0] }
 0x1f8   : > { %v2394_v34 = vadd.f32 %v2319_v32, %v1429_v33  ;;  %2271 = vmatmul.bf16.gmra.mxu2 %v5505_v30  ;;  %v5537_v30 = vor.u32 %v6773_v19, %v5536_v18  ;;  %v1433_v33 = vld [vmem:[#allocation2 + $0x38] sm:$0xff]  ;;  %v5568_v18 = vld [vmem:[%s7911_s28 + $0x1c8] sm:$0xf] }
 0x1f9   : > { %2360 = vmatmul.bf16.gmra.mxu3 %v5509_v31  ;;  %v5541_v31 = vor.u32 %v6771_v20, %v5538_v21  ;;  %v6781_v19 = vld [vmem:[%s7911_s28 + $0x1d4] sm:$0xf0]  ;;  %v6779_v20 = vld [vmem:[%s7911_s28 + $0x1cc] sm:$0xf]  ;;  %v5570_v21 = vld [vmem:[%s7911_s28 + $0x1d8] sm:$0xf0] }
 0x1fa   : > { %2426 = vst.msk [vmem:[#allocation2 + $0x18] sm:$0xff] %vm225_vm0, %v2394_v34 }
 0x1fb   : > { %v2232_v38 = vpop.f32.mrf.mxu2  ;;  %v2056_v41 = vpop.f32.mrf.mxu0 }
 0x1fc   : > { %v2321_v39 = vpop.f32.mrf.mxu3  ;;  %v2233_v40 = vadd.f32 %v2232_v38, %v2144_v35  ;;  %v2145_v42 = vpop.f32.mrf.mxu1 }
 0x1fd   : > { %v2146_v54 = vadd.f32 %v2145_v42, %v2056_v41 }
 0x1fe   : > { %v2322_v43 = vadd.f32 %v2321_v39, %v2233_v40 }
 0x200   : > { %v2395_v47 = vadd.f32 %v2322_v43, %v1430_v44  ;;  %v1434_v44 = vld [vmem:[#allocation2 + $0x40] sm:$0xff] }
 0x202   : > { %2427 = vst.msk [vmem:[#allocation2 + $0x20] sm:$0xff] %vm225_vm0, %v2395_v47 }
 0x203   : > { %v2234_v57 = vpop.f32.mrf.mxu2  ;;  %v2059_v62 = vpop.f32.mrf.mxu0 }
 0x204   : > { %v2323_v58 = vpop.f32.mrf.mxu3  ;;  %v2235_v61 = vadd.f32 %v2234_v57, %v2146_v54  ;;  %v2148_v63 = vpop.f32.mrf.mxu1 }
 0x205   : > { %v2149_v5 = vadd.f32 %v2148_v63, %v2059_v62 }
 0x206   : > { %v2324_v2 = vadd.f32 %v2323_v58, %v2235_v61  ;;  %2098 = vmatmul.bf16.gmra.mxu0 %v5513_v59  ;;  %v5545_v59 = vor.u32 %v6776_v46, %v5544_v45  ;;  %v5576_v45 = vld [vmem:[%s7911_s28 + $0x1e0] sm:$0xf]  ;;  %v6784_v46 = vld [vmem:[%s7911_s28 + $0x1ec] sm:$0xf0] }
 0x207   : > { %2187 = vmatmul.bf16.gmra.mxu1 %v5517_v60  ;;  %v5549_v60 = vor.u32 %v6774_v48, %v5546_v49  ;;  %v6782_v48 = vld [vmem:[%s7911_s28 + $0x1e4] sm:$0xf]  ;;  %v5578_v49 = vld [vmem:[%s7911_s28 + $0x1f0] sm:$0xf0] }
 0x208   : > { %v2396_v4 = vadd.f32 %v2324_v2, %v1431_v3  ;;  %2276 = vmatmul.bf16.gmra.mxu2 %v5521_v0  ;;  %v5553_v0 = vor.u32 %v6777_v51, %v5552_v50  ;;  %v1435_v3 = vld [vmem:[#allocation2 + $0x48] sm:$0xff]  ;;  %v6785_v51 = vld [vmem:[%s7911_s28 + $0x1f4] sm:$0xf0] }
 0x209   : > { %2365 = vmatmul.bf16.gmra.mxu3 %v5525_v1  ;;  %v5557_v1 = vor.u32 %v6775_v52, %v5554_v53  ;;  %v5584_v50 = vld [vmem:[%s7911_s28 + $0x1e8] sm:$0xf]  ;;  %v6783_v52 = vld [vmem:[%s7911_s28 + $0x1ec] sm:$0xf]  ;;  %v5586_v53 = vld [vmem:[%s7911_s28 + $0x1f8] sm:$0xf0] }
 0x20a   : > { %2428 = vst.msk [vmem:[#allocation2 + $0x28] sm:$0xff] %vm225_vm0, %v2396_v4  ;;  %s2456_s28 = sshra.s32 %s2455_s6, 3 }
 0x20b   : > { %v2237_v6 = vpop.f32.mrf.mxu2  ;;  %v2061_v9 = vpop.f32.mrf.mxu0  ;;  %s6818_s7 = sshll.u32 %s2456_s28, 4  ;;  %s6620_s28 = sshll.u32 %s7305_s19, 2 }
 0x20c   : > { %v2326_v7 = vpop.f32.mrf.mxu3  ;;  %v2238_v8 = vadd.f32 %v2237_v6, %v2149_v5  ;;  %v2150_v10 = vpop.f32.mrf.mxu1  ;;  %s8171_s10 = scalar_lea.vmem %s7480_s27, %s6818_s7 [#allocation3]  ;;  %s4763_s7 = sadd.s32 %s6620_s28, %s6619_s26 }
 0x20d   : > { %v2151_v22 = vadd.f32 %v2150_v10, %v2061_v9  ;;  %s6621_s5 = sshll.u32 %s4763_s7, 3 }
 0x20e   : > { %v2327_v11 = vadd.f32 %v2326_v7, %v2238_v8  ;;  %s4765_s30 = scalar_lea.hbm %s8684_s12, %s6621_s5 }
 0x20f   : > { %s4769_s11 = sshll.u32 %s4765_s30, 4  ;;  %s4770_s11 = int_to_ptr.hbm [resolvable:$true] %s4769_s11 }
 0x210   : > { %v2397_v15 = vadd.f32 %v2327_v11, %v1432_v12  ;;  %v1436_v12 = vld [vmem:[#allocation2 + $0x50] sm:$0xff]  ;;  %s7205_s29 = sshra.s32 %s4770_s11, 4  ;;  %s7206_s29 = int_to_ptr.hbm [resolvable:$true] %s7205_s29 }
 0x211   : > { %p7212_p0 = scmp.lt.s32.totalorder %s7206_s29, %s8685_s3 }
 0x212   : > { %2429 = vst.msk [vmem:[#allocation2 + $0x30] sm:$0xff] %vm225_vm0, %v2397_v15 }
 0x213   : > { %v2239_v23 = vpop.f32.mrf.mxu2  ;;  %v2064_v28 = vpop.f32.mrf.mxu0 }
 0x214   : > { %v2328_v24 = vpop.f32.mrf.mxu3  ;;  %v2240_v27 = vadd.f32 %v2239_v23, %v2151_v22  ;;  %v2153_v29 = vpop.f32.mrf.mxu1 }
 0x215   : > { %v2154_v35 = vadd.f32 %v2153_v29, %v2064_v28 }
 0x216   : > { %v2329_v32 = vadd.f32 %v2328_v24, %v2240_v27  ;;  %2103 = vmatmul.bf16.gmra.mxu0 %v5529_v25  ;;  %v5561_v25 = vor.u32 %v6780_v14, %v5560_v13  ;;  %v5786_v13 = vld [vmem:[%s8171_s10] sm:$0xf]  ;;  %v6821_v14 = vld [vmem:[%s8171_s10 + $0xc] sm:$0xf0] }
 0x217   : > { %2192 = vmatmul.bf16.gmra.mxu1 %v5533_v26  ;;  %v5565_v26 = vor.u32 %v6778_v16, %v5562_v17  ;;  %v6819_v16 = vld [vmem:[%s8171_s10 + $0x4] sm:$0xf]  ;;  %v5788_v17 = vld [vmem:[%s8171_s10 + $0x10] sm:$0xf0] }
 0x218   : > { %v2398_v34 = vadd.f32 %v2329_v32, %v1433_v33  ;;  %2281 = vmatmul.bf16.gmra.mxu2 %v5537_v30  ;;  %v5569_v30 = vor.u32 %v6781_v19, %v5568_v18  ;;  %v1437_v33 = vld [vmem:[#allocation2 + $0x58] sm:$0xff]  ;;  %v5794_v18 = vld [vmem:[%s8171_s10 + $0x8] sm:$0xf] }
 0x219   : > { %2370 = vmatmul.bf16.gmra.mxu3 %v5541_v31  ;;  %v5573_v31 = vor.u32 %v6779_v20, %v5570_v21  ;;  %v6822_v19 = vld [vmem:[%s8171_s10 + $0x14] sm:$0xf0]  ;;  %v6820_v20 = vld [vmem:[%s8171_s10 + $0xc] sm:$0xf]  ;;  %v5796_v21 = vld [vmem:[%s8171_s10 + $0x18] sm:$0xf0] }
 0x21a   : > { %2430 = vst.msk [vmem:[#allocation2 + $0x38] sm:$0xff] %vm225_vm0, %v2398_v34 }
 0x21b   : > { %v2242_v38 = vpop.f32.mrf.mxu2  ;;  %v2066_v41 = vpop.f32.mrf.mxu0 }
 0x21c   : > { %v2331_v39 = vpop.f32.mrf.mxu3  ;;  %v2243_v40 = vadd.f32 %v2242_v38, %v2154_v35  ;;  %v2155_v42 = vpop.f32.mrf.mxu1 }
 0x21d   : > { %v2156_v54 = vadd.f32 %v2155_v42, %v2066_v41 }
 0x21e   : > { %v2332_v43 = vadd.f32 %v2331_v39, %v2243_v40 }
 0x220   : > { %v2399_v47 = vadd.f32 %v2332_v43, %v1434_v44  ;;  %v1438_v44 = vld [vmem:[#allocation2 + $0x60] sm:$0xff] }
 0x222   : > { %2431 = vst.msk [vmem:[#allocation2 + $0x40] sm:$0xff] %vm225_vm0, %v2399_v47 }
 0x223   : > { %v2244_v57 = vpop.f32.mrf.mxu2  ;;  %v2069_v62 = vpop.f32.mrf.mxu0 }
 0x224   : > { %v2333_v58 = vpop.f32.mrf.mxu3  ;;  %v2245_v61 = vadd.f32 %v2244_v57, %v2156_v54  ;;  %v2158_v63 = vpop.f32.mrf.mxu1 }
 0x225   : > { %v2159_v5 = vadd.f32 %v2158_v63, %v2069_v62 }
 0x226   : > { %v2334_v2 = vadd.f32 %v2333_v58, %v2245_v61  ;;  %2108 = vmatmul.bf16.gmra.mxu0 %v5545_v59  ;;  %v5577_v59 = vor.u32 %v6784_v46, %v5576_v45  ;;  %v5802_v45 = vld [vmem:[%s8171_s10 + $0x20] sm:$0xf]  ;;  %v6825_v46 = vld [vmem:[%s8171_s10 + $0x2c] sm:$0xf0] }
 0x227   : > { %2197 = vmatmul.bf16.gmra.mxu1 %v5549_v60  ;;  %v5581_v60 = vor.u32 %v6782_v48, %v5578_v49  ;;  %v6823_v48 = vld [vmem:[%s8171_s10 + $0x24] sm:$0xf]  ;;  %v5804_v49 = vld [vmem:[%s8171_s10 + $0x30] sm:$0xf0] }
 0x228   : > { %v2400_v4 = vadd.f32 %v2334_v2, %v1435_v3  ;;  %2286 = vmatmul.bf16.gmra.mxu2 %v5553_v0  ;;  %v5585_v0 = vor.u32 %v6785_v51, %v5584_v50  ;;  %v1439_v3 = vld [vmem:[#allocation2 + $0x68] sm:$0xff]  ;;  %v6826_v51 = vld [vmem:[%s8171_s10 + $0x34] sm:$0xf0] }
 0x229   : > { %2375 = vmatmul.bf16.gmra.mxu3 %v5557_v1  ;;  %v5589_v1 = vor.u32 %v6783_v52, %v5586_v53  ;;  %v5810_v50 = vld [vmem:[%s8171_s10 + $0x28] sm:$0xf]  ;;  %v6824_v52 = vld [vmem:[%s8171_s10 + $0x2c] sm:$0xf]  ;;  %v5812_v53 = vld [vmem:[%s8171_s10 + $0x38] sm:$0xf0] }
 0x22a   : > { %2432 = vst.msk [vmem:[#allocation2 + $0x48] sm:$0xff] %vm225_vm0, %v2400_v4 }
 0x22b   : > { %v2247_v6 = vpop.f32.mrf.mxu2  ;;  %v2071_v9 = vpop.f32.mrf.mxu0 }
 0x22c   : > { %v2336_v7 = vpop.f32.mrf.mxu3  ;;  %v2248_v8 = vadd.f32 %v2247_v6, %v2159_v5  ;;  %v2160_v10 = vpop.f32.mrf.mxu1 }
 0x22d   : > { %v2161_v22 = vadd.f32 %v2160_v10, %v2071_v9 }
 0x22e   : > { %v2337_v11 = vadd.f32 %v2336_v7, %v2248_v8 }
 0x230   : > { %v2401_v15 = vadd.f32 %v2337_v11, %v1436_v12  ;;  %v1440_v12 = vld [vmem:[#allocation2 + $0x70] sm:$0xff] }
 0x232   : > { %2433 = vst.msk [vmem:[#allocation2 + $0x50] sm:$0xff] %vm225_vm0, %v2401_v15 }
 0x233   : > { %v2249_v23 = vpop.f32.mrf.mxu2  ;;  %v2074_v28 = vpop.f32.mrf.mxu0 }
 0x234   : > { %v2338_v24 = vpop.f32.mrf.mxu3  ;;  %v2250_v27 = vadd.f32 %v2249_v23, %v2161_v22  ;;  %v2163_v29 = vpop.f32.mrf.mxu1 }
 0x235   : > { %v2164_v35 = vadd.f32 %v2163_v29, %v2074_v28 }
 0x236   : > { %v2339_v32 = vadd.f32 %v2338_v24, %v2250_v27  ;;  %2113 = vmatmul.bf16.gmra.mxu0 %v5561_v25  ;;  %v5787_v25 = vor.u32 %v6821_v14, %v5786_v13  ;;  %v5818_v13 = vld [vmem:[%s8171_s10 + $0x40] sm:$0xf]  ;;  %v6829_v14 = vld [vmem:[%s8171_s10 + $0x4c] sm:$0xf0] }
 0x237   : > { %2202 = vmatmul.bf16.gmra.mxu1 %v5565_v26  ;;  %v5791_v26 = vor.u32 %v6819_v16, %v5788_v17  ;;  %v6827_v16 = vld [vmem:[%s8171_s10 + $0x44] sm:$0xf]  ;;  %v5820_v17 = vld [vmem:[%s8171_s10 + $0x50] sm:$0xf0] }
 0x238   : > { %v2402_v34 = vadd.f32 %v2339_v32, %v1437_v33  ;;  %2291 = vmatmul.bf16.gmra.mxu2 %v5569_v30  ;;  %v5795_v30 = vor.u32 %v6822_v19, %v5794_v18  ;;  %v1441_v33 = vld [vmem:[#allocation2 + $0x78] sm:$0xff]  ;;  %v5826_v18 = vld [vmem:[%s8171_s10 + $0x48] sm:$0xf] }
 0x239   : > { %2380 = vmatmul.bf16.gmra.mxu3 %v5573_v31  ;;  %v5799_v31 = vor.u32 %v6820_v20, %v5796_v21  ;;  %v6830_v19 = vld [vmem:[%s8171_s10 + $0x54] sm:$0xf0]  ;;  %v6828_v20 = vld [vmem:[%s8171_s10 + $0x4c] sm:$0xf]  ;;  %v5828_v21 = vld [vmem:[%s8171_s10 + $0x58] sm:$0xf0] }
 0x23a   : > { %2434 = vst.msk [vmem:[#allocation2 + $0x58] sm:$0xff] %vm225_vm0, %v2402_v34 }
 0x23b   : > { %v2252_v38 = vpop.f32.mrf.mxu2  ;;  %v2076_v41 = vpop.f32.mrf.mxu0 }
 0x23c   : > { %v2341_v39 = vpop.f32.mrf.mxu3  ;;  %v2253_v40 = vadd.f32 %v2252_v38, %v2164_v35  ;;  %v2165_v42 = vpop.f32.mrf.mxu1 }
 0x23d   : > { %v2166_v54 = vadd.f32 %v2165_v42, %v2076_v41 }
 0x23e   : > { %v2342_v43 = vadd.f32 %v2341_v39, %v2253_v40 }
 0x240   : > { %v2403_v47 = vadd.f32 %v2342_v43, %v1438_v44  ;;  %v1442_v44 = vld [vmem:[#allocation2 + $0x80] sm:$0xff] }
 0x242   : > { %2435 = vst.msk [vmem:[#allocation2 + $0x60] sm:$0xff] %vm225_vm0, %v2403_v47 }
 0x243   : > { %v2254_v57 = vpop.f32.mrf.mxu2  ;;  %v2079_v62 = vpop.f32.mrf.mxu0 }
 0x244   : > { %v2343_v58 = vpop.f32.mrf.mxu3  ;;  %v2255_v61 = vadd.f32 %v2254_v57, %v2166_v54  ;;  %v2168_v63 = vpop.f32.mrf.mxu1 }
 0x245   : > { %v2169_v5 = vadd.f32 %v2168_v63, %v2079_v62 }
 0x246   : > { %v2344_v2 = vadd.f32 %v2343_v58, %v2255_v61  ;;  %2118 = vmatmul.bf16.gmra.mxu0 %v5577_v59  ;;  %v5803_v59 = vor.u32 %v6825_v46, %v5802_v45  ;;  %v5834_v45 = vld [vmem:[%s8171_s10 + $0x60] sm:$0xf]  ;;  %v6833_v46 = vld [vmem:[%s8171_s10 + $0x6c] sm:$0xf0] }
 0x247   : > { %2207 = vmatmul.bf16.gmra.mxu1 %v5581_v60  ;;  %v5807_v60 = vor.u32 %v6823_v48, %v5804_v49  ;;  %v6831_v48 = vld [vmem:[%s8171_s10 + $0x64] sm:$0xf]  ;;  %v5836_v49 = vld [vmem:[%s8171_s10 + $0x70] sm:$0xf0] }
 0x248   : > { %v2404_v4 = vadd.f32 %v2344_v2, %v1439_v3  ;;  %2296 = vmatmul.bf16.gmra.mxu2 %v5585_v0  ;;  %v5811_v0 = vor.u32 %v6826_v51, %v5810_v50  ;;  %v1443_v3 = vld [vmem:[#allocation2 + $0x88] sm:$0xff]  ;;  %v6834_v51 = vld [vmem:[%s8171_s10 + $0x74] sm:$0xf0] }
 0x249   : > { %2385 = vmatmul.bf16.gmra.mxu3 %v5589_v1  ;;  %v5815_v1 = vor.u32 %v6824_v52, %v5812_v53  ;;  %v5842_v50 = vld [vmem:[%s8171_s10 + $0x68] sm:$0xf]  ;;  %v6832_v52 = vld [vmem:[%s8171_s10 + $0x6c] sm:$0xf]  ;;  %v5844_v53 = vld [vmem:[%s8171_s10 + $0x78] sm:$0xf0] }
 0x24a   : > { %2436 = vst.msk [vmem:[#allocation2 + $0x68] sm:$0xff] %vm225_vm0, %v2404_v4 }
 0x24b   : > { %v2257_v6 = vpop.f32.mrf.mxu2  ;;  %v2081_v9 = vpop.f32.mrf.mxu0 }
 0x24c   : > { %v2346_v7 = vpop.f32.mrf.mxu3  ;;  %v2258_v8 = vadd.f32 %v2257_v6, %v2169_v5  ;;  %v2170_v10 = vpop.f32.mrf.mxu1 }
 0x24d   : > { %v2171_v22 = vadd.f32 %v2170_v10, %v2081_v9 }
 0x24e   : > { %v2347_v11 = vadd.f32 %v2346_v7, %v2258_v8 }
 0x250   : > { %v2405_v15 = vadd.f32 %v2347_v11, %v1440_v12  ;;  %v1444_v12 = vld [vmem:[#allocation2 + $0x90] sm:$0xff] }
 0x252   : > { %2437 = vst.msk [vmem:[#allocation2 + $0x70] sm:$0xff] %vm225_vm0, %v2405_v15 }
 0x253   : > { %v2259_v23 = vpop.f32.mrf.mxu2  ;;  %v2084_v28 = vpop.f32.mrf.mxu0 }
 0x254   : > { %v2348_v24 = vpop.f32.mrf.mxu3  ;;  %v2260_v27 = vadd.f32 %v2259_v23, %v2171_v22  ;;  %v2173_v29 = vpop.f32.mrf.mxu1 }
 0x255   : > { %v2174_v35 = vadd.f32 %v2173_v29, %v2084_v28 }
 0x256   : > { %v2349_v32 = vadd.f32 %v2348_v24, %v2260_v27  ;;  %3142 = vmatmul.bf16.vlgmr.msra.gmra.mxu0 %v5787_v25  ;;  %v5819_v25 = vor.u32 %v6829_v14, %v5818_v13  ;;  %v5850_v13 = vld [vmem:[%s8171_s10 + $0x80] sm:$0xf]  ;;  %v6837_v14 = vld [vmem:[%s8171_s10 + $0x8c] sm:$0xf0] }
 0x257   : > { %3231 = vmatmul.bf16.vlgmr.msra.gmra.mxu1 %v5791_v26  ;;  %v5823_v26 = vor.u32 %v6827_v16, %v5820_v17  ;;  %v6835_v16 = vld [vmem:[%s8171_s10 + $0x84] sm:$0xf]  ;;  %v5852_v17 = vld [vmem:[%s8171_s10 + $0x90] sm:$0xf0] }
 0x258   : > { %v2406_v34 = vadd.f32 %v2349_v32, %v1441_v33  ;;  %3320 = vmatmul.bf16.vlgmr.msra.gmra.mxu2 %v5795_v30  ;;  %v5827_v30 = vor.u32 %v6830_v19, %v5826_v18  ;;  %v1445_v33 = vld [vmem:[#allocation2 + $0x98] sm:$0xff]  ;;  %v5858_v18 = vld [vmem:[%s8171_s10 + $0x88] sm:$0xf] }
 0x259   : > { %3409 = vmatmul.bf16.vlgmr.msra.gmra.mxu3 %v5799_v31  ;;  %v5831_v31 = vor.u32 %v6828_v20, %v5828_v21  ;;  %v6838_v19 = vld [vmem:[%s8171_s10 + $0x94] sm:$0xf0]  ;;  %v6836_v20 = vld [vmem:[%s8171_s10 + $0x8c] sm:$0xf]  ;;  %v5860_v21 = vld [vmem:[%s8171_s10 + $0x98] sm:$0xf0] }
 0x25a   : > { %2438 = vst.msk [vmem:[#allocation2 + $0x78] sm:$0xff] %vm225_vm0, %v2406_v34 }
 0x25b   : > { %v2262_v38 = vpop.f32.mrf.mxu2  ;;  %v2086_v41 = vpop.f32.mrf.mxu0 }
 0x25c   : > { %v2351_v39 = vpop.f32.mrf.mxu3  ;;  %v2263_v40 = vadd.f32 %v2262_v38, %v2174_v35  ;;  %v2175_v42 = vpop.f32.mrf.mxu1 }
 0x25d   : > { %v2176_v54 = vadd.f32 %v2175_v42, %v2086_v41 }
 0x25e   : > { %v2352_v43 = vadd.f32 %v2351_v39, %v2263_v40 }
 0x260   : > { %v2407_v47 = vadd.f32 %v2352_v43, %v1442_v44  ;;  %v1446_v44 = vld [vmem:[#allocation2 + $0xa0] sm:$0xff] }
 0x262   : > { %2439 = vst.msk [vmem:[#allocation2 + $0x80] sm:$0xff] %vm225_vm0, %v2407_v47 }
 0x263   : > { %v2264_v57 = vpop.f32.mrf.mxu2  ;;  %v2089_v62 = vpop.f32.mrf.mxu0 }
 0x264   : > { %v2353_v58 = vpop.f32.mrf.mxu3  ;;  %v2265_v61 = vadd.f32 %v2264_v57, %v2176_v54  ;;  %v2178_v63 = vpop.f32.mrf.mxu1 }
 0x265   : > { %v2179_v5 = vadd.f32 %v2178_v63, %v2089_v62 }
 0x266   : > { %v2354_v2 = vadd.f32 %v2353_v58, %v2265_v61  ;;  %3147 = vmatmul.bf16.gmra.mxu0 %v5803_v59  ;;  %v5835_v59 = vor.u32 %v6833_v46, %v5834_v45  ;;  %v5866_v45 = vld [vmem:[%s8171_s10 + $0xa0] sm:$0xf]  ;;  %v6841_v46 = vld [vmem:[%s8171_s10 + $0xac] sm:$0xf0] }
 0x267   : > { %3236 = vmatmul.bf16.gmra.mxu1 %v5807_v60  ;;  %v5839_v60 = vor.u32 %v6831_v48, %v5836_v49  ;;  %v6839_v48 = vld [vmem:[%s8171_s10 + $0xa4] sm:$0xf]  ;;  %v5868_v49 = vld [vmem:[%s8171_s10 + $0xb0] sm:$0xf0] }
 0x268   : > { %v2408_v4 = vadd.f32 %v2354_v2, %v1443_v3  ;;  %3325 = vmatmul.bf16.gmra.mxu2 %v5811_v0  ;;  %v5843_v0 = vor.u32 %v6834_v51, %v5842_v50  ;;  %v1447_v3 = vld [vmem:[#allocation2 + $0xa8] sm:$0xff]  ;;  %v6842_v51 = vld [vmem:[%s8171_s10 + $0xb4] sm:$0xf0] }
 0x269   : > { %3414 = vmatmul.bf16.gmra.mxu3 %v5815_v1  ;;  %v5847_v1 = vor.u32 %v6832_v52, %v5844_v53  ;;  %v5874_v50 = vld [vmem:[%s8171_s10 + $0xa8] sm:$0xf]  ;;  %v6840_v52 = vld [vmem:[%s8171_s10 + $0xac] sm:$0xf]  ;;  %v5876_v53 = vld [vmem:[%s8171_s10 + $0xb8] sm:$0xf0] }
 0x26a   : > { %2440 = vst.msk [vmem:[#allocation2 + $0x88] sm:$0xff] %vm225_vm0, %v2408_v4 }
 0x26b   : > { %v2267_v6 = vpop.f32.mrf.mxu2  ;;  %v2091_v9 = vpop.f32.mrf.mxu0 }
 0x26c   : > { %v2356_v7 = vpop.f32.mrf.mxu3  ;;  %v2268_v8 = vadd.f32 %v2267_v6, %v2179_v5  ;;  %v2180_v10 = vpop.f32.mrf.mxu1 }
 0x26d   : > { %v2181_v22 = vadd.f32 %v2180_v10, %v2091_v9 }
 0x26e   : > { %v2357_v11 = vadd.f32 %v2356_v7, %v2268_v8 }
 0x270   : > { %v2409_v15 = vadd.f32 %v2357_v11, %v1444_v12  ;;  %v1448_v12 = vld [vmem:[#allocation2 + $0xb0] sm:$0xff] }
 0x272   : > { %2441 = vst.msk [vmem:[#allocation2 + $0x90] sm:$0xff] %vm225_vm0, %v2409_v15 }
 0x273   : > { %v2269_v23 = vpop.f32.mrf.mxu2  ;;  %v2094_v28 = vpop.f32.mrf.mxu0 }
 0x274   : > { %v2358_v24 = vpop.f32.mrf.mxu3  ;;  %v2270_v27 = vadd.f32 %v2269_v23, %v2181_v22  ;;  %v2183_v29 = vpop.f32.mrf.mxu1 }
 0x275   : > { %v2184_v35 = vadd.f32 %v2183_v29, %v2094_v28 }
 0x276   : > { %v2359_v32 = vadd.f32 %v2358_v24, %v2270_v27  ;;  %3152 = vmatmul.bf16.gmra.mxu0 %v5819_v25  ;;  %v5851_v25 = vor.u32 %v6837_v14, %v5850_v13  ;;  %v5882_v13 = vld [vmem:[%s8171_s10 + $0xc0] sm:$0xf]  ;;  %v6845_v14 = vld [vmem:[%s8171_s10 + $0xcc] sm:$0xf0] }
 0x277   : > { %3241 = vmatmul.bf16.gmra.mxu1 %v5823_v26  ;;  %v5855_v26 = vor.u32 %v6835_v16, %v5852_v17  ;;  %v6843_v16 = vld [vmem:[%s8171_s10 + $0xc4] sm:$0xf]  ;;  %v5884_v17 = vld [vmem:[%s8171_s10 + $0xd0] sm:$0xf0] }
 0x278   : > { %v2410_v34 = vadd.f32 %v2359_v32, %v1445_v33  ;;  %3330 = vmatmul.bf16.gmra.mxu2 %v5827_v30  ;;  %v5859_v30 = vor.u32 %v6838_v19, %v5858_v18  ;;  %v1449_v33 = vld [vmem:[#allocation2 + $0xb8] sm:$0xff]  ;;  %v5890_v18 = vld [vmem:[%s8171_s10 + $0xc8] sm:$0xf] }
 0x279   : > { %3419 = vmatmul.bf16.gmra.mxu3 %v5831_v31  ;;  %v5863_v31 = vor.u32 %v6836_v20, %v5860_v21  ;;  %v6846_v19 = vld [vmem:[%s8171_s10 + $0xd4] sm:$0xf0]  ;;  %v6844_v20 = vld [vmem:[%s8171_s10 + $0xcc] sm:$0xf]  ;;  %v5892_v21 = vld [vmem:[%s8171_s10 + $0xd8] sm:$0xf0] }
 0x27a   : > { %2442 = vst.msk [vmem:[#allocation2 + $0x98] sm:$0xff] %vm225_vm0, %v2410_v34 }
 0x27b   : > { %v2272_v38 = vpop.f32.mrf.mxu2  ;;  %v2096_v41 = vpop.f32.mrf.mxu0 }
 0x27c   : > { %v2361_v39 = vpop.f32.mrf.mxu3  ;;  %v2273_v40 = vadd.f32 %v2272_v38, %v2184_v35  ;;  %v2185_v42 = vpop.f32.mrf.mxu1 }
 0x27d   : > { %v2186_v54 = vadd.f32 %v2185_v42, %v2096_v41 }
 0x27e   : > { %v2362_v43 = vadd.f32 %v2361_v39, %v2273_v40 }
 0x280   : > { %v2411_v47 = vadd.f32 %v2362_v43, %v1446_v44  ;;  %v1450_v44 = vld [vmem:[#allocation2 + $0xc0] sm:$0xff] }
 0x282   : > { %2443 = vst.msk [vmem:[#allocation2 + $0xa0] sm:$0xff] %vm225_vm0, %v2411_v47 }
 0x283   : > { %v2274_v57 = vpop.f32.mrf.mxu2  ;;  %v2099_v62 = vpop.f32.mrf.mxu0 }
 0x284   : > { %v2363_v58 = vpop.f32.mrf.mxu3  ;;  %v2275_v61 = vadd.f32 %v2274_v57, %v2186_v54  ;;  %v2188_v63 = vpop.f32.mrf.mxu1 }
 0x285   : > { %v2189_v5 = vadd.f32 %v2188_v63, %v2099_v62 }
 0x286   : > { %v2364_v2 = vadd.f32 %v2363_v58, %v2275_v61  ;;  %3157 = vmatmul.bf16.gmra.mxu0 %v5835_v59  ;;  %v5867_v59 = vor.u32 %v6841_v46, %v5866_v45  ;;  %v5898_v45 = vld [vmem:[%s8171_s10 + $0xe0] sm:$0xf]  ;;  %v6849_v46 = vld [vmem:[%s8171_s10 + $0xec] sm:$0xf0] }
 0x287   : > { %3246 = vmatmul.bf16.gmra.mxu1 %v5839_v60  ;;  %v5871_v60 = vor.u32 %v6839_v48, %v5868_v49  ;;  %v6847_v48 = vld [vmem:[%s8171_s10 + $0xe4] sm:$0xf]  ;;  %v5900_v49 = vld [vmem:[%s8171_s10 + $0xf0] sm:$0xf0] }
 0x288   : > { %v2412_v4 = vadd.f32 %v2364_v2, %v1447_v3  ;;  %3335 = vmatmul.bf16.gmra.mxu2 %v5843_v0  ;;  %v5875_v0 = vor.u32 %v6842_v51, %v5874_v50  ;;  %v1451_v3 = vld [vmem:[#allocation2 + $0xc8] sm:$0xff]  ;;  %v6850_v51 = vld [vmem:[%s8171_s10 + $0xf4] sm:$0xf0] }
 0x289   : > { %3424 = vmatmul.bf16.gmra.mxu3 %v5847_v1  ;;  %v5879_v1 = vor.u32 %v6840_v52, %v5876_v53  ;;  %v5906_v50 = vld [vmem:[%s8171_s10 + $0xe8] sm:$0xf]  ;;  %v6848_v52 = vld [vmem:[%s8171_s10 + $0xec] sm:$0xf]  ;;  %v5908_v53 = vld [vmem:[%s8171_s10 + $0xf8] sm:$0xf0] }
 0x28a   : > { %2444 = vst.msk [vmem:[#allocation2 + $0xa8] sm:$0xff] %vm225_vm0, %v2412_v4 }
 0x28b   : > { %v2277_v6 = vpop.f32.mrf.mxu2  ;;  %v2101_v9 = vpop.f32.mrf.mxu0 }
 0x28c   : > { %v2366_v7 = vpop.f32.mrf.mxu3  ;;  %v2278_v8 = vadd.f32 %v2277_v6, %v2189_v5  ;;  %v2190_v10 = vpop.f32.mrf.mxu1 }
 0x28d   : > { %v2191_v22 = vadd.f32 %v2190_v10, %v2101_v9 }
 0x28e   : > { %v2367_v11 = vadd.f32 %v2366_v7, %v2278_v8 }
 0x290   : > { %v2413_v15 = vadd.f32 %v2367_v11, %v1448_v12  ;;  %v1452_v12 = vld [vmem:[#allocation2 + $0xd0] sm:$0xff] }
 0x292   : > { %2445 = vst.msk [vmem:[#allocation2 + $0xb0] sm:$0xff] %vm225_vm0, %v2413_v15 }
 0x293   : > { %v2279_v23 = vpop.f32.mrf.mxu2  ;;  %v2104_v28 = vpop.f32.mrf.mxu0 }
 0x294   : > { %v2368_v24 = vpop.f32.mrf.mxu3  ;;  %v2280_v27 = vadd.f32 %v2279_v23, %v2191_v22  ;;  %v2193_v29 = vpop.f32.mrf.mxu1 }
 0x295   : > { %v2194_v35 = vadd.f32 %v2193_v29, %v2104_v28 }
 0x296   : > { %v2369_v32 = vadd.f32 %v2368_v24, %v2280_v27  ;;  %3162 = vmatmul.bf16.gmra.mxu0 %v5851_v25  ;;  %v5883_v25 = vor.u32 %v6845_v14, %v5882_v13  ;;  %v5914_v13 = vld [vmem:[%s8171_s10 + $0x100] sm:$0xf]  ;;  %v6853_v14 = vld [vmem:[%s8171_s10 + $0x10c] sm:$0xf0] }
 0x297   : > { %3251 = vmatmul.bf16.gmra.mxu1 %v5855_v26  ;;  %v5887_v26 = vor.u32 %v6843_v16, %v5884_v17  ;;  %v6851_v16 = vld [vmem:[%s8171_s10 + $0x104] sm:$0xf]  ;;  %v5916_v17 = vld [vmem:[%s8171_s10 + $0x110] sm:$0xf0] }
 0x298   : > { %v2414_v34 = vadd.f32 %v2369_v32, %v1449_v33  ;;  %3340 = vmatmul.bf16.gmra.mxu2 %v5859_v30  ;;  %v5891_v30 = vor.u32 %v6846_v19, %v5890_v18  ;;  %v1453_v33 = vld [vmem:[#allocation2 + $0xd8] sm:$0xff]  ;;  %v5922_v18 = vld [vmem:[%s8171_s10 + $0x108] sm:$0xf] }
 0x299   : > { %3429 = vmatmul.bf16.gmra.mxu3 %v5863_v31  ;;  %v5895_v31 = vor.u32 %v6844_v20, %v5892_v21  ;;  %v6854_v19 = vld [vmem:[%s8171_s10 + $0x114] sm:$0xf0]  ;;  %v6852_v20 = vld [vmem:[%s8171_s10 + $0x10c] sm:$0xf]  ;;  %v5924_v21 = vld [vmem:[%s8171_s10 + $0x118] sm:$0xf0] }
 0x29a   : > { %2446 = vst.msk [vmem:[#allocation2 + $0xb8] sm:$0xff] %vm225_vm0, %v2414_v34 }
 0x29b   : > { %v2282_v38 = vpop.f32.mrf.mxu2  ;;  %v2106_v41 = vpop.f32.mrf.mxu0 }
 0x29c   : > { %v2371_v39 = vpop.f32.mrf.mxu3  ;;  %v2283_v40 = vadd.f32 %v2282_v38, %v2194_v35  ;;  %v2195_v42 = vpop.f32.mrf.mxu1 }
 0x29d   : > { %v2196_v54 = vadd.f32 %v2195_v42, %v2106_v41 }
 0x29e   : > { %v2372_v43 = vadd.f32 %v2371_v39, %v2283_v40 }
 0x2a0   : > { %v2415_v47 = vadd.f32 %v2372_v43, %v1450_v44  ;;  %v1454_v44 = vld [vmem:[#allocation2 + $0xe0] sm:$0xff] }
 0x2a2   : > { %2447 = vst.msk [vmem:[#allocation2 + $0xc0] sm:$0xff] %vm225_vm0, %v2415_v47 }
 0x2a3   : > { %v2284_v57 = vpop.f32.mrf.mxu2  ;;  %v2109_v62 = vpop.f32.mrf.mxu0 }
 0x2a4   : > { %v2373_v58 = vpop.f32.mrf.mxu3  ;;  %v2285_v61 = vadd.f32 %v2284_v57, %v2196_v54  ;;  %v2198_v63 = vpop.f32.mrf.mxu1 }
 0x2a5   : > { %v2199_v5 = vadd.f32 %v2198_v63, %v2109_v62 }
 0x2a6   : > { %v2374_v2 = vadd.f32 %v2373_v58, %v2285_v61  ;;  %3167 = vmatmul.bf16.gmra.mxu0 %v5867_v59  ;;  %v5899_v59 = vor.u32 %v6849_v46, %v5898_v45  ;;  %v5930_v45 = vld [vmem:[%s8171_s10 + $0x120] sm:$0xf]  ;;  %v6857_v46 = vld [vmem:[%s8171_s10 + $0x12c] sm:$0xf0] }
 0x2a7   : > { %3256 = vmatmul.bf16.gmra.mxu1 %v5871_v60  ;;  %v5903_v60 = vor.u32 %v6847_v48, %v5900_v49  ;;  %v6855_v48 = vld [vmem:[%s8171_s10 + $0x124] sm:$0xf]  ;;  %v5932_v49 = vld [vmem:[%s8171_s10 + $0x130] sm:$0xf0] }
 0x2a8   : > { %v2416_v4 = vadd.f32 %v2374_v2, %v1451_v3  ;;  %3345 = vmatmul.bf16.gmra.mxu2 %v5875_v0  ;;  %v5907_v0 = vor.u32 %v6850_v51, %v5906_v50  ;;  %v1455_v3 = vld [vmem:[#allocation2 + $0xe8] sm:$0xff]  ;;  %v6858_v51 = vld [vmem:[%s8171_s10 + $0x134] sm:$0xf0] }
 0x2a9   : > { %3434 = vmatmul.bf16.gmra.mxu3 %v5879_v1  ;;  %v5911_v1 = vor.u32 %v6848_v52, %v5908_v53  ;;  %v5938_v50 = vld [vmem:[%s8171_s10 + $0x128] sm:$0xf]  ;;  %v6856_v52 = vld [vmem:[%s8171_s10 + $0x12c] sm:$0xf]  ;;  %v5940_v53 = vld [vmem:[%s8171_s10 + $0x138] sm:$0xf0] }
 0x2aa   : > { %2448 = vst.msk [vmem:[#allocation2 + $0xc8] sm:$0xff] %vm225_vm0, %v2416_v4 }
 0x2ab   : > { %v2287_v6 = vpop.f32.mrf.mxu2  ;;  %v2111_v9 = vpop.f32.mrf.mxu0 }
 0x2ac   : > { %v2376_v7 = vpop.f32.mrf.mxu3  ;;  %v2288_v8 = vadd.f32 %v2287_v6, %v2199_v5  ;;  %v2200_v10 = vpop.f32.mrf.mxu1 }
 0x2ad   : > { %v2201_v22 = vadd.f32 %v2200_v10, %v2111_v9 }
 0x2ae   : > { %v2377_v11 = vadd.f32 %v2376_v7, %v2288_v8 }
 0x2b0   : > { %v2417_v15 = vadd.f32 %v2377_v11, %v1452_v12  ;;  %v1456_v12 = vld [vmem:[#allocation2 + $0xf0] sm:$0xff] }
 0x2b2   : > { %2449 = vst.msk [vmem:[#allocation2 + $0xd0] sm:$0xff] %vm225_vm0, %v2417_v15 }
 0x2b3   : > { %v2289_v23 = vpop.f32.mrf.mxu2  ;;  %v2114_v28 = vpop.f32.mrf.mxu0 }
 0x2b4   : > { %v2378_v24 = vpop.f32.mrf.mxu3  ;;  %v2290_v27 = vadd.f32 %v2289_v23, %v2201_v22  ;;  %v2203_v29 = vpop.f32.mrf.mxu1 }
 0x2b5   : > { %v2204_v35 = vadd.f32 %v2203_v29, %v2114_v28 }
 0x2b6   : > { %v2379_v32 = vadd.f32 %v2378_v24, %v2290_v27  ;;  %3172 = vmatmul.bf16.gmra.mxu0 %v5883_v25  ;;  %v5915_v25 = vor.u32 %v6853_v14, %v5914_v13  ;;  %v5946_v13 = vld [vmem:[%s8171_s10 + $0x140] sm:$0xf]  ;;  %v6861_v14 = vld [vmem:[%s8171_s10 + $0x14c] sm:$0xf0] }
 0x2b7   : > { %3261 = vmatmul.bf16.gmra.mxu1 %v5887_v26  ;;  %v5919_v26 = vor.u32 %v6851_v16, %v5916_v17  ;;  %v6859_v16 = vld [vmem:[%s8171_s10 + $0x144] sm:$0xf]  ;;  %v5948_v17 = vld [vmem:[%s8171_s10 + $0x150] sm:$0xf0] }
 0x2b8   : > { %v2418_v34 = vadd.f32 %v2379_v32, %v1453_v33  ;;  %3350 = vmatmul.bf16.gmra.mxu2 %v5891_v30  ;;  %v5923_v30 = vor.u32 %v6854_v19, %v5922_v18  ;;  %v1457_v33 = vld [vmem:[#allocation2 + $0xf8] sm:$0xff]  ;;  %v5954_v18 = vld [vmem:[%s8171_s10 + $0x148] sm:$0xf] }
 0x2b9   : > { %3439 = vmatmul.bf16.gmra.mxu3 %v5895_v31  ;;  %v5927_v31 = vor.u32 %v6852_v20, %v5924_v21  ;;  %v6862_v19 = vld [vmem:[%s8171_s10 + $0x154] sm:$0xf0]  ;;  %v6860_v20 = vld [vmem:[%s8171_s10 + $0x14c] sm:$0xf]  ;;  %v5956_v21 = vld [vmem:[%s8171_s10 + $0x158] sm:$0xf0] }
 0x2ba   : > { %2450 = vst.msk [vmem:[#allocation2 + $0xd8] sm:$0xff] %vm225_vm0, %v2418_v34 }
 0x2bb   : > { %v2292_v38 = vpop.f32.mrf.mxu2  ;;  %v2116_v41 = vpop.f32.mrf.mxu0 }
 0x2bc   : > { %v2381_v39 = vpop.f32.mrf.mxu3  ;;  %v2293_v40 = vadd.f32 %v2292_v38, %v2204_v35  ;;  %v2205_v42 = vpop.f32.mrf.mxu1 }
 0x2bd   : > { %v2206_v54 = vadd.f32 %v2205_v42, %v2116_v41 }
 0x2be   : > { %v2382_v43 = vadd.f32 %v2381_v39, %v2293_v40 }
 0x2c0   : > { %v2419_v47 = vadd.f32 %v2382_v43, %v1454_v44  ;;  %v2525_v44 = vld [vmem:[#allocation2] sm:$0xff] }
 0x2c2   : > { %2451 = vst.msk [vmem:[#allocation2 + $0xe0] sm:$0xff] %vm225_vm0, %v2419_v47 }
 0x2c3   : > { %v2294_v57 = vpop.f32.mrf.mxu2  ;;  %v2119_v62 = vpop.f32.mrf.mxu0 }
 0x2c4   : > { %v2383_v58 = vpop.f32.mrf.mxu3  ;;  %v2295_v61 = vadd.f32 %v2294_v57, %v2206_v54  ;;  %v2208_v63 = vpop.f32.mrf.mxu1 }
 0x2c5   : > { %v2209_v5 = vadd.f32 %v2208_v63, %v2119_v62 }
 0x2c6   : > { %v2384_v2 = vadd.f32 %v2383_v58, %v2295_v61  ;;  %3177 = vmatmul.bf16.gmra.mxu0 %v5899_v59  ;;  %v5931_v59 = vor.u32 %v6857_v46, %v5930_v45  ;;  %v5962_v45 = vld [vmem:[%s8171_s10 + $0x160] sm:$0xf]  ;;  %v6865_v46 = vld [vmem:[%s8171_s10 + $0x16c] sm:$0xf0] }
 0x2c7   : > { %3266 = vmatmul.bf16.gmra.mxu1 %v5903_v60  ;;  %v5935_v60 = vor.u32 %v6855_v48, %v5932_v49  ;;  %v6863_v48 = vld [vmem:[%s8171_s10 + $0x164] sm:$0xf]  ;;  %v5964_v49 = vld [vmem:[%s8171_s10 + $0x170] sm:$0xf0] }
 0x2c8   : > { %v2420_v4 = vadd.f32 %v2384_v2, %v1455_v3  ;;  %3355 = vmatmul.bf16.gmra.mxu2 %v5907_v0  ;;  %v5939_v0 = vor.u32 %v6858_v51, %v5938_v50  ;;  %v2526_v3 = vld [vmem:[#allocation2 + $0x8] sm:$0xff]  ;;  %v6866_v51 = vld [vmem:[%s8171_s10 + $0x174] sm:$0xf0] }
 0x2c9   : > { %3444 = vmatmul.bf16.gmra.mxu3 %v5911_v1  ;;  %v5943_v1 = vor.u32 %v6856_v52, %v5940_v53  ;;  %v5970_v50 = vld [vmem:[%s8171_s10 + $0x168] sm:$0xf]  ;;  %v6864_v52 = vld [vmem:[%s8171_s10 + $0x16c] sm:$0xf]  ;;  %v5972_v53 = vld [vmem:[%s8171_s10 + $0x178] sm:$0xf0] }
 0x2ca   : > { %2452 = vst.msk [vmem:[#allocation2 + $0xe8] sm:$0xff] %vm225_vm0, %v2420_v4 }
 0x2cb   : > { %v2297_v6 = vpop.f32.mrf.mxu2  ;;  %v2121_v9 = vpop.f32.mrf.mxu0 }
 0x2cc   : > { %v2386_v7 = vpop.f32.mrf.mxu3  ;;  %v2298_v8 = vadd.f32 %v2297_v6, %v2209_v5  ;;  %v2210_v10 = vpop.f32.mrf.mxu1 }
 0x2cd   : > { %v2211_v22 = vadd.f32 %v2210_v10, %v2121_v9 }
 0x2ce   : > { %v2387_v11 = vadd.f32 %v2386_v7, %v2298_v8 }
 0x2d0   : > { %v2421_v15 = vadd.f32 %v2387_v11, %v1456_v12  ;;  %v2527_v12 = vld [vmem:[#allocation2 + $0x10] sm:$0xff] }
 0x2d2   : > { %2453 = vst.msk [vmem:[#allocation2 + $0xf0] sm:$0xff] %vm225_vm0, %v2421_v15 }
 0x2d3   : > { %v2299_v23 = vpop.f32.mrf.mxu2  ;;  %v3143_v28 = vpop.f32.mrf.mxu0 }
 0x2d4   : > { %v2388_v24 = vpop.f32.mrf.mxu3  ;;  %v2300_v27 = vadd.f32 %v2299_v23, %v2211_v22  ;;  %v3232_v29 = vpop.f32.mrf.mxu1 }
 0x2d5   : > { %v3233_v35 = vadd.f32 %v3232_v29, %v3143_v28 }
 0x2d6   : > { %v2389_v32 = vadd.f32 %v2388_v24, %v2300_v27  ;;  %3182 = vmatmul.bf16.gmra.mxu0 %v5915_v25  ;;  %v5947_v25 = vor.u32 %v6861_v14, %v5946_v13  ;;  %v5978_v13 = vld [vmem:[%s8171_s10 + $0x180] sm:$0xf]  ;;  %v6869_v14 = vld [vmem:[%s8171_s10 + $0x18c] sm:$0xf0] }
 0x2d7   : > { %3271 = vmatmul.bf16.gmra.mxu1 %v5919_v26  ;;  %v5951_v26 = vor.u32 %v6859_v16, %v5948_v17  ;;  %v6867_v16 = vld [vmem:[%s8171_s10 + $0x184] sm:$0xf]  ;;  %v5980_v17 = vld [vmem:[%s8171_s10 + $0x190] sm:$0xf0] }
 0x2d8   : > { %v2422_v34 = vadd.f32 %v2389_v32, %v1457_v33  ;;  %3360 = vmatmul.bf16.gmra.mxu2 %v5923_v30  ;;  %v5955_v30 = vor.u32 %v6862_v19, %v5954_v18  ;;  %v2528_v33 = vld [vmem:[#allocation2 + $0x18] sm:$0xff]  ;;  %v5986_v18 = vld [vmem:[%s8171_s10 + $0x188] sm:$0xf] }
 0x2d9   : > { %3449 = vmatmul.bf16.gmra.mxu3 %v5927_v31  ;;  %v5959_v31 = vor.u32 %v6860_v20, %v5956_v21  ;;  %v6870_v19 = vld [vmem:[%s8171_s10 + $0x194] sm:$0xf0]  ;;  %v6868_v20 = vld [vmem:[%s8171_s10 + $0x18c] sm:$0xf]  ;;  %v5988_v21 = vld [vmem:[%s8171_s10 + $0x198] sm:$0xf0] }
 0x2da   : > { %2454 = vst.msk [vmem:[#allocation2 + $0xf8] sm:$0xff] %vm225_vm0, %v2422_v34 }
 0x2db   : > { %v3321_v38 = vpop.f32.mrf.mxu2  ;;  %v3145_v41 = vpop.f32.mrf.mxu0 }
 0x2dc   : > { %v3410_v39 = vpop.f32.mrf.mxu3  ;;  %v3322_v40 = vadd.f32 %v3321_v38, %v3233_v35  ;;  %v3234_v42 = vpop.f32.mrf.mxu1 }
 0x2dd   : > { %v3235_v54 = vadd.f32 %v3234_v42, %v3145_v41 }
 0x2de   : > { %v3411_v43 = vadd.f32 %v3410_v39, %v3322_v40 }
 0x2e0   : > { %v3490_v47 = vadd.f32 %v3411_v43, %v2525_v44  ;;  %v2529_v44 = vld [vmem:[#allocation2 + $0x20] sm:$0xff] }
 0x2e2   : > { %3522 = vst.msk [vmem:[#allocation2] sm:$0xff] %vm225_vm0, %v3490_v47 }
 0x2e3   : > { %v3323_v57 = vpop.f32.mrf.mxu2  ;;  %v3148_v62 = vpop.f32.mrf.mxu0 }
 0x2e4   : > { %v3412_v58 = vpop.f32.mrf.mxu3  ;;  %v3324_v61 = vadd.f32 %v3323_v57, %v3235_v54  ;;  %v3237_v63 = vpop.f32.mrf.mxu1 }
 0x2e5   : > { %v3238_v5 = vadd.f32 %v3237_v63, %v3148_v62 }
 0x2e6   : > { %v3413_v2 = vadd.f32 %v3412_v58, %v3324_v61  ;;  %3187 = vmatmul.bf16.gmra.mxu0 %v5931_v59  ;;  %v5963_v59 = vor.u32 %v6865_v46, %v5962_v45  ;;  %v5994_v45 = vld [vmem:[%s8171_s10 + $0x1a0] sm:$0xf]  ;;  %v6873_v46 = vld [vmem:[%s8171_s10 + $0x1ac] sm:$0xf0] }
 0x2e7   : > { %3276 = vmatmul.bf16.gmra.mxu1 %v5935_v60  ;;  %v5967_v60 = vor.u32 %v6863_v48, %v5964_v49  ;;  %v6871_v48 = vld [vmem:[%s8171_s10 + $0x1a4] sm:$0xf]  ;;  %v5996_v49 = vld [vmem:[%s8171_s10 + $0x1b0] sm:$0xf0] }
 0x2e8   : > { %v3491_v4 = vadd.f32 %v3413_v2, %v2526_v3  ;;  %3365 = vmatmul.bf16.gmra.mxu2 %v5939_v0  ;;  %v5971_v0 = vor.u32 %v6866_v51, %v5970_v50  ;;  %v2530_v3 = vld [vmem:[#allocation2 + $0x28] sm:$0xff]  ;;  %v6874_v51 = vld [vmem:[%s8171_s10 + $0x1b4] sm:$0xf0] }
 0x2e9   : > { %3454 = vmatmul.bf16.gmra.mxu3 %v5943_v1  ;;  %v5975_v1 = vor.u32 %v6864_v52, %v5972_v53  ;;  %v6002_v50 = vld [vmem:[%s8171_s10 + $0x1a8] sm:$0xf]  ;;  %v6872_v52 = vld [vmem:[%s8171_s10 + $0x1ac] sm:$0xf]  ;;  %v6004_v53 = vld [vmem:[%s8171_s10 + $0x1b8] sm:$0xf0] }
 0x2ea   : > { %3523 = vst.msk [vmem:[#allocation2 + $0x8] sm:$0xff] %vm225_vm0, %v3491_v4 }
 0x2eb   : > { %v3326_v6 = vpop.f32.mrf.mxu2  ;;  %v3150_v9 = vpop.f32.mrf.mxu0 }
 0x2ec   : > { %v3415_v7 = vpop.f32.mrf.mxu3  ;;  %v3327_v8 = vadd.f32 %v3326_v6, %v3238_v5  ;;  %v3239_v10 = vpop.f32.mrf.mxu1 }
 0x2ed   : > { %v3240_v22 = vadd.f32 %v3239_v10, %v3150_v9 }
 0x2ee   : > { %v3416_v11 = vadd.f32 %v3415_v7, %v3327_v8 }
 0x2f0   : > { %v3492_v15 = vadd.f32 %v3416_v11, %v2527_v12  ;;  %v2531_v12 = vld [vmem:[#allocation2 + $0x30] sm:$0xff] }
 0x2f2   : > { %3524 = vst.msk [vmem:[#allocation2 + $0x10] sm:$0xff] %vm225_vm0, %v3492_v15 }
 0x2f3   : > { %v3328_v23 = vpop.f32.mrf.mxu2  ;;  %v3153_v28 = vpop.f32.mrf.mxu0 }
 0x2f4   : > { %v3417_v24 = vpop.f32.mrf.mxu3  ;;  %v3329_v27 = vadd.f32 %v3328_v23, %v3240_v22  ;;  %v3242_v29 = vpop.f32.mrf.mxu1 }
 0x2f5   : > { %v3243_v35 = vadd.f32 %v3242_v29, %v3153_v28 }
 0x2f6   : > { %v3418_v32 = vadd.f32 %v3417_v24, %v3329_v27  ;;  %3192 = vmatmul.bf16.gmra.mxu0 %v5947_v25  ;;  %v5979_v25 = vor.u32 %v6869_v14, %v5978_v13  ;;  %v6010_v13 = vld [vmem:[%s8171_s10 + $0x1c0] sm:$0xf]  ;;  %v6877_v14 = vld [vmem:[%s8171_s10 + $0x1cc] sm:$0xf0] }
 0x2f7   : > { %3281 = vmatmul.bf16.gmra.mxu1 %v5951_v26  ;;  %v5983_v26 = vor.u32 %v6867_v16, %v5980_v17  ;;  %v6875_v16 = vld [vmem:[%s8171_s10 + $0x1c4] sm:$0xf]  ;;  %v6012_v17 = vld [vmem:[%s8171_s10 + $0x1d0] sm:$0xf0] }
 0x2f8   : > { %v3493_v34 = vadd.f32 %v3418_v32, %v2528_v33  ;;  %3370 = vmatmul.bf16.gmra.mxu2 %v5955_v30  ;;  %v5987_v30 = vor.u32 %v6870_v19, %v5986_v18  ;;  %v2532_v33 = vld [vmem:[#allocation2 + $0x38] sm:$0xff]  ;;  %v6018_v18 = vld [vmem:[%s8171_s10 + $0x1c8] sm:$0xf] }
 0x2f9   : > { %3459 = vmatmul.bf16.gmra.mxu3 %v5959_v31  ;;  %v5991_v31 = vor.u32 %v6868_v20, %v5988_v21  ;;  %v6878_v19 = vld [vmem:[%s8171_s10 + $0x1d4] sm:$0xf0]  ;;  %v6876_v20 = vld [vmem:[%s8171_s10 + $0x1cc] sm:$0xf]  ;;  %v6020_v21 = vld [vmem:[%s8171_s10 + $0x1d8] sm:$0xf0] }
 0x2fa   : > { %3525 = vst.msk [vmem:[#allocation2 + $0x18] sm:$0xff] %vm225_vm0, %v3493_v34 }
 0x2fb   : > { %v3331_v38 = vpop.f32.mrf.mxu2  ;;  %v3155_v41 = vpop.f32.mrf.mxu0 }
 0x2fc   : > { %v3420_v39 = vpop.f32.mrf.mxu3  ;;  %v3332_v40 = vadd.f32 %v3331_v38, %v3243_v35  ;;  %v3244_v42 = vpop.f32.mrf.mxu1 }
 0x2fd   : > { %v3245_v54 = vadd.f32 %v3244_v42, %v3155_v41 }
 0x2fe   : > { %v3421_v43 = vadd.f32 %v3420_v39, %v3332_v40 }
 0x300   : > { %v3494_v47 = vadd.f32 %v3421_v43, %v2529_v44  ;;  %v2533_v44 = vld [vmem:[#allocation2 + $0x40] sm:$0xff] }
 0x302   : > { %3526 = vst.msk [vmem:[#allocation2 + $0x20] sm:$0xff] %vm225_vm0, %v3494_v47 }
 0x303   : > { %v3333_v57 = vpop.f32.mrf.mxu2  ;;  %v3158_v62 = vpop.f32.mrf.mxu0 }
 0x304   : > { %v3422_v58 = vpop.f32.mrf.mxu3  ;;  %v3334_v61 = vadd.f32 %v3333_v57, %v3245_v54  ;;  %v3247_v63 = vpop.f32.mrf.mxu1 }
 0x305   : > { %v3248_v5 = vadd.f32 %v3247_v63, %v3158_v62 }
 0x306   : > { %v3423_v2 = vadd.f32 %v3422_v58, %v3334_v61  ;;  %3197 = vmatmul.bf16.gmra.mxu0 %v5963_v59  ;;  %v5995_v59 = vor.u32 %v6873_v46, %v5994_v45  ;;  %v6879_v46 = vld [vmem:[%s8171_s10 + $0x1e4] sm:$0xf] }
 0x307   : > { %3286 = vmatmul.bf16.gmra.mxu1 %v5967_v60  ;;  %v5999_v60 = vor.u32 %v6871_v48, %v5996_v49  ;;  %v6034_v48 = vld [vmem:[%s8171_s10 + $0x1e8] sm:$0xf]  ;;  %v6882_v49 = vld [vmem:[%s8171_s10 + $0x1f4] sm:$0xf0] }
 0x308   : > { %v3495_v4 = vadd.f32 %v3423_v2, %v2530_v3  ;;  %3375 = vmatmul.bf16.gmra.mxu2 %v5971_v0  ;;  %v6003_v0 = vor.u32 %v6874_v51, %v6002_v50  ;;  %v2534_v3 = vld [vmem:[#allocation2 + $0x48] sm:$0xff]  ;;  %v6036_v51 = vld [vmem:[%s8171_s10 + $0x1f8] sm:$0xf0] }
 0x309   : > { %3464 = vmatmul.bf16.gmra.mxu3 %v5975_v1  ;;  %v6007_v1 = vor.u32 %v6872_v52, %v6004_v53  ;;  %v6880_v50 = vld [vmem:[%s8171_s10 + $0x1ec] sm:$0xf] }
 0x30a   : > { %3527 = vst.msk [vmem:[#allocation2 + $0x28] sm:$0xff] %vm225_vm0, %v3495_v4 }
 0x30b   : > { %v3336_v6 = vpop.f32.mrf.mxu2  ;;  %v3160_v9 = vpop.f32.mrf.mxu0 }
 0x30c   : > { %v3425_v7 = vpop.f32.mrf.mxu3  ;;  %v3337_v8 = vadd.f32 %v3336_v6, %v3248_v5  ;;  %v3249_v10 = vpop.f32.mrf.mxu1 }
 0x30d   : > { %v3250_v22 = vadd.f32 %v3249_v10, %v3160_v9 }
 0x30e   : > { %v3426_v11 = vadd.f32 %v3425_v7, %v3337_v8 }
 0x310   : > { %v3496_v15 = vadd.f32 %v3426_v11, %v2531_v12  ;;  %v2535_v12 = vld [vmem:[#allocation2 + $0x50] sm:$0xff] }
 0x312   : > { %3528 = vst.msk [vmem:[#allocation2 + $0x30] sm:$0xff] %vm225_vm0, %v3496_v15 }
 0x313   : > { %v3338_v23 = vpop.f32.mrf.mxu2  ;;  %v3163_v28 = vpop.f32.mrf.mxu0 }
 0x314   : > { %v3427_v24 = vpop.f32.mrf.mxu3  ;;  %v3339_v27 = vadd.f32 %v3338_v23, %v3250_v22  ;;  %v3252_v29 = vpop.f32.mrf.mxu1 }
 0x315   : > { %v3253_v35 = vadd.f32 %v3252_v29, %v3163_v28 }
 0x316   : > { %v3428_v32 = vadd.f32 %v3427_v24, %v3339_v27  ;;  %3202 = vmatmul.bf16.gmra.mxu0 %v5979_v25  ;;  %v6011_v25 = vor.u32 %v6877_v14, %v6010_v13 }
 0x317   : > { %3291 = vmatmul.bf16.gmra.mxu1 %v5983_v26  ;;  %v6015_v26 = vor.u32 %v6875_v16, %v6012_v17 }
 0x318   : > { %v3497_v34 = vadd.f32 %v3428_v32, %v2532_v33  ;;  %3380 = vmatmul.bf16.gmra.mxu2 %v5987_v30  ;;  %v6019_v30 = vor.u32 %v6878_v19, %v6018_v18  ;;  %v2536_v33 = vld [vmem:[#allocation2 + $0x58] sm:$0xff] }
 0x319   : > { %3469 = vmatmul.bf16.gmra.mxu3 %v5991_v31  ;;  %v6023_v31 = vor.u32 %v6876_v20, %v6020_v21 }
 0x31a   : > { %3529 = vst.msk [vmem:[#allocation2 + $0x38] sm:$0xff] %vm225_vm0, %v3497_v34 }
 0x31b   : > { %v3341_v38 = vpop.f32.mrf.mxu2  ;;  %v3165_v41 = vpop.f32.mrf.mxu0 }
 0x31c   : > { %v3430_v39 = vpop.f32.mrf.mxu3  ;;  %v3342_v40 = vadd.f32 %v3341_v38, %v3253_v35  ;;  %v3254_v42 = vpop.f32.mrf.mxu1 }
 0x31d   : > { %v3255_v54 = vadd.f32 %v3254_v42, %v3165_v41  ;;  %v2537_v42 = vld [vmem:[#allocation2 + $0x60] sm:$0xff] }
 0x31e   : > { %v3431_v43 = vadd.f32 %v3430_v39, %v3342_v40 }
 0x320   : > { %v3498_v47 = vadd.f32 %v3431_v43, %v2533_v44  ;;  %v6026_v43 = vld [vmem:[%s8171_s10 + $0x1e0] sm:$0xf]  ;;  %v6881_v44 = vld [vmem:[%s8171_s10 + $0x1ec] sm:$0xf0] }
 0x321   : > { %v6027_v55 = vor.u32 %v6881_v44, %v6026_v43 }
 0x322   : > { %3530 = vst.msk [vmem:[#allocation2 + $0x40] sm:$0xff] %vm225_vm0, %v3498_v47  ;;  %v6028_v47 = vld [vmem:[%s8171_s10 + $0x1f0] sm:$0xf0]  ;;  %s8419_s10 = scalar_lea.vmem %s7480_s27, %s6915_s9 [#allocation3]  ;;  %s217_s27 = sand.u32 1, %s7281_s13  }
 0x323   : > { %v3343_v57 = vpop.f32.mrf.mxu2  ;;  %v3168_v62 = vpop.f32.mrf.mxu0  ;;  %v6031_v56 = vor.u32 %v6879_v46, %v6028_v47  ;;  %v6238_v13 = vld [vmem:[%s8419_s10 + $0x10] sm:$0xf0]  ;;  %v6244_v14 = vld [vmem:[%s8419_s10 + $0x8] sm:$0xf]  ;;  %v6917_v16 = vld [vmem:[%s8419_s10 + $0xc] sm:$0xf] }
 0x324   : > { %v3432_v58 = vpop.f32.mrf.mxu3  ;;  %v3344_v61 = vadd.f32 %v3343_v57, %v3255_v54  ;;  %v3257_v63 = vpop.f32.mrf.mxu1  ;;  %v6246_v17 = vld [vmem:[%s8419_s10 + $0x18] sm:$0xf0]  ;;  %v6254_v43 = vld [vmem:[%s8419_s10 + $0x30] sm:$0xf0]  ;;  %v6260_v44 = vld [vmem:[%s8419_s10 + $0x28] sm:$0xf] }
 0x325   : > { %v3258_v5 = vadd.f32 %v3257_v63, %v3168_v62  ;;  %v2538_v63 = vld [vmem:[#allocation2 + $0x68] sm:$0xff]  ;;  %v6262_v47 = vld [vmem:[%s8419_s10 + $0x38] sm:$0xf0]  ;;  %s4880_s24 = sshll.u32 %s217_s27, 4  ;;  %s4752_s15 = scalar_lea.sflag [#allocation5], %s217_s27 }
 0x326   : > { %v3433_v2 = vadd.f32 %v3432_v58, %v3344_v61  ;;  %3207 = vmatmul.bf16.gmra.mxu0 %v5995_v59  ;;  %v6039_v61 = vor.u32 %v6880_v50, %v6036_v51  ;;  %v6921_v46 = vld [vmem:[%s8419_s10 + $0x2c] sm:$0xf]  ;;  %s219_s4 = scalar_lea.vmem [#allocation8], %s4880_s24  ;;  %s7207_s9 = scalar_lea.hbm %s7206_s29, 16 }
 0x327   : > { %3296 = vmatmul.bf16.gmra.mxu1 %v5999_v60  ;;  %v6035_v60 = vor.u32 %v6882_v49, %v6034_v48  ;;  %s4767_s8 = sshll.u32 %s219_s4, 4  ;;  %p7208_p3 = scmp.ne.s32.totalorder %s7206_s29, %s7207_s9  ;;  %s4768_s8 = int_to_ptr.vmem [resolvable:$true] %s4767_s8 }
 0x328   : > { %v3499_v4 = vadd.f32 %v3433_v2, %v2534_v3  ;;  %3385 = vmatmul.bf16.gmra.mxu2 %v6003_v0 }
 0x329   : > { %3474 = vmatmul.bf16.gmra.mxu3 %v6007_v1  ;;  %p7209_p6 = pnand %p7208_p3, %p7421_p10 }
 0x32a   : > { %3531 = vst.msk [vmem:[#allocation2 + $0x48] sm:$0xff] %vm225_vm0, %v3499_v4 }
 0x32b   : > { %v3346_v6 = vpop.f32.mrf.mxu2  ;;  %v3170_v9 = vpop.f32.mrf.mxu0  ;;  %p7210_p13 = pneg %p7209_p6 }
 0x32c   : > { %v3435_v7 = vpop.f32.mrf.mxu3  ;;  %v3347_v8 = vadd.f32 %v3346_v6, %v3258_v5  ;;  %v3259_v10 = vpop.f32.mrf.mxu1 }
 0x32d   : > { %v3260_v22 = vadd.f32 %v3259_v10, %v3170_v9  ;;  %v6236_v9 = vld [vmem:[%s8419_s10] sm:$0xf]  ;;  %v6918_v10 = vld [vmem:[%s8419_s10 + $0xc] sm:$0xf0] }
 0x32e   : > { %v3436_v11 = vadd.f32 %v3435_v7, %v3347_v8  ;;  %v2539_v8 = vld [vmem:[#allocation2 + $0x70] sm:$0xff]  ;;  %v6237_v21 = vor.u32 %v6918_v10, %v6236_v9  ;;  %v6276_v10 = vld [vmem:[%s8419_s10 + $0x48] sm:$0xf] }
 0x32f   : > { %v6270_v9 = vld [vmem:[%s8419_s10 + $0x50] sm:$0xf0] }
 0x330   : > { %v3500_v15 = vadd.f32 %v3436_v11, %v2535_v12  ;;  %v6916_v12 = vld [vmem:[%s8419_s10 + $0x4] sm:$0xf] }
 0x332   : > { %3532 = vst.msk [vmem:[#allocation2 + $0x50] sm:$0xff] %vm225_vm0, %v3500_v15  ;;  %v6919_v15 = vld [vmem:[%s8419_s10 + $0x14] sm:$0xf0] }
 0x333   : > { %v3348_v23 = vpop.f32.mrf.mxu2  ;;  %v3173_v28 = vpop.f32.mrf.mxu0 }
 0x334   : > { %v3437_v24 = vpop.f32.mrf.mxu3  ;;  %v3349_v27 = vadd.f32 %v3348_v23, %v3260_v22  ;;  %v3262_v29 = vpop.f32.mrf.mxu1  ;;  %v6241_v22 = vor.u32 %v6916_v12, %v6238_v13  ;;  %v6925_v12 = vld [vmem:[%s8419_s10 + $0x4c] sm:$0xf]  ;;  %v6278_v13 = vld [vmem:[%s8419_s10 + $0x58] sm:$0xf0] }
 0x335   : > { %v3263_v35 = vadd.f32 %v3262_v29, %v3173_v28  ;;  %v2540_v29 = vld [vmem:[#allocation2 + $0x78] sm:$0xff] }
 0x336   : > { %v3438_v32 = vadd.f32 %v3437_v24, %v3349_v27  ;;  %3212 = vmatmul.bf16.gmra.mxu0 %v6011_v25  ;;  %v6249_v27 = vor.u32 %v6917_v16, %v6246_v17 }
 0x337   : > { %3301 = vmatmul.bf16.gmra.mxu1 %v6015_v26  ;;  %v6245_v26 = vor.u32 %v6919_v15, %v6244_v14 }
 0x338   : > { %v3501_v34 = vadd.f32 %v3438_v32, %v2536_v33  ;;  %3390 = vmatmul.bf16.gmra.mxu2 %v6019_v30 }
 0x339   : > { %3479 = vmatmul.bf16.gmra.mxu3 %v6023_v31 }
 0x33a   : > { %3533 = vst.msk [vmem:[#allocation2 + $0x58] sm:$0xff] %vm225_vm0, %v3501_v34 }
 0x33b   : > { %v3351_v36 = vpop.f32.mrf.mxu2  ;;  %v3175_v39 = vpop.f32.mrf.mxu0 }
 0x33c   : > { %v3440_v37 = vpop.f32.mrf.mxu3  ;;  %v3352_v38 = vadd.f32 %v3351_v36, %v3263_v35  ;;  %v3264_v40 = vpop.f32.mrf.mxu1 }
 0x33d   : > { %v3265_v52 = vadd.f32 %v3264_v40, %v3175_v39  ;;  %v6252_v39 = vld [vmem:[%s8419_s10 + $0x20] sm:$0xf]  ;;  %v6922_v40 = vld [vmem:[%s8419_s10 + $0x2c] sm:$0xf0] }
 0x33e   : > { %v3441_v41 = vadd.f32 %v3440_v37, %v3352_v38  ;;  %v2541_v38 = vld [vmem:[#allocation2 + $0x80] sm:$0xff]  ;;  %v6253_v51 = vor.u32 %v6922_v40, %v6252_v39  ;;  %v6286_v39 = vld [vmem:[%s8419_s10 + $0x70] sm:$0xf0]  ;;  %v6292_v40 = vld [vmem:[%s8419_s10 + $0x68] sm:$0xf] }
 0x340   : > { %v3502_v45 = vadd.f32 %v3441_v41, %v2537_v42  ;;  %v6920_v42 = vld [vmem:[%s8419_s10 + $0x24] sm:$0xf] }
 0x342   : > { %3534 = vst.msk [vmem:[#allocation2 + $0x60] sm:$0xff] %vm225_vm0, %v3502_v45  ;;  %v6923_v45 = vld [vmem:[%s8419_s10 + $0x34] sm:$0xf0] }
 0x343   : > { %v3353_v53 = vpop.f32.mrf.mxu2  ;;  %v3178_v58 = vpop.f32.mrf.mxu0 }
 0x344   : > { %v3442_v54 = vpop.f32.mrf.mxu3  ;;  %v3354_v57 = vadd.f32 %v3353_v53, %v3265_v52  ;;  %v3267_v59 = vpop.f32.mrf.mxu1  ;;  %v6257_v52 = vor.u32 %v6920_v42, %v6254_v43  ;;  %v6929_v42 = vld [vmem:[%s8419_s10 + $0x6c] sm:$0xf]  ;;  %v6294_v43 = vld [vmem:[%s8419_s10 + $0x78] sm:$0xf0] }
 0x345   : > { %v3268_v1 = vadd.f32 %v3267_v59, %v3178_v58  ;;  %v2542_v59 = vld [vmem:[#allocation2 + $0x88] sm:$0xff] }
 0x346   : > { %v3443_v62 = vadd.f32 %v3442_v54, %v3354_v57  ;;  %3217 = vmatmul.bf16.gmra.mxu0 %v6027_v55  ;;  %v6265_v57 = vor.u32 %v6921_v46, %v6262_v47 }
 0x347   : > { %3306 = vmatmul.bf16.gmra.mxu1 %v6031_v56  ;;  %v6261_v56 = vor.u32 %v6923_v45, %v6260_v44 }
 0x348   : > { %v3503_v0 = vadd.f32 %v3443_v62, %v2538_v63  ;;  %3395 = vmatmul.bf16.gmra.mxu2 %v6035_v60 }
 0x349   : > { %3484 = vmatmul.bf16.gmra.mxu3 %v6039_v61 }
 0x34a   : > { %3535 = vst.msk [vmem:[#allocation2 + $0x68] sm:$0xff] %vm225_vm0, %v3503_v0 }
 0x34b   : > { %v3356_v2 = vpop.f32.mrf.mxu2  ;;  %v3180_v5 = vpop.f32.mrf.mxu0 }
 0x34c   : > { %v3445_v3 = vpop.f32.mrf.mxu3  ;;  %v3357_v4 = vadd.f32 %v3356_v2, %v3268_v1  ;;  %v3269_v6 = vpop.f32.mrf.mxu1 }
 0x34d   : > { %v3270_v18 = vadd.f32 %v3269_v6, %v3180_v5  ;;  %v6268_v5 = vld [vmem:[%s8419_s10 + $0x40] sm:$0xf]  ;;  %v6926_v6 = vld [vmem:[%s8419_s10 + $0x4c] sm:$0xf0] }
 0x34e   : > { %v3446_v7 = vadd.f32 %v3445_v3, %v3357_v4  ;;  %v2543_v4 = vld [vmem:[#allocation2 + $0x90] sm:$0xff]  ;;  %v6269_v17 = vor.u32 %v6926_v6, %v6268_v5  ;;  %v6308_v6 = vld [vmem:[%s8419_s10 + $0x88] sm:$0xf] }
 0x34f   : > { %v6302_v5 = vld [vmem:[%s8419_s10 + $0x90] sm:$0xf0] }
 0x350   : > { %v3504_v11 = vadd.f32 %v3446_v7, %v2539_v8  ;;  %v6924_v8 = vld [vmem:[%s8419_s10 + $0x44] sm:$0xf] }
 0x352   : > { %3536 = vst.msk [vmem:[#allocation2 + $0x70] sm:$0xff] %vm225_vm0, %v3504_v11  ;;  %v6927_v11 = vld [vmem:[%s8419_s10 + $0x54] sm:$0xf0] }
 0x353   : > { %v3358_v19 = vpop.f32.mrf.mxu2  ;;  %v3183_v24 = vpop.f32.mrf.mxu0 }
 0x354   : > { %v3447_v20 = vpop.f32.mrf.mxu3  ;;  %v3359_v23 = vadd.f32 %v3358_v19, %v3270_v18  ;;  %v3272_v25 = vpop.f32.mrf.mxu1  ;;  %v6273_v18 = vor.u32 %v6924_v8, %v6270_v9  ;;  %v6933_v8 = vld [vmem:[%s8419_s10 + $0x8c] sm:$0xf]  ;;  %v6310_v9 = vld [vmem:[%s8419_s10 + $0x98] sm:$0xf0] }
 0x355   : > { %v3273_v31 = vadd.f32 %v3272_v25, %v3183_v24  ;;  %v2544_v25 = vld [vmem:[#allocation2 + $0x98] sm:$0xff] }
 0x356   : > { %v3448_v28 = vadd.f32 %v3447_v20, %v3359_v23  ;;  %4241 = vmatmul.bf16.vlgmr.msrb.gmra.mxu0 %v6237_v21  ;;  %v6281_v23 = vor.u32 %v6925_v12, %v6278_v13 }
 0x357   : > { %4330 = vmatmul.bf16.vlgmr.msrb.gmra.mxu1 %v6241_v22  ;;  %v6277_v22 = vor.u32 %v6927_v11, %v6276_v10 }
 0x358   : > { %v3505_v30 = vadd.f32 %v3448_v28, %v2540_v29  ;;  %4419 = vmatmul.bf16.vlgmr.msrb.gmra.mxu2 %v6245_v26 }
 0x359   : > { %4508 = vmatmul.bf16.vlgmr.msrb.gmra.mxu3 %v6249_v27 }
 0x35a   : > { %3537 = vst.msk [vmem:[#allocation2 + $0x78] sm:$0xff] %vm225_vm0, %v3505_v30 }
 0x35b   : > { %v3361_v32 = vpop.f32.mrf.mxu2  ;;  %v3185_v35 = vpop.f32.mrf.mxu0 }
 0x35c   : > { %v3450_v33 = vpop.f32.mrf.mxu3  ;;  %v3362_v34 = vadd.f32 %v3361_v32, %v3273_v31  ;;  %v3274_v36 = vpop.f32.mrf.mxu1 }
 0x35d   : > { %v3275_v48 = vadd.f32 %v3274_v36, %v3185_v35  ;;  %v6284_v35 = vld [vmem:[%s8419_s10 + $0x60] sm:$0xf]  ;;  %v6930_v36 = vld [vmem:[%s8419_s10 + $0x6c] sm:$0xf0] }
 0x35e   : > { %v3451_v37 = vadd.f32 %v3450_v33, %v3362_v34  ;;  %v2545_v34 = vld [vmem:[#allocation2 + $0xa0] sm:$0xff]  ;;  %v6285_v47 = vor.u32 %v6930_v36, %v6284_v35  ;;  %v6318_v35 = vld [vmem:[%s8419_s10 + $0xb0] sm:$0xf0]  ;;  %v6324_v36 = vld [vmem:[%s8419_s10 + $0xa8] sm:$0xf] }
 0x360   : > { %v3506_v41 = vadd.f32 %v3451_v37, %v2541_v38  ;;  %v6928_v38 = vld [vmem:[%s8419_s10 + $0x64] sm:$0xf] }
 0x362   : > { %3538 = vst.msk [vmem:[#allocation2 + $0x80] sm:$0xff] %vm225_vm0, %v3506_v41  ;;  %v6931_v41 = vld [vmem:[%s8419_s10 + $0x74] sm:$0xf0] }
 0x363   : > { %v3363_v49 = vpop.f32.mrf.mxu2  ;;  %v3188_v54 = vpop.f32.mrf.mxu0 }
 0x364   : > { %v3452_v50 = vpop.f32.mrf.mxu3  ;;  %v3364_v53 = vadd.f32 %v3363_v49, %v3275_v48  ;;  %v3277_v55 = vpop.f32.mrf.mxu1  ;;  %v6289_v48 = vor.u32 %v6928_v38, %v6286_v39  ;;  %v6937_v38 = vld [vmem:[%s8419_s10 + $0xac] sm:$0xf]  ;;  %v6326_v39 = vld [vmem:[%s8419_s10 + $0xb8] sm:$0xf0] }
 0x365   : > { %v3278_v61 = vadd.f32 %v3277_v55, %v3188_v54  ;;  %v2546_v55 = vld [vmem:[#allocation2 + $0xa8] sm:$0xff] }
 0x366   : > { %v3453_v58 = vadd.f32 %v3452_v50, %v3364_v53  ;;  %4246 = vmatmul.bf16.gmra.mxu0 %v6253_v51  ;;  %v6297_v53 = vor.u32 %v6929_v42, %v6294_v43 }
 0x367   : > { %4335 = vmatmul.bf16.gmra.mxu1 %v6257_v52  ;;  %v6293_v52 = vor.u32 %v6931_v41, %v6292_v40 }
 0x368   : > { %v3507_v60 = vadd.f32 %v3453_v58, %v2542_v59  ;;  %4424 = vmatmul.bf16.gmra.mxu2 %v6261_v56 }
 0x369   : > { %4513 = vmatmul.bf16.gmra.mxu3 %v6265_v57 }
 0x36a   : > { %3539 = vst.msk [vmem:[#allocation2 + $0x88] sm:$0xff] %vm225_vm0, %v3507_v60 }
 0x36b   : > { %v3366_v62 = vpop.f32.mrf.mxu2  ;;  %v3190_v1 = vpop.f32.mrf.mxu0 }
 0x36c   : > { %v3455_v63 = vpop.f32.mrf.mxu3  ;;  %v3367_v0 = vadd.f32 %v3366_v62, %v3278_v61  ;;  %v3279_v2 = vpop.f32.mrf.mxu1 }
 0x36d   : > { %v3280_v14 = vadd.f32 %v3279_v2, %v3190_v1  ;;  %v6300_v1 = vld [vmem:[%s8419_s10 + $0x80] sm:$0xf]  ;;  %v6934_v2 = vld [vmem:[%s8419_s10 + $0x8c] sm:$0xf0] }
 0x36e   : > { %v3456_v3 = vadd.f32 %v3455_v63, %v3367_v0  ;;  %v2547_v0 = vld [vmem:[#allocation2 + $0xb0] sm:$0xff]  ;;  %v6301_v13 = vor.u32 %v6934_v2, %v6300_v1  ;;  %v6340_v2 = vld [vmem:[%s8419_s10 + $0xc8] sm:$0xf] }
 0x36f   : > { %v6334_v1 = vld [vmem:[%s8419_s10 + $0xd0] sm:$0xf0] }
 0x370   : > { %v3508_v7 = vadd.f32 %v3456_v3, %v2543_v4  ;;  %v6932_v4 = vld [vmem:[%s8419_s10 + $0x84] sm:$0xf] }
 0x372   : > { %3540 = vst.msk [vmem:[#allocation2 + $0x90] sm:$0xff] %vm225_vm0, %v3508_v7  ;;  %v6935_v7 = vld [vmem:[%s8419_s10 + $0x94] sm:$0xf0] }
 0x373   : > { %v3368_v15 = vpop.f32.mrf.mxu2  ;;  %v3193_v20 = vpop.f32.mrf.mxu0 }
 0x374   : > { %v3457_v16 = vpop.f32.mrf.mxu3  ;;  %v3369_v19 = vadd.f32 %v3368_v15, %v3280_v14  ;;  %v3282_v21 = vpop.f32.mrf.mxu1  ;;  %v6305_v14 = vor.u32 %v6932_v4, %v6302_v5  ;;  %v6941_v4 = vld [vmem:[%s8419_s10 + $0xcc] sm:$0xf]  ;;  %v6342_v5 = vld [vmem:[%s8419_s10 + $0xd8] sm:$0xf0] }
 0x375   : > { %v3283_v27 = vadd.f32 %v3282_v21, %v3193_v20  ;;  %v2548_v21 = vld [vmem:[#allocation2 + $0xb8] sm:$0xff] }
 0x376   : > { %v3458_v24 = vadd.f32 %v3457_v16, %v3369_v19  ;;  %4251 = vmatmul.bf16.gmra.mxu0 %v6269_v17  ;;  %v6313_v19 = vor.u32 %v6933_v8, %v6310_v9 }
 0x377   : > { %4340 = vmatmul.bf16.gmra.mxu1 %v6273_v18  ;;  %v6309_v18 = vor.u32 %v6935_v7, %v6308_v6 }
 0x378   : > { %v3509_v26 = vadd.f32 %v3458_v24, %v2544_v25  ;;  %4429 = vmatmul.bf16.gmra.mxu2 %v6277_v22 }
 0x379   : > { %4518 = vmatmul.bf16.gmra.mxu3 %v6281_v23 }
 0x37a   : > { %3541 = vst.msk [vmem:[#allocation2 + $0x98] sm:$0xff] %vm225_vm0, %v3509_v26 }
 0x37b   : > { %v3371_v28 = vpop.f32.mrf.mxu2  ;;  %v3195_v31 = vpop.f32.mrf.mxu0 }
 0x37c   : > { %v3460_v29 = vpop.f32.mrf.mxu3  ;;  %v3372_v30 = vadd.f32 %v3371_v28, %v3283_v27  ;;  %v3284_v32 = vpop.f32.mrf.mxu1 }
 0x37d   : > { %v3285_v44 = vadd.f32 %v3284_v32, %v3195_v31  ;;  %v6316_v31 = vld [vmem:[%s8419_s10 + $0xa0] sm:$0xf]  ;;  %v6938_v32 = vld [vmem:[%s8419_s10 + $0xac] sm:$0xf0] }
 0x37e   : > { %v3461_v33 = vadd.f32 %v3460_v29, %v3372_v30  ;;  %v2549_v30 = vld [vmem:[#allocation2 + $0xc0] sm:$0xff]  ;;  %v6317_v43 = vor.u32 %v6938_v32, %v6316_v31  ;;  %v6350_v31 = vld [vmem:[%s8419_s10 + $0xf0] sm:$0xf0]  ;;  %v6356_v32 = vld [vmem:[%s8419_s10 + $0xe8] sm:$0xf] }
 0x380   : > { %v3510_v37 = vadd.f32 %v3461_v33, %v2545_v34  ;;  %v6936_v34 = vld [vmem:[%s8419_s10 + $0xa4] sm:$0xf] }
 0x382   : > { %3542 = vst.msk [vmem:[#allocation2 + $0xa0] sm:$0xff] %vm225_vm0, %v3510_v37  ;;  %v6939_v37 = vld [vmem:[%s8419_s10 + $0xb4] sm:$0xf0] }
 0x383   : > { %v3373_v45 = vpop.f32.mrf.mxu2  ;;  %v3198_v50 = vpop.f32.mrf.mxu0 }
 0x384   : > { %v3462_v46 = vpop.f32.mrf.mxu3  ;;  %v3374_v49 = vadd.f32 %v3373_v45, %v3285_v44  ;;  %v3287_v51 = vpop.f32.mrf.mxu1  ;;  %v6321_v44 = vor.u32 %v6936_v34, %v6318_v35  ;;  %v6945_v34 = vld [vmem:[%s8419_s10 + $0xec] sm:$0xf]  ;;  %v6358_v35 = vld [vmem:[%s8419_s10 + $0xf8] sm:$0xf0] }
 0x385   : > { %v3288_v57 = vadd.f32 %v3287_v51, %v3198_v50  ;;  %v2550_v51 = vld [vmem:[#allocation2 + $0xc8] sm:$0xff] }
 0x386   : > { %v3463_v54 = vadd.f32 %v3462_v46, %v3374_v49  ;;  %4256 = vmatmul.bf16.gmra.mxu0 %v6285_v47  ;;  %v6329_v49 = vor.u32 %v6937_v38, %v6326_v39 }
 0x387   : > { %4345 = vmatmul.bf16.gmra.mxu1 %v6289_v48  ;;  %v6325_v48 = vor.u32 %v6939_v37, %v6324_v36 }
 0x388   : > { %v3511_v56 = vadd.f32 %v3463_v54, %v2546_v55  ;;  %4434 = vmatmul.bf16.gmra.mxu2 %v6293_v52 }
 0x389   : > { %4523 = vmatmul.bf16.gmra.mxu3 %v6297_v53 }
 0x38a   : > { %3543 = vst.msk [vmem:[#allocation2 + $0xa8] sm:$0xff] %vm225_vm0, %v3511_v56 }
 0x38b   : > { %v3376_v58 = vpop.f32.mrf.mxu2  ;;  %v3200_v61 = vpop.f32.mrf.mxu0 }
 0x38c   : > { %v3465_v59 = vpop.f32.mrf.mxu3  ;;  %v3377_v60 = vadd.f32 %v3376_v58, %v3288_v57  ;;  %v3289_v62 = vpop.f32.mrf.mxu1 }
 0x38d   : > { %v3290_v10 = vadd.f32 %v3289_v62, %v3200_v61  ;;  %v6332_v61 = vld [vmem:[%s8419_s10 + $0xc0] sm:$0xf]  ;;  %v6942_v62 = vld [vmem:[%s8419_s10 + $0xcc] sm:$0xf0] }
 0x38e   : > { %v3466_v63 = vadd.f32 %v3465_v59, %v3377_v60  ;;  %v2551_v60 = vld [vmem:[#allocation2 + $0xd0] sm:$0xff]  ;;  %v6333_v9 = vor.u32 %v6942_v62, %v6332_v61  ;;  %v6372_v62 = vld [vmem:[%s8419_s10 + $0x108] sm:$0xf] }
 0x38f   : > { %v6366_v61 = vld [vmem:[%s8419_s10 + $0x110] sm:$0xf0] }
 0x390   : > { %v3512_v3 = vadd.f32 %v3466_v63, %v2547_v0  ;;  %v6940_v0 = vld [vmem:[%s8419_s10 + $0xc4] sm:$0xf] }
 0x392   : > { %3544 = vst.msk [vmem:[#allocation2 + $0xb0] sm:$0xff] %vm225_vm0, %v3512_v3  ;;  %v6943_v3 = vld [vmem:[%s8419_s10 + $0xd4] sm:$0xf0] }
 0x393   : > { %v3378_v11 = vpop.f32.mrf.mxu2  ;;  %v3203_v16 = vpop.f32.mrf.mxu0 }
 0x394   : > { %v3467_v12 = vpop.f32.mrf.mxu3  ;;  %v3379_v15 = vadd.f32 %v3378_v11, %v3290_v10  ;;  %v3292_v17 = vpop.f32.mrf.mxu1  ;;  %v6337_v10 = vor.u32 %v6940_v0, %v6334_v1  ;;  %v6949_v0 = vld [vmem:[%s8419_s10 + $0x10c] sm:$0xf]  ;;  %v6374_v1 = vld [vmem:[%s8419_s10 + $0x118] sm:$0xf0] }
 0x395   : > { %v3293_v23 = vadd.f32 %v3292_v17, %v3203_v16  ;;  %v2552_v17 = vld [vmem:[#allocation2 + $0xd8] sm:$0xff] }
 0x396   : > { %v3468_v20 = vadd.f32 %v3467_v12, %v3379_v15  ;;  %4261 = vmatmul.bf16.gmra.mxu0 %v6301_v13  ;;  %v6345_v15 = vor.u32 %v6941_v4, %v6342_v5 }
 0x397   : > { %4350 = vmatmul.bf16.gmra.mxu1 %v6305_v14  ;;  %v6341_v14 = vor.u32 %v6943_v3, %v6340_v2 }
 0x398   : > { %v3513_v22 = vadd.f32 %v3468_v20, %v2548_v21  ;;  %4439 = vmatmul.bf16.gmra.mxu2 %v6309_v18 }
 0x399   : > { %4528 = vmatmul.bf16.gmra.mxu3 %v6313_v19 }
 0x39a   : > { %3545 = vst.msk [vmem:[#allocation2 + $0xb8] sm:$0xff] %vm225_vm0, %v3513_v22 }
 0x39b   : > { %v3381_v24 = vpop.f32.mrf.mxu2  ;;  %v3205_v27 = vpop.f32.mrf.mxu0 }
 0x39c   : > { %v3470_v25 = vpop.f32.mrf.mxu3  ;;  %v3382_v26 = vadd.f32 %v3381_v24, %v3293_v23  ;;  %v3294_v28 = vpop.f32.mrf.mxu1 }
 0x39d   : > { %v3295_v40 = vadd.f32 %v3294_v28, %v3205_v27  ;;  %v6348_v27 = vld [vmem:[%s8419_s10 + $0xe0] sm:$0xf]  ;;  %v6946_v28 = vld [vmem:[%s8419_s10 + $0xec] sm:$0xf0] }
 0x39e   : > { %v3471_v29 = vadd.f32 %v3470_v25, %v3382_v26  ;;  %v2553_v26 = vld [vmem:[#allocation2 + $0xe0] sm:$0xff]  ;;  %v6349_v39 = vor.u32 %v6946_v28, %v6348_v27  ;;  %v6382_v27 = vld [vmem:[%s8419_s10 + $0x130] sm:$0xf0]  ;;  %v6388_v28 = vld [vmem:[%s8419_s10 + $0x128] sm:$0xf] }
 0x3a0   : > { %v3514_v33 = vadd.f32 %v3471_v29, %v2549_v30  ;;  %v6944_v30 = vld [vmem:[%s8419_s10 + $0xe4] sm:$0xf] }
 0x3a2   : > { %3546 = vst.msk [vmem:[#allocation2 + $0xc0] sm:$0xff] %vm225_vm0, %v3514_v33  ;;  %v6947_v33 = vld [vmem:[%s8419_s10 + $0xf4] sm:$0xf0] }
 0x3a3   : > { %v3383_v41 = vpop.f32.mrf.mxu2  ;;  %v3208_v46 = vpop.f32.mrf.mxu0 }
 0x3a4   : > { %v3472_v42 = vpop.f32.mrf.mxu3  ;;  %v3384_v45 = vadd.f32 %v3383_v41, %v3295_v40  ;;  %v3297_v47 = vpop.f32.mrf.mxu1  ;;  %v6353_v40 = vor.u32 %v6944_v30, %v6350_v31  ;;  %v6953_v30 = vld [vmem:[%s8419_s10 + $0x12c] sm:$0xf]  ;;  %v6390_v31 = vld [vmem:[%s8419_s10 + $0x138] sm:$0xf0] }
 0x3a5   : > { %v3298_v53 = vadd.f32 %v3297_v47, %v3208_v46  ;;  %v2554_v47 = vld [vmem:[#allocation2 + $0xe8] sm:$0xff] }
 0x3a6   : > { %v3473_v50 = vadd.f32 %v3472_v42, %v3384_v45  ;;  %4266 = vmatmul.bf16.gmra.mxu0 %v6317_v43  ;;  %v6361_v45 = vor.u32 %v6945_v34, %v6358_v35 }
 0x3a7   : > { %4355 = vmatmul.bf16.gmra.mxu1 %v6321_v44  ;;  %v6357_v44 = vor.u32 %v6947_v33, %v6356_v32 }
 0x3a8   : > { %v3515_v52 = vadd.f32 %v3473_v50, %v2550_v51  ;;  %4444 = vmatmul.bf16.gmra.mxu2 %v6325_v48 }
 0x3a9   : > { %4533 = vmatmul.bf16.gmra.mxu3 %v6329_v49 }
 0x3aa   : > { %3547 = vst.msk [vmem:[#allocation2 + $0xc8] sm:$0xff] %vm225_vm0, %v3515_v52 }
 0x3ab   : > { %v3386_v54 = vpop.f32.mrf.mxu2  ;;  %v3210_v57 = vpop.f32.mrf.mxu0 }
 0x3ac   : > { %v3475_v55 = vpop.f32.mrf.mxu3  ;;  %v3387_v56 = vadd.f32 %v3386_v54, %v3298_v53  ;;  %v3299_v58 = vpop.f32.mrf.mxu1 }
 0x3ad   : > { %v3300_v6 = vadd.f32 %v3299_v58, %v3210_v57  ;;  %v6364_v57 = vld [vmem:[%s8419_s10 + $0x100] sm:$0xf]  ;;  %v6950_v58 = vld [vmem:[%s8419_s10 + $0x10c] sm:$0xf0] }
 0x3ae   : > { %v3476_v59 = vadd.f32 %v3475_v55, %v3387_v56  ;;  %v2555_v56 = vld [vmem:[#allocation2 + $0xf0] sm:$0xff]  ;;  %v6365_v5 = vor.u32 %v6950_v58, %v6364_v57 }
 0x3af   : > { %v6398_v58 = vld [vmem:[%s8419_s10 + $0x150] sm:$0xf0] }
 0x3b0   : > { %v3516_v63 = vadd.f32 %v3476_v59, %v2551_v60  ;;  %v6948_v60 = vld [vmem:[%s8419_s10 + $0x104] sm:$0xf] }
 0x3b2   : > { %3548 = vst.msk [vmem:[#allocation2 + $0xd0] sm:$0xff] %vm225_vm0, %v3516_v63  ;;  %v6951_v63 = vld [vmem:[%s8419_s10 + $0x114] sm:$0xf0] }
 0x3b3   : > { %v3388_v7 = vpop.f32.mrf.mxu2  ;;  %v3213_v12 = vpop.f32.mrf.mxu0 }
 0x3b4   : > { %v3477_v8 = vpop.f32.mrf.mxu3  ;;  %v3389_v11 = vadd.f32 %v3388_v7, %v3300_v6  ;;  %v3302_v13 = vpop.f32.mrf.mxu1  ;;  %v6369_v6 = vor.u32 %v6948_v60, %v6366_v61  ;;  %v6959_v60 = vld [vmem:[%s8419_s10 + $0x154] sm:$0xf0] }
 0x3b5   : > { %v3303_v19 = vadd.f32 %v3302_v13, %v3213_v12  ;;  %v2556_v13 = vld [vmem:[#allocation2 + $0xf8] sm:$0xff] }
 0x3b6   : > { %v3478_v16 = vadd.f32 %v3477_v8, %v3389_v11  ;;  %4271 = vmatmul.bf16.gmra.mxu0 %v6333_v9  ;;  %v6377_v11 = vor.u32 %v6949_v0, %v6374_v1 }
 0x3b7   : > { %4360 = vmatmul.bf16.gmra.mxu1 %v6337_v10  ;;  %v6373_v10 = vor.u32 %v6951_v63, %v6372_v62  ;;  %v6957_v62 = vld [vmem:[%s8419_s10 + $0x14c] sm:$0xf]  ;;  %v6406_v63 = vld [vmem:[%s8419_s10 + $0x158] sm:$0xf0] }
 0x3b8   : > { %v3517_v18 = vadd.f32 %v3478_v16, %v2552_v17  ;;  %4449 = vmatmul.bf16.gmra.mxu2 %v6341_v14 }
 0x3b9   : > { %4538 = vmatmul.bf16.gmra.mxu3 %v6345_v15 }
 0x3ba   : > { %3549 = vst.msk [vmem:[#allocation2 + $0xd8] sm:$0xff] %vm225_vm0, %v3517_v18 }
 0x3bb   : > { %v3391_v20 = vpop.f32.mrf.mxu2  ;;  %v3215_v23 = vpop.f32.mrf.mxu0 }
 0x3bc   : > { %v3480_v21 = vpop.f32.mrf.mxu3  ;;  %v3392_v22 = vadd.f32 %v3391_v20, %v3303_v19  ;;  %v3304_v24 = vpop.f32.mrf.mxu1 }
 0x3bd   : > { %v3305_v36 = vadd.f32 %v3304_v24, %v3215_v23  ;;  %v6380_v23 = vld [vmem:[%s8419_s10 + $0x120] sm:$0xf]  ;;  %v6954_v24 = vld [vmem:[%s8419_s10 + $0x12c] sm:$0xf0] }
 0x3be   : > { %v3481_v25 = vadd.f32 %v3480_v21, %v3392_v22  ;;  %v3624_v22 = vld [vmem:[#allocation2] sm:$0xff]  ;;  %v6381_v35 = vor.u32 %v6954_v24, %v6380_v23  ;;  %v6962_v23 = vld [vmem:[%s8419_s10 + $0x16c] sm:$0xf0] }
 0x3bf   : > { %v6960_v24 = vld [vmem:[%s8419_s10 + $0x164] sm:$0xf] }
 0x3c0   : > { %v3518_v29 = vadd.f32 %v3481_v25, %v2553_v26  ;;  %v6952_v26 = vld [vmem:[%s8419_s10 + $0x124] sm:$0xf] }
 0x3c2   : > { %3550 = vst.msk [vmem:[#allocation2 + $0xe0] sm:$0xff] %vm225_vm0, %v3518_v29  ;;  %v6955_v29 = vld [vmem:[%s8419_s10 + $0x134] sm:$0xf0] }
 0x3c3   : > { %v3393_v37 = vpop.f32.mrf.mxu2  ;;  %v3218_v42 = vpop.f32.mrf.mxu0 }
 0x3c4   : > { %v3482_v38 = vpop.f32.mrf.mxu3  ;;  %v3394_v41 = vadd.f32 %v3393_v37, %v3305_v36  ;;  %v3307_v43 = vpop.f32.mrf.mxu1  ;;  %v6385_v36 = vor.u32 %v6952_v26, %v6382_v27  ;;  %v6414_v26 = vld [vmem:[%s8419_s10 + $0x170] sm:$0xf0]  ;;  %v6420_v27 = vld [vmem:[%s8419_s10 + $0x168] sm:$0xf] }
 0x3c5   : > { %v3308_v49 = vadd.f32 %v3307_v43, %v3218_v42  ;;  %v3625_v43 = vld [vmem:[#allocation2 + $0x8] sm:$0xff] }
 0x3c6   : > { %v3483_v46 = vadd.f32 %v3482_v38, %v3394_v41  ;;  %4276 = vmatmul.bf16.gmra.mxu0 %v6349_v39  ;;  %v6393_v41 = vor.u32 %v6953_v30, %v6390_v31  ;;  %v6961_v30 = vld [vmem:[%s8419_s10 + $0x16c] sm:$0xf]  ;;  %v6422_v31 = vld [vmem:[%s8419_s10 + $0x178] sm:$0xf0] }
 0x3c7   : > { %4365 = vmatmul.bf16.gmra.mxu1 %v6353_v40  ;;  %v6389_v40 = vor.u32 %v6955_v29, %v6388_v28  ;;  %v6963_v28 = vld [vmem:[%s8419_s10 + $0x174] sm:$0xf0] }
 0x3c8   : > { %v3519_v48 = vadd.f32 %v3483_v46, %v2554_v47  ;;  %4454 = vmatmul.bf16.gmra.mxu2 %v6357_v44 }
 0x3c9   : > { %4543 = vmatmul.bf16.gmra.mxu3 %v6361_v45 }
 0x3ca   : > { %3551 = vst.msk [vmem:[#allocation2 + $0xe8] sm:$0xff] %vm225_vm0, %v3519_v48 }
 0x3cb   : > { %v3396_v50 = vpop.f32.mrf.mxu2  ;;  %v3220_v53 = vpop.f32.mrf.mxu0 }
 0x3cc   : > { %v3485_v51 = vpop.f32.mrf.mxu3  ;;  %v3397_v52 = vadd.f32 %v3396_v50, %v3308_v49  ;;  %v3309_v54 = vpop.f32.mrf.mxu1 }
 0x3cd   : > { %v3310_v2 = vadd.f32 %v3309_v54, %v3220_v53  ;;  %v6396_v54 = vld [vmem:[%s8419_s10 + $0x140] sm:$0xf] }
 0x3ce   : > { %v3486_v55 = vadd.f32 %v3485_v51, %v3397_v52  ;;  %v3626_v52 = vld [vmem:[#allocation2 + $0x10] sm:$0xff] }
 0x3d0   : > { %v3520_v59 = vadd.f32 %v3486_v55, %v2555_v56  ;;  %v6958_v55 = vld [vmem:[%s8419_s10 + $0x14c] sm:$0xf0]  ;;  %v6956_v56 = vld [vmem:[%s8419_s10 + $0x144] sm:$0xf] }
 0x3d2   : > { %3552 = vst.msk [vmem:[#allocation2 + $0xf0] sm:$0xff] %vm225_vm0, %v3520_v59  ;;  %v6404_v59 = vld [vmem:[%s8419_s10 + $0x148] sm:$0xf] }
 0x3d3   : > { %v3398_v3 = vpop.f32.mrf.mxu2  ;;  %v4242_v8 = vpop.f32.mrf.mxu0 }
 0x3d4   : > { %v3487_v4 = vpop.f32.mrf.mxu3  ;;  %v3399_v7 = vadd.f32 %v3398_v3, %v3310_v2  ;;  %v4331_v9 = vpop.f32.mrf.mxu1  ;;  %v6397_v3 = vor.u32 %v6958_v55, %v6396_v54  ;;  %v6428_v54 = vld [vmem:[%s8419_s10 + $0x180] sm:$0xf]  ;;  %v6966_v55 = vld [vmem:[%s8419_s10 + $0x18c] sm:$0xf0] }
 0x3d5   : > { %v4332_v15 = vadd.f32 %v4331_v9, %v4242_v8  ;;  %v6405_v8 = vor.u32 %v6959_v60, %v6404_v59  ;;  %v6409_v9 = vor.u32 %v6957_v62, %v6406_v63  ;;  %v6436_v59 = vld [vmem:[%s8419_s10 + $0x188] sm:$0xf]  ;;  %v6967_v60 = vld [vmem:[%s8419_s10 + $0x194] sm:$0xf0]  ;;  %v6965_v62 = vld [vmem:[%s8419_s10 + $0x18c] sm:$0xf] }
 0x3d6   : > { %v3488_v12 = vadd.f32 %v3487_v4, %v3399_v7  ;;  %4281 = vmatmul.bf16.gmra.mxu0 %v6365_v5  ;;  %v6401_v4 = vor.u32 %v6956_v56, %v6398_v58  ;;  %v6964_v56 = vld [vmem:[%s8419_s10 + $0x184] sm:$0xf]  ;;  %v6430_v58 = vld [vmem:[%s8419_s10 + $0x190] sm:$0xf0]  ;;  %v6438_v63 = vld [vmem:[%s8419_s10 + $0x198] sm:$0xf0] }
 0x3d7   : > { %4370 = vmatmul.bf16.gmra.mxu1 %v6369_v6 }
 0x3d8   : > { %v3521_v14 = vadd.f32 %v3488_v12, %v2556_v13  ;;  %4459 = vmatmul.bf16.gmra.mxu2 %v6373_v10 }
 0x3d9   : > { %4548 = vmatmul.bf16.gmra.mxu3 %v6377_v11  ;;  %v3627_v11 = vld [vmem:[#allocation2 + $0x18] sm:$0xff] }
 0x3da   : > { %3553 = vst.msk [vmem:[#allocation2 + $0xf8] sm:$0xff] %vm225_vm0, %v3521_v14 }
 0x3db   : > { %v4420_v16 = vpop.f32.mrf.mxu2  ;;  %v4244_v19 = vpop.f32.mrf.mxu0 }
 0x3dc   : > { %v4509_v17 = vpop.f32.mrf.mxu3  ;;  %v4421_v18 = vadd.f32 %v4420_v16, %v4332_v15  ;;  %v4333_v20 = vpop.f32.mrf.mxu1 }
 0x3dd   : > { %v4334_v32 = vadd.f32 %v4333_v20, %v4244_v19  ;;  %v3628_v20 = vld [vmem:[#allocation2 + $0x20] sm:$0xff] }
 0x3de   : > { %v4510_v21 = vadd.f32 %v4509_v17, %v4421_v18 }
 0x3e0   : > { %v4589_v25 = vadd.f32 %v4510_v21, %v3624_v22  ;;  %v6412_v22 = vld [vmem:[%s8419_s10 + $0x160] sm:$0xf] }
 0x3e2   : > { %4621 = vst.msk [vmem:[#allocation2] sm:$0xff] %vm225_vm0, %v4589_v25 }
 0x3e3   : > { %v4422_v33 = vpop.f32.mrf.mxu2  ;;  %v4247_v38 = vpop.f32.mrf.mxu0 }
 0x3e4   : > { %v4511_v34 = vpop.f32.mrf.mxu3  ;;  %v4423_v37 = vadd.f32 %v4422_v33, %v4334_v32  ;;  %v4336_v39 = vpop.f32.mrf.mxu1 }
 0x3e5   : > { %v4337_v45 = vadd.f32 %v4336_v39, %v4247_v38 }
 0x3e6   : > { %v4512_v42 = vadd.f32 %v4511_v34, %v4423_v37  ;;  %4286 = vmatmul.bf16.gmra.mxu0 %v6381_v35  ;;  %v6413_v35 = vor.u32 %v6962_v23, %v6412_v22  ;;  %v6444_v22 = vld [vmem:[%s8419_s10 + $0x1a0] sm:$0xf]  ;;  %v6970_v23 = vld [vmem:[%s8419_s10 + $0x1ac] sm:$0xf0] }
 0x3e7   : > { %4375 = vmatmul.bf16.gmra.mxu1 %v6385_v36  ;;  %v6417_v36 = vor.u32 %v6960_v24, %v6414_v26  ;;  %v6968_v24 = vld [vmem:[%s8419_s10 + $0x1a4] sm:$0xf]  ;;  %v6446_v26 = vld [vmem:[%s8419_s10 + $0x1b0] sm:$0xf0] }
 0x3e8   : > { %v4590_v44 = vadd.f32 %v4512_v42, %v3625_v43  ;;  %4464 = vmatmul.bf16.gmra.mxu2 %v6389_v40  ;;  %v6421_v40 = vor.u32 %v6963_v28, %v6420_v27  ;;  %v3629_v43 = vld [vmem:[#allocation2 + $0x28] sm:$0xff]  ;;  %v6971_v28 = vld [vmem:[%s8419_s10 + $0x1b4] sm:$0xf0] }
 0x3e9   : > { %4553 = vmatmul.bf16.gmra.mxu3 %v6393_v41  ;;  %v4653_v46 = vld [vmem:[#allocation2] sm:$0xff]  ;;  %v6425_v41 = vor.u32 %v6961_v30, %v6422_v31  ;;  %v6452_v27 = vld [vmem:[%s8419_s10 + $0x1a8] sm:$0xf]  ;;  %v6969_v30 = vld [vmem:[%s8419_s10 + $0x1ac] sm:$0xf] }
 0x3ea   : > { %4622 = vst.msk [vmem:[#allocation2 + $0x8] sm:$0xff] %vm225_vm0, %v4590_v44  ;;  %4685 = vxpose.xlu0.b32.start [1/16] (narrow) %v4653_v46, 8  ;;  %v6454_v31 = vld [vmem:[%s8419_s10 + $0x1b8] sm:$0xf0] }
 0x3eb   : > { %v4425_v47 = vpop.f32.mrf.mxu2  ;;  %v4249_v50 = vpop.f32.mrf.mxu0 }
 0x3ec   : > { %v4514_v48 = vpop.f32.mrf.mxu3  ;;  %v4426_v49 = vadd.f32 %v4425_v47, %v4337_v45  ;;  %v4338_v51 = vpop.f32.mrf.mxu1 }
 0x3ed   : > { %v4339_v0 = vadd.f32 %v4338_v51, %v4249_v50 }
 0x3ee   : > { %v4515_v53 = vadd.f32 %v4514_v48, %v4426_v49 }
 0x3f0   : > { %v4591_v57 = vadd.f32 %v4515_v53, %v3626_v52  ;;  %v3630_v52 = vld [vmem:[#allocation2 + $0x30] sm:$0xff] }
 0x3f1   : > { %v4654_v61 = vld [vmem:[#allocation2 + $0x8] sm:$0xff] }
 0x3f2   : > { %4623 = vst.msk [vmem:[#allocation2 + $0x10] sm:$0xff] %vm225_vm0, %v4591_v57  ;;  %4686 = vxpose.xlu0.b32.cont [2/16] (narrow) %v4654_v61, 8 }
 0x3f3   : > { %v4427_v1 = vpop.f32.mrf.mxu2  ;;  %v4252_v6 = vpop.f32.mrf.mxu0 }
 0x3f4   : > { %v4516_v2 = vpop.f32.mrf.mxu3  ;;  %v4428_v5 = vadd.f32 %v4427_v1, %v4339_v0  ;;  %v4341_v7 = vpop.f32.mrf.mxu1 }
 0x3f5   : > { %v4342_v13 = vadd.f32 %v4341_v7, %v4252_v6 }
 0x3f6   : > { %v4517_v10 = vadd.f32 %v4516_v2, %v4428_v5  ;;  %4291 = vmatmul.bf16.gmra.mxu0 %v6397_v3  ;;  %v6429_v3 = vor.u32 %v6966_v55, %v6428_v54  ;;  %v6460_v54 = vld [vmem:[%s8419_s10 + $0x1c0] sm:$0xf]  ;;  %v6974_v55 = vld [vmem:[%s8419_s10 + $0x1cc] sm:$0xf0] }
 0x3f7   : > { %4380 = vmatmul.bf16.gmra.mxu1 %v6401_v4  ;;  %v6433_v4 = vor.u32 %v6964_v56, %v6430_v58  ;;  %v6972_v56 = vld [vmem:[%s8419_s10 + $0x1c4] sm:$0xf]  ;;  %v6462_v58 = vld [vmem:[%s8419_s10 + $0x1d0] sm:$0xf0] }
 0x3f8   : > { %v4592_v12 = vadd.f32 %v4517_v10, %v3627_v11  ;;  %4469 = vmatmul.bf16.gmra.mxu2 %v6405_v8  ;;  %v6437_v8 = vor.u32 %v6967_v60, %v6436_v59  ;;  %v3631_v11 = vld [vmem:[#allocation2 + $0x38] sm:$0xff]  ;;  %v6468_v59 = vld [vmem:[%s8419_s10 + $0x1c8] sm:$0xf] }
 0x3f9   : > { %4558 = vmatmul.bf16.gmra.mxu3 %v6409_v9  ;;  %v4655_v14 = vld [vmem:[#allocation2 + $0x10] sm:$0xff]  ;;  %v6441_v9 = vor.u32 %v6965_v62, %v6438_v63  ;;  %v6975_v60 = vld [vmem:[%s8419_s10 + $0x1d4] sm:$0xf0]  ;;  %v6973_v62 = vld [vmem:[%s8419_s10 + $0x1cc] sm:$0xf] }
 0x3fa   : > { %4624 = vst.msk [vmem:[#allocation2 + $0x18] sm:$0xff] %vm225_vm0, %v4592_v12  ;;  %4687 = vxpose.xlu0.b32.cont [3/16] (narrow) %v4655_v14, 8  ;;  %v6470_v63 = vld [vmem:[%s8419_s10 + $0x1d8] sm:$0xf0] }
 0x3fb   : > { %v4430_v15 = vpop.f32.mrf.mxu2  ;;  %v4254_v18 = vpop.f32.mrf.mxu0 }
 0x3fc   : > { %v4519_v16 = vpop.f32.mrf.mxu3  ;;  %v4431_v17 = vadd.f32 %v4430_v15, %v4342_v13  ;;  %v4343_v19 = vpop.f32.mrf.mxu1 }
 0x3fd   : > { %v4344_v32 = vadd.f32 %v4343_v19, %v4254_v18 }
 0x3fe   : > { %v4520_v21 = vadd.f32 %v4519_v16, %v4431_v17 }
 0x400   : > { %v4593_v25 = vadd.f32 %v4520_v21, %v3628_v20  ;;  %v3632_v20 = vld [vmem:[#allocation2 + $0x40] sm:$0xff] }
 0x401   : > { %v4656_v29 = vld [vmem:[#allocation2 + $0x18] sm:$0xff] }
 0x402   : > { %4625 = vst.msk [vmem:[#allocation2 + $0x20] sm:$0xff] %vm225_vm0, %v4593_v25  ;;  %4688 = vxpose.xlu0.b32.cont [4/16] (narrow) %v4656_v29, 8 }
 0x403   : > { %v4432_v33 = vpop.f32.mrf.mxu2  ;;  %v4257_v38 = vpop.f32.mrf.mxu0 }
 0x404   : > { %v4521_v34 = vpop.f32.mrf.mxu3  ;;  %v4433_v37 = vadd.f32 %v4432_v33, %v4344_v32  ;;  %v4346_v39 = vpop.f32.mrf.mxu1 }
 0x405   : > { %v4347_v45 = vadd.f32 %v4346_v39, %v4257_v38 }
 0x406   : > { %v4522_v42 = vadd.f32 %v4521_v34, %v4433_v37  ;;  %4296 = vmatmul.bf16.gmra.mxu0 %v6413_v35  ;;  %v6445_v35 = vor.u32 %v6970_v23, %v6444_v22  ;;  %v6476_v22 = vld [vmem:[%s8419_s10 + $0x1e0] sm:$0xf]  ;;  %v6978_v23 = vld [vmem:[%s8419_s10 + $0x1ec] sm:$0xf0] }
 0x407   : > { %4385 = vmatmul.bf16.gmra.mxu1 %v6417_v36  ;;  %v6449_v36 = vor.u32 %v6968_v24, %v6446_v26  ;;  %v6976_v24 = vld [vmem:[%s8419_s10 + $0x1e4] sm:$0xf]  ;;  %v6478_v26 = vld [vmem:[%s8419_s10 + $0x1f0] sm:$0xf0] }
 0x408   : > { %v4594_v44 = vadd.f32 %v4522_v42, %v3629_v43  ;;  %4474 = vmatmul.bf16.gmra.mxu2 %v6421_v40  ;;  %v6453_v40 = vor.u32 %v6971_v28, %v6452_v27  ;;  %v3633_v43 = vld [vmem:[#allocation2 + $0x48] sm:$0xff]  ;;  %v6979_v28 = vld [vmem:[%s8419_s10 + $0x1f4] sm:$0xf0] }
 0x409   : > { %4563 = vmatmul.bf16.gmra.mxu3 %v6425_v41  ;;  %v4657_v46 = vld [vmem:[#allocation2 + $0x20] sm:$0xff]  ;;  %v6457_v41 = vor.u32 %v6969_v30, %v6454_v31  ;;  %v6484_v27 = vld [vmem:[%s8419_s10 + $0x1e8] sm:$0xf]  ;;  %v6977_v30 = vld [vmem:[%s8419_s10 + $0x1ec] sm:$0xf] }
 0x40a   : > { %4626 = vst.msk [vmem:[#allocation2 + $0x28] sm:$0xff] %vm225_vm0, %v4594_v44  ;;  %4689 = vxpose.xlu0.b32.cont [5/16] (narrow) %v4657_v46, 8  ;;  %v6486_v31 = vld [vmem:[%s8419_s10 + $0x1f8] sm:$0xf0]  ;;  %s7211_s10 = scalar_lea.hbm %s8685_s3, 64 }
 0x40b   : > { %v4435_v47 = vpop.f32.mrf.mxu2  ;;  %v4259_v50 = vpop.f32.mrf.mxu0  ;;  %p7213_p1 = scmp.lt.s32.totalorder %s7211_s10, %s7207_s9 }
 0x40c   : > { %v4524_v48 = vpop.f32.mrf.mxu3  ;;  %v4436_v49 = vadd.f32 %v4435_v47, %v4347_v45  ;;  %v4348_v51 = vpop.f32.mrf.mxu1 }
 0x40d   : > { %v4349_v0 = vadd.f32 %v4348_v51, %v4259_v50  ;;  %p7214_p2 = por %p7213_p1, %p7212_p0 }
 0x40e   : > { %v4525_v53 = vadd.f32 %v4524_v48, %v4436_v49 }
 0x40f   : > { %p7215_p5 = pnand %p7214_p2, %p7210_p13 }
 0x410   : > { %v4595_v57 = vadd.f32 %v4525_v53, %v3630_v52  ;;  %v3634_v52 = vld [vmem:[#allocation2 + $0x50] sm:$0xff] }
 0x411   : > { %v4658_v61 = vld [vmem:[#allocation2 + $0x28] sm:$0xff] }
 0x412   : > { %4627 = vst.msk [vmem:[#allocation2 + $0x30] sm:$0xff] %vm225_vm0, %v4595_v57  ;;  %4690 = vxpose.xlu0.b32.cont [6/16] (narrow) %v4658_v61, 8 }
 0x413   : > { %v4437_v1 = vpop.f32.mrf.mxu2  ;;  %v4262_v6 = vpop.f32.mrf.mxu0 }
 0x414   : > { %v4526_v2 = vpop.f32.mrf.mxu3  ;;  %v4438_v5 = vadd.f32 %v4437_v1, %v4349_v0  ;;  %v4351_v7 = vpop.f32.mrf.mxu1 }
 0x415   : > { %v4352_v13 = vadd.f32 %v4351_v7, %v4262_v6 }
 0x416   : > { %v4527_v10 = vadd.f32 %v4526_v2, %v4438_v5  ;;  %4301 = vmatmul.bf16.gmra.mxu0 %v6429_v3  ;;  %v6461_v3 = vor.u32 %v6974_v55, %v6460_v54 }
 0x417   : > { %4390 = vmatmul.bf16.gmra.mxu1 %v6433_v4  ;;  %v6465_v4 = vor.u32 %v6972_v56, %v6462_v58 }
 0x418   : > { %v4596_v12 = vadd.f32 %v4527_v10, %v3631_v11  ;;  %4479 = vmatmul.bf16.gmra.mxu2 %v6437_v8  ;;  %v6469_v8 = vor.u32 %v6975_v60, %v6468_v59  ;;  %v3635_v11 = vld [vmem:[#allocation2 + $0x58] sm:$0xff] }
 0x419   : > { %4568 = vmatmul.bf16.gmra.mxu3 %v6441_v9  ;;  %v4659_v14 = vld [vmem:[#allocation2 + $0x30] sm:$0xff]  ;;  %v6473_v9 = vor.u32 %v6973_v62, %v6470_v63  ;;  %v3639_v63 = vld [vmem:[#allocation2 + $0x78] sm:$0xff] }
 0x41a   : > { %4628 = vst.msk [vmem:[#allocation2 + $0x38] sm:$0xff] %vm225_vm0, %v4596_v12  ;;  %4691 = vxpose.xlu0.b32.cont [7/16] (narrow) %v4659_v14, 8 }
 0x41b   : > { %v4440_v15 = vpop.f32.mrf.mxu2  ;;  %v4264_v18 = vpop.f32.mrf.mxu0 }
 0x41c   : > { %v4529_v16 = vpop.f32.mrf.mxu3  ;;  %v4441_v17 = vadd.f32 %v4440_v15, %v4352_v13  ;;  %v4353_v19 = vpop.f32.mrf.mxu1 }
 0x41d   : > { %v4354_v32 = vadd.f32 %v4353_v19, %v4264_v18 }
 0x41e   : > { %v4530_v21 = vadd.f32 %v4529_v16, %v4441_v17 }
 0x420   : > { %v4597_v25 = vadd.f32 %v4530_v21, %v3632_v20  ;;  %v3636_v20 = vld [vmem:[#allocation2 + $0x60] sm:$0xff] }
 0x421   : > { %v4660_v29 = vld [vmem:[#allocation2 + $0x38] sm:$0xff] }
 0x422   : > { %4629 = vst.msk [vmem:[#allocation2 + $0x40] sm:$0xff] %vm225_vm0, %v4597_v25  ;;  %4692 = vxpose.xlu0.b32.cont [8/16] (narrow) %v4660_v29, 8 }
 0x423   : > { %v4442_v33 = vpop.f32.mrf.mxu2  ;;  %v4267_v38 = vpop.f32.mrf.mxu0 }
 0x424   : > { %v4531_v34 = vpop.f32.mrf.mxu3  ;;  %v4443_v37 = vadd.f32 %v4442_v33, %v4354_v32  ;;  %v4356_v39 = vpop.f32.mrf.mxu1 }
 0x425   : > { %v4357_v45 = vadd.f32 %v4356_v39, %v4267_v38 }
 0x426   : > { %v4532_v42 = vadd.f32 %v4531_v34, %v4443_v37  ;;  %4306 = vmatmul.bf16.gmra.mxu0 %v6445_v35  ;;  %v6477_v35 = vor.u32 %v6978_v23, %v6476_v22 }
 0x427   : > { %4395 = vmatmul.bf16.gmra.mxu1 %v6449_v36  ;;  %v6481_v36 = vor.u32 %v6976_v24, %v6478_v26 }
 0x428   : > { %v4598_v44 = vadd.f32 %v4532_v42, %v3633_v43  ;;  %4484 = vmatmul.bf16.gmra.mxu2 %v6453_v40  ;;  %v6485_v40 = vor.u32 %v6979_v28, %v6484_v27  ;;  %v3637_v43 = vld [vmem:[#allocation2 + $0x68] sm:$0xff] }
 0x429   : > { %4573 = vmatmul.bf16.gmra.mxu3 %v6457_v41  ;;  %v4661_v46 = vld [vmem:[#allocation2 + $0x40] sm:$0xff]  ;;  %v6489_v41 = vor.u32 %v6977_v30, %v6486_v31 }
 0x42a   : > { %4630 = vst.msk [vmem:[#allocation2 + $0x48] sm:$0xff] %vm225_vm0, %v4598_v44  ;;  %4693 = vxpose.xlu0.b32.cont [9/16] (narrow) %v4661_v46, 8 }
 0x42b   : > { %v4445_v47 = vpop.f32.mrf.mxu2  ;;  %v4269_v50 = vpop.f32.mrf.mxu0 }
 0x42c   : > { %v4534_v48 = vpop.f32.mrf.mxu3  ;;  %v4446_v49 = vadd.f32 %v4445_v47, %v4357_v45  ;;  %v4358_v51 = vpop.f32.mrf.mxu1 }
 0x42d   : > { %v4359_v0 = vadd.f32 %v4358_v51, %v4269_v50 }
 0x42e   : > { %v4535_v53 = vadd.f32 %v4534_v48, %v4446_v49 }
 0x430   : > { %v4599_v57 = vadd.f32 %v4535_v53, %v3634_v52  ;;  %v3638_v53 = vld [vmem:[#allocation2 + $0x70] sm:$0xff] }
 0x431   : > { %v4662_v61 = vld [vmem:[#allocation2 + $0x48] sm:$0xff] }
 0x432   : > { %4631 = vst.msk [vmem:[#allocation2 + $0x50] sm:$0xff] %vm225_vm0, %v4599_v57  ;;  %4694 = vxpose.xlu0.b32.cont [10/16] (narrow) %v4662_v61, 8 }
 0x433   : > { %v4447_v1 = vpop.f32.mrf.mxu2  ;;  %v4272_v6 = vpop.f32.mrf.mxu0 }
 0x434   : > { %v4536_v2 = vpop.f32.mrf.mxu3  ;;  %v4448_v5 = vadd.f32 %v4447_v1, %v4359_v0  ;;  %v4361_v7 = vpop.f32.mrf.mxu1 }
 0x435   : > { %v4362_v13 = vadd.f32 %v4361_v7, %v4272_v6 }
 0x436   : > { %v4537_v10 = vadd.f32 %v4536_v2, %v4448_v5  ;;  %4311 = vmatmul.bf16.gmra.mxu0 %v6461_v3 }
 0x437   : > { %4400 = vmatmul.bf16.gmra.mxu1 %v6465_v4 }
 0x438   : > { %v4600_v12 = vadd.f32 %v4537_v10, %v3635_v11  ;;  %4489 = vmatmul.bf16.gmra.mxu2 %v6469_v8 }
 0x439   : > { %4578 = vmatmul.bf16.gmra.mxu3 %v6473_v9  ;;  %v4663_v14 = vld [vmem:[#allocation2 + $0x50] sm:$0xff]  ;;  %v3640_v9 = vld [vmem:[#allocation2 + $0x80] sm:$0xff] }
 0x43a   : > { %4632 = vst.msk [vmem:[#allocation2 + $0x58] sm:$0xff] %vm225_vm0, %v4600_v12  ;;  %4695 = vxpose.xlu0.b32.cont [11/16] (narrow) %v4663_v14, 8 }
 0x43b   : > { %v4450_v15 = vpop.f32.mrf.mxu2  ;;  %v4274_v18 = vpop.f32.mrf.mxu0 }
 0x43c   : > { %v4539_v16 = vpop.f32.mrf.mxu3  ;;  %v4451_v17 = vadd.f32 %v4450_v15, %v4362_v13  ;;  %v4363_v19 = vpop.f32.mrf.mxu1 }
 0x43d   : > { %v4364_v32 = vadd.f32 %v4363_v19, %v4274_v18  ;;  %v3641_v19 = vld [vmem:[#allocation2 + $0x88] sm:$0xff] }
 0x43e   : > { %v4540_v21 = vadd.f32 %v4539_v16, %v4451_v17 }
 0x440   : > { %v4601_v25 = vadd.f32 %v4540_v21, %v3636_v20 }
 0x441   : > { %v4664_v29 = vld [vmem:[#allocation2 + $0x58] sm:$0xff] }
 0x442   : > { %4633 = vst.msk [vmem:[#allocation2 + $0x60] sm:$0xff] %vm225_vm0, %v4601_v25  ;;  %4696 = vxpose.xlu0.b32.cont [12/16] (narrow) %v4664_v29, 8  ;;  %v3642_v29 = vld [vmem:[#allocation2 + $0x90] sm:$0xff] }
 0x443   : > { %v4452_v33 = vpop.f32.mrf.mxu2  ;;  %v4277_v38 = vpop.f32.mrf.mxu0 }
 0x444   : > { %v4541_v34 = vpop.f32.mrf.mxu3  ;;  %v4453_v37 = vadd.f32 %v4452_v33, %v4364_v32  ;;  %v4366_v39 = vpop.f32.mrf.mxu1 }
 0x445   : > { %v4367_v45 = vadd.f32 %v4366_v39, %v4277_v38  ;;  %v3643_v39 = vld [vmem:[#allocation2 + $0x98] sm:$0xff] }
 0x446   : > { %v4542_v42 = vadd.f32 %v4541_v34, %v4453_v37  ;;  %4316 = vmatmul.bf16.gmra.mxu0 %v6477_v35 }
 0x447   : > { %4405 = vmatmul.bf16.gmra.mxu1 %v6481_v36 }
 0x448   : > { %v4602_v44 = vadd.f32 %v4542_v42, %v3637_v43  ;;  %4494 = vmatmul.bf16.gmra.mxu2 %v6485_v40 }
 0x449   : > { %4583 = vmatmul.bf16.gmra.mxu3 %v6489_v41  ;;  %v4665_v46 = vld [vmem:[#allocation2 + $0x60] sm:$0xff] }
 0x44a   : > { %4634 = vst.msk [vmem:[#allocation2 + $0x68] sm:$0xff] %vm225_vm0, %v4602_v44  ;;  %4697 = vxpose.xlu0.b32.cont [13/16] (narrow) %v4665_v46, 8 }
 0x44b   : > { %v4455_v47 = vpop.f32.mrf.mxu2  ;;  %v4279_v50 = vpop.f32.mrf.mxu0 }
 0x44c   : > { %v4544_v48 = vpop.f32.mrf.mxu3  ;;  %v4456_v49 = vadd.f32 %v4455_v47, %v4367_v45  ;;  %v4368_v51 = vpop.f32.mrf.mxu1 }
 0x44d   : > { %v4369_v56 = vadd.f32 %v4368_v51, %v4279_v50 }
 0x44e   : > { %v4545_v52 = vadd.f32 %v4544_v48, %v4456_v49  ;;  %v3644_v49 = vld [vmem:[#allocation2 + $0xa0] sm:$0xff] }
 0x450   : > { %v4603_v54 = vadd.f32 %v4545_v52, %v3638_v53 }
 0x451   : > { %v4666_v55 = vld [vmem:[#allocation2 + $0x68] sm:$0xff] }
 0x452   : > { %4635 = vst.msk [vmem:[#allocation2 + $0x70] sm:$0xff] %vm225_vm0, %v4603_v54  ;;  %4698 = vxpose.xlu0.b32.cont [14/16] (narrow) %v4666_v55, 8 }
 0x453   : > { %v4457_v57 = vpop.f32.mrf.mxu2  ;;  %v4282_v60 = vpop.f32.mrf.mxu0 }
 0x454   : > { %v4546_v58 = vpop.f32.mrf.mxu3  ;;  %v4458_v59 = vadd.f32 %v4457_v57, %v4369_v56  ;;  %v4371_v61 = vpop.f32.mrf.mxu1 }
 0x455   : > { %v4372_v1 = vadd.f32 %v4371_v61, %v4282_v60 }
 0x456   : > { %v4547_v62 = vadd.f32 %v4546_v58, %v4458_v59  ;;  %v3645_v59 = vld [vmem:[#allocation2 + $0xa8] sm:$0xff] }
 0x458   : > { %v4604_v0 = vadd.f32 %v4547_v62, %v3639_v63 }
 0x459   : > { %v4667_v2 = vld [vmem:[#allocation2 + $0x70] sm:$0xff] }
 0x45a   : > { %4636 = vst.msk [vmem:[#allocation2 + $0x78] sm:$0xff] %vm225_vm0, %v4604_v0  ;;  %4699 = vxpose.xlu0.b32.cont [15/16] (narrow) %v4667_v2, 8 }
 0x45b   : > { %v4460_v3 = vpop.f32.mrf.mxu2  ;;  %v4284_v6 = vpop.f32.mrf.mxu0 }
 0x45c   : > { %v4549_v4 = vpop.f32.mrf.mxu3  ;;  %v4461_v5 = vadd.f32 %v4460_v3, %v4372_v1  ;;  %v4373_v7 = vpop.f32.mrf.mxu1 }
 0x45d   : > { %v4374_v12 = vadd.f32 %v4373_v7, %v4284_v6 }
 0x45e   : > { %v4550_v8 = vadd.f32 %v4549_v4, %v4461_v5  ;;  %v3646_v5 = vld [vmem:[#allocation2 + $0xb0] sm:$0xff] }
 0x460   : > { %v4605_v10 = vadd.f32 %v4550_v8, %v3640_v9 }
 0x461   : > { %v4668_v11 = vld [vmem:[#allocation2 + $0x78] sm:$0xff] }
 0x462   : > { %4637 = vst.msk [vmem:[#allocation2 + $0x80] sm:$0xff] %vm225_vm0, %v4605_v10  ;;  %4700 = vxpose.xlu0.b32.end [16/16] (narrow) %v4668_v11, 8 }
 0x463   : > { %v4462_v13 = vpop.f32.mrf.mxu2  ;;  %v4287_v16 = vpop.f32.mrf.mxu0 }
 0x464   : > { %v4551_v14 = vpop.f32.mrf.mxu3  ;;  %v4463_v15 = vadd.f32 %v4462_v13, %v4374_v12  ;;  %v4376_v17 = vpop.f32.mrf.mxu1 }
 0x465   : > { %v4377_v21 = vadd.f32 %v4376_v17, %v4287_v16 }
 0x466   : > { %v4552_v18 = vadd.f32 %v4551_v14, %v4463_v15  ;;  %v3647_v15 = vld [vmem:[#allocation2 + $0xb8] sm:$0xff] }
 0x468   : > { %v4606_v20 = vadd.f32 %v4552_v18, %v3641_v19 }
 0x469   : > { %v4669_v22 = vld [vmem:[#allocation2 + $0x80] sm:$0xff] }
 0x46a   : > { %4638 = vst.msk [vmem:[#allocation2 + $0x88] sm:$0xff] %vm225_vm0, %v4606_v20  ;;  %4717 = vxpose.xlu1.b32.start [1/16] (narrow) %v4669_v22, 8 }
 0x46b   : > { %v4465_v23 = vpop.f32.mrf.mxu2  ;;  %v4289_v26 = vpop.f32.mrf.mxu0 }
 0x46c   : > { %v4554_v24 = vpop.f32.mrf.mxu3  ;;  %v4466_v25 = vadd.f32 %v4465_v23, %v4377_v21  ;;  %v4378_v27 = vpop.f32.mrf.mxu1 }
 0x46d   : > { %v4379_v32 = vadd.f32 %v4378_v27, %v4289_v26 }
 0x46e   : > { %v4555_v28 = vadd.f32 %v4554_v24, %v4466_v25  ;;  %v3648_v25 = vld [vmem:[#allocation2 + $0xc0] sm:$0xff] }
 0x470   : > { %v4607_v30 = vadd.f32 %v4555_v28, %v3642_v29 }
 0x471   : > { %v4670_v31 = vld [vmem:[#allocation2 + $0x88] sm:$0xff] }
 0x472   : > { %4639 = vst.msk [vmem:[#allocation2 + $0x90] sm:$0xff] %vm225_vm0, %v4607_v30  ;;  %4718 = vxpose.xlu1.b32.cont [2/16] (narrow) %v4670_v31, 8 }
 0x473   : > { %v4467_v33 = vpop.f32.mrf.mxu2  ;;  %v4292_v36 = vpop.f32.mrf.mxu0 }
 0x474   : > { %v4556_v34 = vpop.f32.mrf.mxu3  ;;  %v4468_v35 = vadd.f32 %v4467_v33, %v4379_v32  ;;  %v4381_v37 = vpop.f32.mrf.mxu1 }
 0x475   : > { %v4382_v41 = vadd.f32 %v4381_v37, %v4292_v36 }
 0x476   : > { %v4557_v38 = vadd.f32 %v4556_v34, %v4468_v35  ;;  %v3649_v35 = vld [vmem:[#allocation2 + $0xc8] sm:$0xff] }
 0x478   : > { %v4608_v40 = vadd.f32 %v4557_v38, %v3643_v39 }
 0x479   : > { %v4671_v42 = vld [vmem:[#allocation2 + $0x90] sm:$0xff] }
 0x47a   : > { %4640 = vst.msk [vmem:[#allocation2 + $0x98] sm:$0xff] %vm225_vm0, %v4608_v40  ;;  %4719 = vxpose.xlu1.b32.cont [3/16] (narrow) %v4671_v42, 8 }
 0x47b   : > { %v4470_v43 = vpop.f32.mrf.mxu2  ;;  %v4294_v46 = vpop.f32.mrf.mxu0 }
 0x47c   : > { %v4559_v44 = vpop.f32.mrf.mxu3  ;;  %v4471_v45 = vadd.f32 %v4470_v43, %v4382_v41  ;;  %v4383_v47 = vpop.f32.mrf.mxu1 }
 0x47d   : > { %v4384_v52 = vadd.f32 %v4383_v47, %v4294_v46 }
 0x47e   : > { %v4560_v48 = vadd.f32 %v4559_v44, %v4471_v45  ;;  %v3650_v45 = vld [vmem:[#allocation2 + $0xd0] sm:$0xff] }
 0x480   : > { %v4609_v50 = vadd.f32 %v4560_v48, %v3644_v49 }
 0x481   : > { %v4672_v51 = vld [vmem:[#allocation2 + $0x98] sm:$0xff] }
 0x482   : > { %4641 = vst.msk [vmem:[#allocation2 + $0xa0] sm:$0xff] %vm225_vm0, %v4609_v50  ;;  %4720 = vxpose.xlu1.b32.cont [4/16] (narrow) %v4672_v51, 8 }
 0x483   : > { %v4472_v53 = vpop.f32.mrf.mxu2  ;;  %v4297_v56 = vpop.f32.mrf.mxu0 }
 0x484   : > { %v4561_v54 = vpop.f32.mrf.mxu3  ;;  %v4473_v55 = vadd.f32 %v4472_v53, %v4384_v52  ;;  %v4386_v57 = vpop.f32.mrf.mxu1 }
 0x485   : > { %v4387_v61 = vadd.f32 %v4386_v57, %v4297_v56 }
 0x486   : > { %v4562_v58 = vadd.f32 %v4561_v54, %v4473_v55  ;;  %v3651_v55 = vld [vmem:[#allocation2 + $0xd8] sm:$0xff] }
 0x488   : > { %v4610_v60 = vadd.f32 %v4562_v58, %v3645_v59 }
 0x489   : > { %v4673_v62 = vld [vmem:[#allocation2 + $0xa0] sm:$0xff] }
 0x48a   : > { %4642 = vst.msk [vmem:[#allocation2 + $0xa8] sm:$0xff] %vm225_vm0, %v4610_v60  ;;  %4721 = vxpose.xlu1.b32.cont [5/16] (narrow) %v4673_v62, 8 }
 0x48b   : > { %v4475_v63 = vpop.f32.mrf.mxu2  ;;  %v4299_v2 = vpop.f32.mrf.mxu0 }
 0x48c   : > { %v4564_v0 = vpop.f32.mrf.mxu3  ;;  %v4476_v1 = vadd.f32 %v4475_v63, %v4387_v61  ;;  %v4388_v3 = vpop.f32.mrf.mxu1 }
 0x48d   : > { %v4389_v8 = vadd.f32 %v4388_v3, %v4299_v2 }
 0x48e   : > { %v4565_v4 = vadd.f32 %v4564_v0, %v4476_v1  ;;  %v3652_v1 = vld [vmem:[#allocation2 + $0xe0] sm:$0xff] }
 0x490   : > { %v4611_v6 = vadd.f32 %v4565_v4, %v3646_v5 }
 0x491   : > { %v4674_v7 = vld [vmem:[#allocation2 + $0xa8] sm:$0xff] }
 0x492   : > { %4643 = vst.msk [vmem:[#allocation2 + $0xb0] sm:$0xff] %vm225_vm0, %v4611_v6  ;;  %4722 = vxpose.xlu1.b32.cont [6/16] (narrow) %v4674_v7, 8 }
 0x493   : > { %v4477_v9 = vpop.f32.mrf.mxu2  ;;  %v4302_v12 = vpop.f32.mrf.mxu0 }
 0x494   : > { %v4566_v10 = vpop.f32.mrf.mxu3  ;;  %v4478_v11 = vadd.f32 %v4477_v9, %v4389_v8  ;;  %v4391_v13 = vpop.f32.mrf.mxu1 }
 0x495   : > { %v4392_v17 = vadd.f32 %v4391_v13, %v4302_v12 }
 0x496   : > { %v4567_v14 = vadd.f32 %v4566_v10, %v4478_v11  ;;  %v3653_v11 = vld [vmem:[#allocation2 + $0xe8] sm:$0xff] }
 0x498   : > { %v4612_v16 = vadd.f32 %v4567_v14, %v3647_v15 }
 0x499   : > { %v4675_v18 = vld [vmem:[#allocation2 + $0xb0] sm:$0xff] }
 0x49a   : > { %4644 = vst.msk [vmem:[#allocation2 + $0xb8] sm:$0xff] %vm225_vm0, %v4612_v16  ;;  %4723 = vxpose.xlu1.b32.cont [7/16] (narrow) %v4675_v18, 8 }
 0x49b   : > { %v4480_v19 = vpop.f32.mrf.mxu2  ;;  %v4304_v22 = vpop.f32.mrf.mxu0 }
 0x49c   : > { %v4569_v20 = vpop.f32.mrf.mxu3  ;;  %v4481_v21 = vadd.f32 %v4480_v19, %v4392_v17  ;;  %v4393_v23 = vpop.f32.mrf.mxu1  ;;  %v3654_v19 = vld [vmem:[#allocation2 + $0xf0] sm:$0xff] }
 0x49d   : > { %v4394_v28 = vadd.f32 %v4393_v23, %v4304_v22 }
 0x49e   : > { %v4570_v24 = vadd.f32 %v4569_v20, %v4481_v21 }
 0x4a0   : > { %v4613_v26 = vadd.f32 %v4570_v24, %v3648_v25 }
 0x4a1   : > { %v4676_v27 = vld [vmem:[#allocation2 + $0xb8] sm:$0xff] }
 0x4a2   : > { %4645 = vst.msk [vmem:[#allocation2 + $0xc0] sm:$0xff] %vm225_vm0, %v4613_v26  ;;  %4724 = vxpose.xlu1.b32.cont [8/16] (narrow) %v4676_v27, 8 }
 0x4a3   : > { %v4482_v29 = vpop.f32.mrf.mxu2  ;;  %v4307_v32 = vpop.f32.mrf.mxu0 }
 0x4a4   : > { %v4571_v30 = vpop.f32.mrf.mxu3  ;;  %v4483_v31 = vadd.f32 %v4482_v29, %v4394_v28  ;;  %v4396_v33 = vpop.f32.mrf.mxu1  ;;  %v3655_v29 = vld [vmem:[#allocation2 + $0xf8] sm:$0xff] }
 0x4a5   : > { %v4397_v37 = vadd.f32 %v4396_v33, %v4307_v32  ;;  %v4701_v33 = vpop.trf.xlu0 }
 0x4a6   : > { %v4572_v34 = vadd.f32 %v4571_v30, %v4483_v31  ;;  %4749 = vst [vmem:[%s219_s4] sm:$0xff] %v4701_v33 }
 0x4a8   : > { %v4614_v36 = vadd.f32 %v4572_v34, %v3649_v35 }
 0x4a9   : > { %v4677_v38 = vld [vmem:[#allocation2 + $0xc0] sm:$0xff] }
 0x4aa   : > { %4646 = vst.msk [vmem:[#allocation2 + $0xc8] sm:$0xff] %vm225_vm0, %v4614_v36  ;;  %4725 = vxpose.xlu1.b32.cont [9/16] (narrow) %v4677_v38, 8 }
 0x4ab   : > { %v4485_v39 = vpop.f32.mrf.mxu2  ;;  %v4309_v42 = vpop.f32.mrf.mxu0 }
 0x4ac   : > { %v4574_v40 = vpop.f32.mrf.mxu3  ;;  %v4486_v41 = vadd.f32 %v4485_v39, %v4397_v37  ;;  %v4398_v43 = vpop.f32.mrf.mxu1 }
 0x4ad   : > { %v4399_v48 = vadd.f32 %v4398_v43, %v4309_v42 }
 0x4ae   : > { %v4575_v44 = vadd.f32 %v4574_v40, %v4486_v41 }
 0x4b0   : > { %v4615_v46 = vadd.f32 %v4575_v44, %v3650_v45 }
 0x4b1   : > { %v4678_v47 = vld [vmem:[#allocation2 + $0xc8] sm:$0xff] }
 0x4b2   : > { %4647 = vst.msk [vmem:[#allocation2 + $0xd0] sm:$0xff] %vm225_vm0, %v4615_v46  ;;  %4726 = vxpose.xlu1.b32.cont [10/16] (narrow) %v4678_v47, 8 }
 0x4b3   : > { %v4487_v49 = vpop.f32.mrf.mxu2  ;;  %v4312_v52 = vpop.f32.mrf.mxu0 }
 0x4b4   : > { %v4576_v50 = vpop.f32.mrf.mxu3  ;;  %v4488_v51 = vadd.f32 %v4487_v49, %v4399_v48  ;;  %v4401_v53 = vpop.f32.mrf.mxu1 }
 0x4b5   : > { %v4402_v57 = vadd.f32 %v4401_v53, %v4312_v52 }
 0x4b6   : > { %v4577_v54 = vadd.f32 %v4576_v50, %v4488_v51 }
 0x4b8   : > { %v4616_v56 = vadd.f32 %v4577_v54, %v3651_v55 }
 0x4b9   : > { %v4679_v58 = vld [vmem:[#allocation2 + $0xd0] sm:$0xff] }
 0x4ba   : > { %4648 = vst.msk [vmem:[#allocation2 + $0xd8] sm:$0xff] %vm225_vm0, %v4616_v56  ;;  %4727 = vxpose.xlu1.b32.cont [11/16] (narrow) %v4679_v58, 8 }
 0x4bb   : > { %v4490_v59 = vpop.f32.mrf.mxu2  ;;  %v4314_v62 = vpop.f32.mrf.mxu0 }
 0x4bc   : > { %v4579_v60 = vpop.f32.mrf.mxu3  ;;  %v4491_v61 = vadd.f32 %v4490_v59, %v4402_v57  ;;  %v4403_v63 = vpop.f32.mrf.mxu1 }
 0x4bd   : > { %v4404_v4 = vadd.f32 %v4403_v63, %v4314_v62 }
 0x4be   : > { %v4580_v0 = vadd.f32 %v4579_v60, %v4491_v61 }
 0x4c0   : > { %v4617_v2 = vadd.f32 %v4580_v0, %v3652_v1 }
 0x4c1   : > { %v4680_v3 = vld [vmem:[#allocation2 + $0xd8] sm:$0xff] }
 0x4c2   : > { %4649 = vst.msk [vmem:[#allocation2 + $0xe0] sm:$0xff] %vm225_vm0, %v4617_v2  ;;  %4728 = vxpose.xlu1.b32.cont [12/16] (narrow) %v4680_v3, 8 }
 0x4c3   : > { %v4492_v5 = vpop.f32.mrf.mxu2  ;;  %v4317_v8 = vpop.f32.mrf.mxu0 }
 0x4c4   : > { %v4581_v6 = vpop.f32.mrf.mxu3  ;;  %v4493_v7 = vadd.f32 %v4492_v5, %v4404_v4  ;;  %v4406_v9 = vpop.f32.mrf.mxu1 }
 0x4c5   : > { %v4407_v13 = vadd.f32 %v4406_v9, %v4317_v8 }
 0x4c6   : > { %v4582_v10 = vadd.f32 %v4581_v6, %v4493_v7 }
 0x4c8   : > { %v4618_v12 = vadd.f32 %v4582_v10, %v3653_v11 }
 0x4c9   : > { %v4681_v14 = vld [vmem:[#allocation2 + $0xe0] sm:$0xff] }
 0x4ca   : > { %4650 = vst.msk [vmem:[#allocation2 + $0xe8] sm:$0xff] %vm225_vm0, %v4618_v12  ;;  %4729 = vxpose.xlu1.b32.cont [13/16] (narrow) %v4681_v14, 8 }
 0x4cb   : > { %v4495_v15 = vpop.f32.mrf.mxu2  ;;  %v4319_v20 = vpop.f32.mrf.mxu0 }
 0x4cc   : > { %v4584_v16 = vpop.f32.mrf.mxu3  ;;  %v4496_v17 = vadd.f32 %v4495_v15, %v4407_v13  ;;  %v4408_v21 = vpop.f32.mrf.mxu1 }
 0x4cd   : > { %v4409_v24 = vadd.f32 %v4408_v21, %v4319_v20 }
 0x4ce   : > { %v4585_v18 = vadd.f32 %v4584_v16, %v4496_v17 }
 0x4d0   : > { %v4619_v22 = vadd.f32 %v4585_v18, %v3654_v19 }
 0x4d1   : > { %v4682_v23 = vld [vmem:[#allocation2 + $0xe8] sm:$0xff] }
 0x4d2   : > { %4651 = vst.msk [vmem:[#allocation2 + $0xf0] sm:$0xff] %vm225_vm0, %v4619_v22  ;;  %4730 = vxpose.xlu1.b32.cont [14/16] (narrow) %v4682_v23, 8 }
 0x4d3   : > { %v4497_v25 = vpop.f32.mrf.mxu2 }
 0x4d4   : > { %v4498_v26 = vadd.f32 %v4497_v25, %v4409_v24  ;;  %v4586_v27 = vpop.f32.mrf.mxu3 }
 0x4d6   : > { %v4587_v28 = vadd.f32 %v4586_v27, %v4498_v26 }
 0x4d8   : > { %v4620_v30 = vadd.f32 %v4587_v28, %v3655_v29 }
 0x4d9   : > { %v4683_v31 = vld [vmem:[#allocation2 + $0xf0] sm:$0xff] }
 0x4da   : > { %4652 = vst.msk [vmem:[#allocation2 + $0xf8] sm:$0xff] %vm225_vm0, %v4620_v30  ;;  %4731 = vxpose.xlu1.b32.cont [15/16] (narrow) %v4683_v31, 8 }
 0x4e1   : > { %v4684_v32 = vld [vmem:[#allocation2 + $0xf8] sm:$0xff] }
 0x4e2   : > { %4732 = vxpose.xlu1.b32.end [16/16] (narrow) %v4684_v32, 8 }
 0x50e   : > { %v4733_v34 = vpop.trf.xlu1 }
 0x50f   : > { %4750 = vst [vmem:[%s219_s4 + $0x8] sm:$0xff] %v4733_v34 }
 0x510   : > { %7218 = shalt.err (!%p7215_p5)
}
 0x511   : > { %7021 = dma.vmem_to_hbm [thread:$0]  (%p7421_p10), %s4768_s8, 256, %s4770_s11, %s4752_s15  }
 0x512 PF: > { %s8686_s27 = sld [smem:[#allocation14_spill]] }
 0x513   : > { %s8687_s4 = sld [smem:[#allocation12_spill]] }
 0x518   : > { %p7038_p7 = scmp.ge.s32.totalorder %s8686_s27, 2 }
 0x519   : > { %s4781_s7 = sand.u32 1, %s8687_s4  }
 0x51a   : > { %p7032_p8 = pnand %p7038_p7, %p7426_p12  ;;  %s4782_s5 = scalar_lea.sflag [#allocation5], %s4781_s7 }
 0x51c   : > { %p7033_p4 = pneg %p7032_p8 }
 0x51e   : > { %7272 = dma.done.wait (%p7033_p4), %s4782_s5, 256  }
 0x51f   : > { %7274 = vsyncadd (%p7033_p4), %s4782_s5, 4294967040  ;;  %s20_s25 = sadd.s32 1, %s8686_s27   ;;  %s8689_s18 = sld [smem:[#allocation13_spill]] }
 0x520   : > { %p17_p9 = scmp.ge.s32.totalorder %s20_s25, 6   ;;  %s8690_s6 = sld [smem:[#allocation17_spill]] }
 0x521   : > { %s8691_s12 = smov %s7281_s13  ;;  %s8692_s13 = smov %s7285_s14 }
 0x522   : > { %s8693_s14 = smov %s7473_s22  ;;  %s8694_s15 = smov %s7293_s16 }
 0x523   : > { %s8695_s16 = smov %s7297_s17  ;;  %s8696_s17 = smov %s7468_s20 }
 0x524   : > { %s8697_s19 = smov %s7313_s21  ;;  %s8699_s21 = smov %s8706_s23 }
 0x525   : > { %s8700_s22 = smov %s20_s25  ;;  %19 = sbr.rel (!%p17_p9) target bundleno = 13 (0xd), region = 88 }
 0x526   : > { %s8698_s20 = smov %s8690_s6 }
 0x52a   :  { %4788 = vsyncpa [#allocation4], 1 }
 0x52b   :  { %4790 = vsyncpa [#allocation4 + $0x1], 1 }
 0x52c   :  { %4791 = vsyncpa [#allocation7], 1 }
 0x52d   :  { %4792 = vsyncpa [#allocation5], 1 }
 0x52e   :  { %4794 = vsyncpa [#allocation5 + $0x1], 1 }

</bundles_post_ra>
